<compile_context>
chip_gen: v5e
topology: v5e:2x2
jax: 0.10.0
libtpu: 0.0.40
codegen_flags: <defaults>
</compile_context>

<pallas_src>
import functools

import numpy as np
import jax
import jax.numpy as jnp
from jax import lax
from jax.experimental import pallas as pl
from jax.experimental.pallas import tpu as pltpu


def _round_up(x, m):
    return ((x + m - 1) // m) * m


def _relation_kernel(n_valid, n_freq, scale, tm,
                     key_ref, qT_ref, vis_ref, box_i_ref, box_j_ref,
                     amp_ref, phase_ref, bg_ref, out_ref):
    f32 = jnp.float32
    n_pad = qT_ref.shape[1]
    i0 = pl.program_id(0) * tm                         # global row offset of this tile

    # ---- visual similarity [TM, N]: bf16 operands, f32 accumulation --------
    # key already carries the folded 1/sqrt(dim_mm) scale; query is
    # pre-transposed on the host so this is a plain MXU dot.
    vw = jnp.dot(key_ref[...], qT_ref[...], preferred_element_type=f32)

    # ---- geometry branch from O(N) per-box features -------------------------
    # box layout (host precomputed): [cx, cy, 1/w, 1/h, log w, log h, 0, 0]
    cx_i = box_i_ref[:, 0:1]; cy_i = box_i_ref[:, 1:2]        # [TM, 1]
    iw_i = box_i_ref[:, 2:3]; ih_i = box_i_ref[:, 3:4]
    lw_i = box_i_ref[:, 4:5]; lh_i = box_i_ref[:, 5:6]
    cx_j = box_j_ref[0:1, :]; cy_j = box_j_ref[1:2, :]        # [1, N]
    lw_j = box_j_ref[4:5, :]; lh_j = box_j_ref[5:6, :]

    geo = jnp.zeros((tm, n_pad), f32) + bg_ref[0]
    # Only one [TM, N] log-feature slab is live at a time.
    for f in range(4):
        if f == 0:
            feat = jnp.abs(cx_i - cx_j) * iw_i                # |dx| / w_i
            pm_f = jnp.where(feat == 0.0, 0.0,
                             jnp.log(jnp.where(feat == 0.0, 1.0, feat)))
        elif f == 1:
            feat = jnp.abs(cy_i - cy_j) * ih_i                # |dy| / h_i
            pm_f = jnp.where(feat == 0.0, 0.0,
                             jnp.log(jnp.where(feat == 0.0, 1.0, feat)))
        elif f == 2:
            pm_f = lw_i - lw_j          # log(w_i / w_j); w > 0 so never the ==0 case
        else:
            pm_f = lh_i - lh_j          # log(h_i / h_j)
        # positional encoding + Linear(dim_mm, 1), fused with the phase
        # identity ws*sin(x) + wc*cos(x) = A*sin(x + phi).
        for k in range(n_freq):
            geo = geo + amp_ref[f, k] * jnp.sin(pm_f * scale[k] + phase_ref[f, k])
    geo = jnp.maximum(geo, 0.0)

    # ---- attention -----------------------------------------------------------
    m = jnp.max(vw, axis=1, keepdims=True)
    att = jnp.exp(vw - m) * geo
    row = i0 + lax.broadcasted_iota(jnp.int32, (tm, n_pad), 0)
    col = lax.broadcasted_iota(jnp.int32, (tm, n_pad), 1)
    mask = row == col                                        # attention[i, i] = 0
    if n_pad > n_valid:
        mask = mask | (col >= n_valid)                       # drop padded columns
    att = jnp.where(mask, 0.0, att)
    # Row-max shift cancels exactly because the epsilon is shifted too:
    #   exp(vw-m)*geo / (sum(exp(vw-m)*geo) + 1e-10*exp(-m))
    #     == exp(vw)*geo / (sum(exp(vw)*geo) + 1e-10)        (reference semantics)
    denom = jnp.sum(att, axis=1, keepdims=True) + 1e-10 * jnp.exp(-m)
    att = att * (1.0 / denom)                                # exact divide on [TM, 1]

    out_ref[...] = jnp.dot(att.astype(jnp.bfloat16), vis_ref[...],
                           preferred_element_type=f32)       # [TM, dim_o_pad]


def relation_module(feature_visual, rois, params, dim_mm):
    n, dim_v = feature_visual.shape
    dim_o = params["Wv"].shape[1]
    n_freq = dim_mm // 8

    # ---- hoisted projections (dense GEMMs; XLA already runs these at peak) --
    fv = jnp.maximum(feature_visual.astype(jnp.float32), 0.0)
    inv = 1.0 / float(np.sqrt(dim_mm))
    key = (fv @ params["Wk"] + params["bk"]) * inv            # fold 1/sqrt(dim_mm)
    query = fv @ params["Wq"] + params["bq"]
    vis = fv @ params["Wv"] + params["bv"]

    # ---- phase fusion of the geometry linear --------------------------------
    wg2 = params["wg"].reshape(4, 2 * n_freq)
    ws, wc = wg2[:, :n_freq], wg2[:, n_freq:]
    amp = jnp.sqrt(ws * ws + wc * wc).astype(jnp.float32)     # [4, n_freq]
    phase = jnp.arctan2(wc, ws).astype(jnp.float32)           # [4, n_freq]
    bg = params["bg"].astype(jnp.float32).reshape(1)          # [1]
    bases = np.power(1000.0, 8.0 * np.arange(n_freq) / dim_mm)
    scale = tuple((100.0 / bases).astype(np.float32).tolist())  # static, baked in

    # ---- O(N) per-box features (divides / logs hoisted out of the kernel) ---
    r = rois[:, 1:] if rois.shape[1] == 5 else rois
    bw = r[:, 2] - r[:, 0] + 1e-10
    bh = r[:, 3] - r[:, 1] + 1e-10
    cx = (r[:, 2] + r[:, 0]) * 0.5
    cy = (r[:, 3] + r[:, 1]) * 0.5
    zeros = jnp.zeros_like(cx)
    box = jnp.stack([cx, cy, 1.0 / bw, 1.0 / bh, jnp.log(bw), jnp.log(bh),
                     zeros, zeros], axis=1).astype(jnp.float32)        # [N, 8]

    # ---- tiling --------------------------------------------------------------
    try:
        kind = jax.devices()[0].device_kind.lower()
    except Exception:
        kind = ""
    cap = 128 if "v5" in kind else 256      # v5e MXU is 128-wide; v6e/v7x are 256-wide
    tm = min(cap, _round_up(max((n + 1) // 2, 8), 8))   # >=2 grid steps when n > 8
    grid_m = -(-n // tm)
    n_pad = grid_m * tm
    pad = n_pad - n
    dim_o_pad = _round_up(dim_o, 128)       # unmasked full-lane output stores

    key_p = jnp.pad(key, ((0, pad), (0, 0))).astype(jnp.bfloat16)        # [n_pad, dim_mm]
    qT_p = jnp.pad(query, ((0, pad), (0, 0))).T.astype(jnp.bfloat16)     # [dim_mm, n_pad]
    vis_p = jnp.pad(vis, ((0, pad), (0, dim_o_pad - dim_o))).astype(jnp.bfloat16)
    if pad:
        benign = jnp.tile(jnp.asarray([[0., 0., 1., 1., 0., 0., 0., 0.]], jnp.float32),
                          (pad, 1))
        box_p = jnp.concatenate([box, benign], axis=0)
    else:
        box_p = box
    box_i = box_p                                                        # [n_pad, 8]
    box_j = box_p.T                                                      # [8, n_pad]

    vmem = pltpu.MemorySpace.VMEM
    smem = pl.BlockSpec(memory_space=pltpu.MemorySpace.SMEM)
    kernel = functools.partial(_relation_kernel, n, n_freq, scale, tm)

    flops = 2 * n_pad * n_pad * (dim_mm + dim_o_pad)
    transc = (4 * n_freq + 3) * n_pad * n_pad
    bytes_acc = int((key_p.size + qT_p.size + vis_p.size) * 2
                    + (box_i.size + box_j.size) * 4
                    + n_pad * dim_o_pad * 4)

    out = pl.pallas_call(
        kernel,
        out_shape=jax.ShapeDtypeStruct((n_pad, dim_o_pad), jnp.float32),
        grid=(grid_m,),
        in_specs=[
            pl.BlockSpec((tm, dim_mm), lambda i: (i, 0), memory_space=vmem),        # key rows (bf16)
            pl.BlockSpec((dim_mm, n_pad), lambda i: (0, 0), memory_space=vmem),     # query^T (bf16, const)
            pl.BlockSpec((n_pad, dim_o_pad), lambda i: (0, 0), memory_space=vmem),  # vis (bf16, const)
            pl.BlockSpec((tm, 8), lambda i: (i, 0), memory_space=vmem),             # box feats (rows)
            pl.BlockSpec((8, n_pad), lambda i: (0, 0), memory_space=vmem),          # box feats (cols)
            smem, smem, smem,                                                       # amp, phase, bg
        ],
        out_specs=pl.BlockSpec((tm, dim_o_pad), lambda i: (i, 0), memory_space=vmem),
        compiler_params=pltpu.CompilerParams(dimension_semantics=("parallel",)),
        cost_estimate=pl.CostEstimate(flops=flops, transcendentals=transc,
                                      bytes_accessed=bytes_acc),
    )(key_p, qT_p, vis_p, box_i, box_j, amp, phase, bg)

    return out[:n, :dim_o]


def geometry_log(rois):
    """geometry_transform(): log of the 4 relative-geometry features -> [4, N, N]."""
    eps = 1e-10
    if rois.shape[1] == 5:
        rois = rois[:, 1:]
    w = rois[:, 2] - rois[:, 0] + eps
    h = rois[:, 3] - rois[:, 1] + eps
    cx = (rois[:, 2] + rois[:, 0]) / 2.0
    cy = (rois[:, 3] + rois[:, 1]) / 2.0
    f0 = jnp.abs(cx[:, None] - cx[None, :]) / w[:, None]
    f1 = jnp.abs(cy[:, None] - cy[None, :]) / h[:, None]
    f2 = w[:, None] / w[None, :]
    f3 = h[:, None] / h[None, :]
    feat = jnp.stack([f0, f1, f2, f3], axis=0)
    safe = jnp.where(feat == 0, 1.0, feat)
    return jnp.where(feat == 0, 0.0, jnp.log(safe)).astype(jnp.float32)


def reference(feature_visual, rois, params, dim_mm):
    """Pure-JAX reference reproducing the PyTorch forward exactly."""
    fv = jnp.maximum(feature_visual, 0.0)
    key = fv @ params["Wk"] + params["bk"]
    query = fv @ params["Wq"] + params["bq"]
    vis = fv @ params["Wv"] + params["bv"]
    vw = key @ query.T / float(np.sqrt(dim_mm))

    pm = jnp.transpose(geometry_log(rois), (1, 2, 0))                   # [N, N, 4]
    n_freq = dim_mm // 8
    bases = jnp.asarray(np.power(1000.0, 8.0 * np.arange(n_freq) / dim_mm), jnp.float32)
    pe = pm[..., None] * 100.0 / bases                                  # [N, N, 4, n_freq]
    enc = jnp.concatenate([jnp.sin(pe), jnp.cos(pe)], axis=3)
    enc = enc.reshape(pm.shape[0], pm.shape[1], dim_mm)
    geo = jnp.maximum(jnp.einsum("ijd,d->ij", enc, params["wg"]) + params["bg"][0], 0.0)

    att = jnp.exp(vw) * geo
    att = att * (1.0 - jnp.eye(att.shape[0], dtype=att.dtype))
    att = att / (jnp.sum(att, axis=1, keepdims=True) + 1e-10)
    return att @ vis


if __name__ == "__main__":
    N, dim_v, dim_mm, dim_o = 8, 32, 32, 32                             # dim_mm % 8 == 0
    key = jax.random.PRNGKey(0)
    ks = jax.random.split(key, 10)

    feature_visual = jax.random.normal(ks[0], (N, dim_v), jnp.float32)
    xy = jax.random.uniform(ks[1], (N, 2), jnp.float32, 0.0, 50.0)
    wh = jax.random.uniform(ks[2], (N, 2), jnp.float32, 5.0, 30.0)
    rois = jnp.concatenate([xy, xy + wh], axis=1)                       # [N, 4]

    params = {
        "Wk": jax.random.normal(ks[3], (dim_v, dim_mm), jnp.float32) / np.sqrt(dim_v),
        "bk": jax.random.normal(ks[4], (dim_mm,), jnp.float32) * 0.01,
        "Wq": jax.random.normal(ks[5], (dim_v, dim_mm), jnp.float32) / np.sqrt(dim_v),
        "bq": jax.random.normal(ks[6], (dim_mm,), jnp.float32) * 0.01,
        "Wv": jax.random.normal(ks[7], (dim_v, dim_o), jnp.float32) / np.sqrt(dim_v),
        "bv": jax.random.normal(ks[8], (dim_o,), jnp.float32) * 0.01,
        "wg": jax.random.normal(ks[9], (dim_mm,), jnp.float32) / np.sqrt(dim_mm),
        "bg": jnp.asarray([0.05], jnp.float32),
    }

    out = jax.block_until_ready(relation_module(feature_visual, rois, params, dim_mm))
    ref = jax.block_until_ready(reference(feature_visual, rois, params, dim_mm))

    if not np.allclose(np.asarray(out), np.asarray(ref), rtol=2e-2, atol=2e-2):
        raise AssertionError("Pallas kernel disagrees with reference")
    print("KERNEL_OK")
</pallas_src>

<mosaic_0001>
module attributes {stable_mosaic.version = 11 : i64} {
  func.func @_relation_kernel(%arg0: i32, %arg1: memref<8x32xbf16, #tpu.memory_space<vmem>>, %arg2: memref<32x8xbf16, #tpu.memory_space<vmem>>, %arg3: memref<8x128xbf16, #tpu.memory_space<vmem>>, %arg4: memref<8x8xf32, #tpu.memory_space<vmem>>, %arg5: memref<8x8xf32, #tpu.memory_space<vmem>>, %arg6: memref<4x4xf32, #tpu.memory_space<smem>>, %arg7: memref<4x4xf32, #tpu.memory_space<smem>>, %arg8: memref<1xf32, #tpu.memory_space<smem>>, %arg9: memref<8x128xf32, #tpu.memory_space<vmem>>) attributes {dimension_semantics = [#tpu.dimension_semantics<parallel>], iteration_bounds = array<i64: 1>, scalar_prefetch = 0 : i64, scratch_operands = 0 : i64, tpu.core_type = #tpu.core_type<tc>, window_params = [{transform_indices = @transform_0, window_bounds = array<i64: 8, 32>}, {pipeline_mode = #tpu.pipeline_mode<synchronous>, transform_indices = @transform_1, window_bounds = array<i64: 32, 8>}, {pipeline_mode = #tpu.pipeline_mode<synchronous>, transform_indices = @transform_2, window_bounds = array<i64: 8, 128>}, {transform_indices = @transform_3, window_bounds = array<i64: 8, 8>}, {pipeline_mode = #tpu.pipeline_mode<synchronous>, transform_indices = @transform_4, window_bounds = array<i64: 8, 8>}, {transform_indices = @transform_5, window_bounds = array<i64: 4, 4>}, {transform_indices = @transform_6, window_bounds = array<i64: 4, 4>}, {transform_indices = @transform_7, window_bounds = array<i64: 1>}, {transform_indices = @transform_8, window_bounds = array<i64: 8, 128>}]} {
    %c8_i32 = arith.constant 8 : i32
    %0 = arith.muli %arg0, %c8_i32 : i32
    %c0 = arith.constant 0 : index
    %c0_0 = arith.constant 0 : index
    %1 = vector.load %arg1[%c0, %c0_0] : memref<8x32xbf16, #tpu.memory_space<vmem>>, vector<8x32xbf16>
    %c0_1 = arith.constant 0 : index
    %c0_2 = arith.constant 0 : index
    %2 = vector.load %arg2[%c0_1, %c0_2] : memref<32x8xbf16, #tpu.memory_space<vmem>>, vector<32x8xbf16>
    %cst = arith.constant dense<0.000000e+00> : vector<8x8xf32>
    %3 = tpu.matmul %1, %2, %cst {dimension_numbers = #tpu.dot_dimension_numbers<[1], [0], [0], [1], [0, 0, 1, 1], [], []>} : vector<8x32xbf16>, vector<32x8xbf16>, vector<8x8xf32> -> vector<8x8xf32>
    %c0_3 = arith.constant 0 : index
    %c0_4 = arith.constant 0 : index
    %4 = vector.load %arg4[%c0_3, %c0_4] : memref<8x8xf32, #tpu.memory_space<vmem>>, vector<8x1xf32>
    %c0_5 = arith.constant 0 : index
    %c1 = arith.constant 1 : index
    %5 = vector.load %arg4[%c0_5, %c1] : memref<8x8xf32, #tpu.memory_space<vmem>>, vector<8x1xf32>
    %c0_6 = arith.constant 0 : index
    %c2 = arith.constant 2 : index
    %6 = vector.load %arg4[%c0_6, %c2] : memref<8x8xf32, #tpu.memory_space<vmem>>, vector<8x1xf32>
    %c0_7 = arith.constant 0 : index
    %c3 = arith.constant 3 : index
    %7 = vector.load %arg4[%c0_7, %c3] : memref<8x8xf32, #tpu.memory_space<vmem>>, vector<8x1xf32>
    %c0_8 = arith.constant 0 : index
    %c4 = arith.constant 4 : index
    %8 = vector.load %arg4[%c0_8, %c4] : memref<8x8xf32, #tpu.memory_space<vmem>>, vector<8x1xf32>
    %c0_9 = arith.constant 0 : index
    %c5 = arith.constant 5 : index
    %9 = vector.load %arg4[%c0_9, %c5] : memref<8x8xf32, #tpu.memory_space<vmem>>, vector<8x1xf32>
    %c0_10 = arith.constant 0 : index
    %c0_11 = arith.constant 0 : index
    %10 = vector.load %arg5[%c0_10, %c0_11] : memref<8x8xf32, #tpu.memory_space<vmem>>, vector<1x8xf32>
    %c1_12 = arith.constant 1 : index
    %c0_13 = arith.constant 0 : index
    %11 = vector.load %arg5[%c1_12, %c0_13] : memref<8x8xf32, #tpu.memory_space<vmem>>, vector<1x8xf32>
    %c4_14 = arith.constant 4 : index
    %c0_15 = arith.constant 0 : index
    %12 = vector.load %arg5[%c4_14, %c0_15] : memref<8x8xf32, #tpu.memory_space<vmem>>, vector<1x8xf32>
    %c5_16 = arith.constant 5 : index
    %c0_17 = arith.constant 0 : index
    %13 = vector.load %arg5[%c5_16, %c0_17] : memref<8x8xf32, #tpu.memory_space<vmem>>, vector<1x8xf32>
    %cst_18 = arith.constant 0.000000e+00 : f32
    %14 = vector.broadcast %cst_18 : f32 to vector<8x8xf32>
    %c0_19 = arith.constant 0 : index
    %15 = memref.load %arg8[%c0_19] : memref<1xf32, #tpu.memory_space<smem>>
    %16 = vector.broadcast %15 : f32 to vector<8x8xf32>
    %17 = arith.addf %14, %16 : vector<8x8xf32>
    %18 = vector.broadcast %4 : vector<8x1xf32> to vector<8x8xf32>
    %19 = vector.broadcast %10 : vector<1x8xf32> to vector<8x8xf32>
    %20 = arith.subf %18, %19 : vector<8x8xf32>
    %21 = math.absf %20 : vector<8x8xf32>
    %22 = vector.broadcast %6 : vector<8x1xf32> to vector<8x8xf32>
    %23 = arith.mulf %21, %22 : vector<8x8xf32>
    %cst_20 = arith.constant 0.000000e+00 : f32
    %24 = vector.broadcast %cst_20 : f32 to vector<8x8xf32>
    %25 = arith.cmpf oeq, %23, %24 : vector<8x8xf32>
    %cst_21 = arith.constant 0.000000e+00 : f32
    %26 = vector.broadcast %cst_21 : f32 to vector<8x8xf32>
    %27 = arith.cmpf oeq, %23, %26 : vector<8x8xf32>
    %cst_22 = arith.constant 1.000000e+00 : f32
    %28 = vector.broadcast %cst_22 : f32 to vector<8x8xf32>
    %29 = arith.select %27, %28, %23 : vector<8x8xi1>, vector<8x8xf32>
    %30 = math.log %29 : vector<8x8xf32>
    %cst_23 = arith.constant 0.000000e+00 : f32
    %31 = vector.broadcast %cst_23 : f32 to vector<8x8xf32>
    %32 = arith.select %25, %31, %30 : vector<8x8xi1>, vector<8x8xf32>
    %c0_24 = arith.constant 0 : index
    %c0_25 = arith.constant 0 : index
    %33 = memref.load %arg6[%c0_24, %c0_25] : memref<4x4xf32, #tpu.memory_space<smem>>
    %cst_26 = arith.constant 1.000000e+02 : f32
    %34 = vector.broadcast %cst_26 : f32 to vector<8x8xf32>
    %35 = arith.mulf %32, %34 : vector<8x8xf32>
    %c0_27 = arith.constant 0 : index
    %c0_28 = arith.constant 0 : index
    %36 = memref.load %arg7[%c0_27, %c0_28] : memref<4x4xf32, #tpu.memory_space<smem>>
    %37 = vector.broadcast %36 : f32 to vector<8x8xf32>
    %38 = arith.addf %35, %37 : vector<8x8xf32>
    %39 = math.sin %38 : vector<8x8xf32>
    %40 = vector.broadcast %33 : f32 to vector<8x8xf32>
    %41 = arith.mulf %40, %39 : vector<8x8xf32>
    %42 = arith.addf %17, %41 : vector<8x8xf32>
    %c0_29 = arith.constant 0 : index
    %c1_30 = arith.constant 1 : index
    %43 = memref.load %arg6[%c0_29, %c1_30] : memref<4x4xf32, #tpu.memory_space<smem>>
    %cst_31 = arith.constant 17.782795 : f32
    %44 = vector.broadcast %cst_31 : f32 to vector<8x8xf32>
    %45 = arith.mulf %32, %44 : vector<8x8xf32>
    %c0_32 = arith.constant 0 : index
    %c1_33 = arith.constant 1 : index
    %46 = memref.load %arg7[%c0_32, %c1_33] : memref<4x4xf32, #tpu.memory_space<smem>>
    %47 = vector.broadcast %46 : f32 to vector<8x8xf32>
    %48 = arith.addf %45, %47 : vector<8x8xf32>
    %49 = math.sin %48 : vector<8x8xf32>
    %50 = vector.broadcast %43 : f32 to vector<8x8xf32>
    %51 = arith.mulf %50, %49 : vector<8x8xf32>
    %52 = arith.addf %42, %51 : vector<8x8xf32>
    %c0_34 = arith.constant 0 : index
    %c2_35 = arith.constant 2 : index
    %53 = memref.load %arg6[%c0_34, %c2_35] : memref<4x4xf32, #tpu.memory_space<smem>>
    %cst_36 = arith.constant 3.1622777 : f32
    %54 = vector.broadcast %cst_36 : f32 to vector<8x8xf32>
    %55 = arith.mulf %32, %54 : vector<8x8xf32>
    %c0_37 = arith.constant 0 : index
    %c2_38 = arith.constant 2 : index
    %56 = memref.load %arg7[%c0_37, %c2_38] : memref<4x4xf32, #tpu.memory_space<smem>>
    %57 = vector.broadcast %56 : f32 to vector<8x8xf32>
    %58 = arith.addf %55, %57 : vector<8x8xf32>
    %59 = math.sin %58 : vector<8x8xf32>
    %60 = vector.broadcast %53 : f32 to vector<8x8xf32>
    %61 = arith.mulf %60, %59 : vector<8x8xf32>
    %62 = arith.addf %52, %61 : vector<8x8xf32>
    %c0_39 = arith.constant 0 : index
    %c3_40 = arith.constant 3 : index
    %63 = memref.load %arg6[%c0_39, %c3_40] : memref<4x4xf32, #tpu.memory_space<smem>>
    %cst_41 = arith.constant 0.562341332 : f32
    %64 = vector.broadcast %cst_41 : f32 to vector<8x8xf32>
    %65 = arith.mulf %32, %64 : vector<8x8xf32>
    %c0_42 = arith.constant 0 : index
    %c3_43 = arith.constant 3 : index
    %66 = memref.load %arg7[%c0_42, %c3_43] : memref<4x4xf32, #tpu.memory_space<smem>>
    %67 = vector.broadcast %66 : f32 to vector<8x8xf32>
    %68 = arith.addf %65, %67 : vector<8x8xf32>
    %69 = math.sin %68 : vector<8x8xf32>
    %70 = vector.broadcast %63 : f32 to vector<8x8xf32>
    %71 = arith.mulf %70, %69 : vector<8x8xf32>
    %72 = arith.addf %62, %71 : vector<8x8xf32>
    %73 = vector.broadcast %5 : vector<8x1xf32> to vector<8x8xf32>
    %74 = vector.broadcast %11 : vector<1x8xf32> to vector<8x8xf32>
    %75 = arith.subf %73, %74 : vector<8x8xf32>
    %76 = math.absf %75 : vector<8x8xf32>
    %77 = vector.broadcast %7 : vector<8x1xf32> to vector<8x8xf32>
    %78 = arith.mulf %76, %77 : vector<8x8xf32>
    %cst_44 = arith.constant 0.000000e+00 : f32
    %79 = vector.broadcast %cst_44 : f32 to vector<8x8xf32>
    %80 = arith.cmpf oeq, %78, %79 : vector<8x8xf32>
    %cst_45 = arith.constant 0.000000e+00 : f32
    %81 = vector.broadcast %cst_45 : f32 to vector<8x8xf32>
    %82 = arith.cmpf oeq, %78, %81 : vector<8x8xf32>
    %cst_46 = arith.constant 1.000000e+00 : f32
    %83 = vector.broadcast %cst_46 : f32 to vector<8x8xf32>
    %84 = arith.select %82, %83, %78 : vector<8x8xi1>, vector<8x8xf32>
    %85 = math.log %84 : vector<8x8xf32>
    %cst_47 = arith.constant 0.000000e+00 : f32
    %86 = vector.broadcast %cst_47 : f32 to vector<8x8xf32>
    %87 = arith.select %80, %86, %85 : vector<8x8xi1>, vector<8x8xf32>
    %c1_48 = arith.constant 1 : index
    %c0_49 = arith.constant 0 : index
    %88 = memref.load %arg6[%c1_48, %c0_49] : memref<4x4xf32, #tpu.memory_space<smem>>
    %cst_50 = arith.constant 1.000000e+02 : f32
    %89 = vector.broadcast %cst_50 : f32 to vector<8x8xf32>
    %90 = arith.mulf %87, %89 : vector<8x8xf32>
    %c1_51 = arith.constant 1 : index
    %c0_52 = arith.constant 0 : index
    %91 = memref.load %arg7[%c1_51, %c0_52] : memref<4x4xf32, #tpu.memory_space<smem>>
    %92 = vector.broadcast %91 : f32 to vector<8x8xf32>
    %93 = arith.addf %90, %92 : vector<8x8xf32>
    %94 = math.sin %93 : vector<8x8xf32>
    %95 = vector.broadcast %88 : f32 to vector<8x8xf32>
    %96 = arith.mulf %95, %94 : vector<8x8xf32>
    %97 = arith.addf %72, %96 : vector<8x8xf32>
    %c1_53 = arith.constant 1 : index
    %c1_54 = arith.constant 1 : index
    %98 = memref.load %arg6[%c1_53, %c1_54] : memref<4x4xf32, #tpu.memory_space<smem>>
    %cst_55 = arith.constant 17.782795 : f32
    %99 = vector.broadcast %cst_55 : f32 to vector<8x8xf32>
    %100 = arith.mulf %87, %99 : vector<8x8xf32>
    %c1_56 = arith.constant 1 : index
    %c1_57 = arith.constant 1 : index
    %101 = memref.load %arg7[%c1_56, %c1_57] : memref<4x4xf32, #tpu.memory_space<smem>>
    %102 = vector.broadcast %101 : f32 to vector<8x8xf32>
    %103 = arith.addf %100, %102 : vector<8x8xf32>
    %104 = math.sin %103 : vector<8x8xf32>
    %105 = vector.broadcast %98 : f32 to vector<8x8xf32>
    %106 = arith.mulf %105, %104 : vector<8x8xf32>
    %107 = arith.addf %97, %106 : vector<8x8xf32>
    %c1_58 = arith.constant 1 : index
    %c2_59 = arith.constant 2 : index
    %108 = memref.load %arg6[%c1_58, %c2_59] : memref<4x4xf32, #tpu.memory_space<smem>>
    %cst_60 = arith.constant 3.1622777 : f32
    %109 = vector.broadcast %cst_60 : f32 to vector<8x8xf32>
    %110 = arith.mulf %87, %109 : vector<8x8xf32>
    %c1_61 = arith.constant 1 : index
    %c2_62 = arith.constant 2 : index
    %111 = memref.load %arg7[%c1_61, %c2_62] : memref<4x4xf32, #tpu.memory_space<smem>>
    %112 = vector.broadcast %111 : f32 to vector<8x8xf32>
    %113 = arith.addf %110, %112 : vector<8x8xf32>
    %114 = math.sin %113 : vector<8x8xf32>
    %115 = vector.broadcast %108 : f32 to vector<8x8xf32>
    %116 = arith.mulf %115, %114 : vector<8x8xf32>
    %117 = arith.addf %107, %116 : vector<8x8xf32>
    %c1_63 = arith.constant 1 : index
    %c3_64 = arith.constant 3 : index
    %118 = memref.load %arg6[%c1_63, %c3_64] : memref<4x4xf32, #tpu.memory_space<smem>>
    %cst_65 = arith.constant 0.562341332 : f32
    %119 = vector.broadcast %cst_65 : f32 to vector<8x8xf32>
    %120 = arith.mulf %87, %119 : vector<8x8xf32>
    %c1_66 = arith.constant 1 : index
    %c3_67 = arith.constant 3 : index
    %121 = memref.load %arg7[%c1_66, %c3_67] : memref<4x4xf32, #tpu.memory_space<smem>>
    %122 = vector.broadcast %121 : f32 to vector<8x8xf32>
    %123 = arith.addf %120, %122 : vector<8x8xf32>
    %124 = math.sin %123 : vector<8x8xf32>
    %125 = vector.broadcast %118 : f32 to vector<8x8xf32>
    %126 = arith.mulf %125, %124 : vector<8x8xf32>
    %127 = arith.addf %117, %126 : vector<8x8xf32>
    %128 = vector.broadcast %8 : vector<8x1xf32> to vector<8x8xf32>
    %129 = vector.broadcast %12 : vector<1x8xf32> to vector<8x8xf32>
    %130 = arith.subf %128, %129 : vector<8x8xf32>
    %c2_68 = arith.constant 2 : index
    %c0_69 = arith.constant 0 : index
    %131 = memref.load %arg6[%c2_68, %c0_69] : memref<4x4xf32, #tpu.memory_space<smem>>
    %cst_70 = arith.constant 1.000000e+02 : f32
    %132 = vector.broadcast %cst_70 : f32 to vector<8x8xf32>
    %133 = arith.mulf %130, %132 : vector<8x8xf32>
    %c2_71 = arith.constant 2 : index
    %c0_72 = arith.constant 0 : index
    %134 = memref.load %arg7[%c2_71, %c0_72] : memref<4x4xf32, #tpu.memory_space<smem>>
    %135 = vector.broadcast %134 : f32 to vector<8x8xf32>
    %136 = arith.addf %133, %135 : vector<8x8xf32>
    %137 = math.sin %136 : vector<8x8xf32>
    %138 = vector.broadcast %131 : f32 to vector<8x8xf32>
    %139 = arith.mulf %138, %137 : vector<8x8xf32>
    %140 = arith.addf %127, %139 : vector<8x8xf32>
    %c2_73 = arith.constant 2 : index
    %c1_74 = arith.constant 1 : index
    %141 = memref.load %arg6[%c2_73, %c1_74] : memref<4x4xf32, #tpu.memory_space<smem>>
    %cst_75 = arith.constant 17.782795 : f32
    %142 = vector.broadcast %cst_75 : f32 to vector<8x8xf32>
    %143 = arith.mulf %130, %142 : vector<8x8xf32>
    %c2_76 = arith.constant 2 : index
    %c1_77 = arith.constant 1 : index
    %144 = memref.load %arg7[%c2_76, %c1_77] : memref<4x4xf32, #tpu.memory_space<smem>>
    %145 = vector.broadcast %144 : f32 to vector<8x8xf32>
    %146 = arith.addf %143, %145 : vector<8x8xf32>
    %147 = math.sin %146 : vector<8x8xf32>
    %148 = vector.broadcast %141 : f32 to vector<8x8xf32>
    %149 = arith.mulf %148, %147 : vector<8x8xf32>
    %150 = arith.addf %140, %149 : vector<8x8xf32>
    %c2_78 = arith.constant 2 : index
    %c2_79 = arith.constant 2 : index
    %151 = memref.load %arg6[%c2_78, %c2_79] : memref<4x4xf32, #tpu.memory_space<smem>>
    %cst_80 = arith.constant 3.1622777 : f32
    %152 = vector.broadcast %cst_80 : f32 to vector<8x8xf32>
    %153 = arith.mulf %130, %152 : vector<8x8xf32>
    %c2_81 = arith.constant 2 : index
    %c2_82 = arith.constant 2 : index
    %154 = memref.load %arg7[%c2_81, %c2_82] : memref<4x4xf32, #tpu.memory_space<smem>>
    %155 = vector.broadcast %154 : f32 to vector<8x8xf32>
    %156 = arith.addf %153, %155 : vector<8x8xf32>
    %157 = math.sin %156 : vector<8x8xf32>
    %158 = vector.broadcast %151 : f32 to vector<8x8xf32>
    %159 = arith.mulf %158, %157 : vector<8x8xf32>
    %160 = arith.addf %150, %159 : vector<8x8xf32>
    %c2_83 = arith.constant 2 : index
    %c3_84 = arith.constant 3 : index
    %161 = memref.load %arg6[%c2_83, %c3_84] : memref<4x4xf32, #tpu.memory_space<smem>>
    %cst_85 = arith.constant 0.562341332 : f32
    %162 = vector.broadcast %cst_85 : f32 to vector<8x8xf32>
    %163 = arith.mulf %130, %162 : vector<8x8xf32>
    %c2_86 = arith.constant 2 : index
    %c3_87 = arith.constant 3 : index
    %164 = memref.load %arg7[%c2_86, %c3_87] : memref<4x4xf32, #tpu.memory_space<smem>>
    %165 = vector.broadcast %164 : f32 to vector<8x8xf32>
    %166 = arith.addf %163, %165 : vector<8x8xf32>
    %167 = math.sin %166 : vector<8x8xf32>
    %168 = vector.broadcast %161 : f32 to vector<8x8xf32>
    %169 = arith.mulf %168, %167 : vector<8x8xf32>
    %170 = arith.addf %160, %169 : vector<8x8xf32>
    %171 = vector.broadcast %9 : vector<8x1xf32> to vector<8x8xf32>
    %172 = vector.broadcast %13 : vector<1x8xf32> to vector<8x8xf32>
    %173 = arith.subf %171, %172 : vector<8x8xf32>
    %c3_88 = arith.constant 3 : index
    %c0_89 = arith.constant 0 : index
    %174 = memref.load %arg6[%c3_88, %c0_89] : memref<4x4xf32, #tpu.memory_space<smem>>
    %cst_90 = arith.constant 1.000000e+02 : f32
    %175 = vector.broadcast %cst_90 : f32 to vector<8x8xf32>
    %176 = arith.mulf %173, %175 : vector<8x8xf32>
    %c3_91 = arith.constant 3 : index
    %c0_92 = arith.constant 0 : index
    %177 = memref.load %arg7[%c3_91, %c0_92] : memref<4x4xf32, #tpu.memory_space<smem>>
    %178 = vector.broadcast %177 : f32 to vector<8x8xf32>
    %179 = arith.addf %176, %178 : vector<8x8xf32>
    %180 = math.sin %179 : vector<8x8xf32>
    %181 = vector.broadcast %174 : f32 to vector<8x8xf32>
    %182 = arith.mulf %181, %180 : vector<8x8xf32>
    %183 = arith.addf %170, %182 : vector<8x8xf32>
    %c3_93 = arith.constant 3 : index
    %c1_94 = arith.constant 1 : index
    %184 = memref.load %arg6[%c3_93, %c1_94] : memref<4x4xf32, #tpu.memory_space<smem>>
    %cst_95 = arith.constant 17.782795 : f32
    %185 = vector.broadcast %cst_95 : f32 to vector<8x8xf32>
    %186 = arith.mulf %173, %185 : vector<8x8xf32>
    %c3_96 = arith.constant 3 : index
    %c1_97 = arith.constant 1 : index
    %187 = memref.load %arg7[%c3_96, %c1_97] : memref<4x4xf32, #tpu.memory_space<smem>>
    %188 = vector.broadcast %187 : f32 to vector<8x8xf32>
    %189 = arith.addf %186, %188 : vector<8x8xf32>
    %190 = math.sin %189 : vector<8x8xf32>
    %191 = vector.broadcast %184 : f32 to vector<8x8xf32>
    %192 = arith.mulf %191, %190 : vector<8x8xf32>
    %193 = arith.addf %183, %192 : vector<8x8xf32>
    %c3_98 = arith.constant 3 : index
    %c2_99 = arith.constant 2 : index
    %194 = memref.load %arg6[%c3_98, %c2_99] : memref<4x4xf32, #tpu.memory_space<smem>>
    %cst_100 = arith.constant 3.1622777 : f32
    %195 = vector.broadcast %cst_100 : f32 to vector<8x8xf32>
    %196 = arith.mulf %173, %195 : vector<8x8xf32>
    %c3_101 = arith.constant 3 : index
    %c2_102 = arith.constant 2 : index
    %197 = memref.load %arg7[%c3_101, %c2_102] : memref<4x4xf32, #tpu.memory_space<smem>>
    %198 = vector.broadcast %197 : f32 to vector<8x8xf32>
    %199 = arith.addf %196, %198 : vector<8x8xf32>
    %200 = math.sin %199 : vector<8x8xf32>
    %201 = vector.broadcast %194 : f32 to vector<8x8xf32>
    %202 = arith.mulf %201, %200 : vector<8x8xf32>
    %203 = arith.addf %193, %202 : vector<8x8xf32>
    %c3_103 = arith.constant 3 : index
    %c3_104 = arith.constant 3 : index
    %204 = memref.load %arg6[%c3_103, %c3_104] : memref<4x4xf32, #tpu.memory_space<smem>>
    %cst_105 = arith.constant 0.562341332 : f32
    %205 = vector.broadcast %cst_105 : f32 to vector<8x8xf32>
    %206 = arith.mulf %173, %205 : vector<8x8xf32>
    %c3_106 = arith.constant 3 : index
    %c3_107 = arith.constant 3 : index
    %207 = memref.load %arg7[%c3_106, %c3_107] : memref<4x4xf32, #tpu.memory_space<smem>>
    %208 = vector.broadcast %207 : f32 to vector<8x8xf32>
    %209 = arith.addf %206, %208 : vector<8x8xf32>
    %210 = math.sin %209 : vector<8x8xf32>
    %211 = vector.broadcast %204 : f32 to vector<8x8xf32>
    %212 = arith.mulf %211, %210 : vector<8x8xf32>
    %213 = arith.addf %203, %212 : vector<8x8xf32>
    %cst_108 = arith.constant 0.000000e+00 : f32
    %214 = vector.broadcast %cst_108 : f32 to vector<8x8xf32>
    %215 = arith.maximumf %213, %214 : vector<8x8xf32>
    %cst_109 = arith.constant dense<0xFF800000> : vector<8xf32>
    %216 = vector.multi_reduction <maximumf>, %3, %cst_109 [1] : vector<8x8xf32> to vector<8xf32>
    %217 = vector.shape_cast %216 : vector<8xf32> to vector<8x1xf32>
    %218 = vector.broadcast %217 : vector<8x1xf32> to vector<8x8xf32>
    %219 = arith.subf %3, %218 : vector<8x8xf32>
    %220 = math.exp %219 : vector<8x8xf32>
    %221 = arith.mulf %220, %215 : vector<8x8xf32>
    %222 = tpu.iota {dimensions = array<i32: 0>} : vector<8x8xi32>
    %223 = vector.broadcast %0 : i32 to vector<8x8xi32>
    %224 = arith.addi %223, %222 : vector<8x8xi32>
    %225 = tpu.iota {dimensions = array<i32: 1>} : vector<8x8xi32>
    %226 = arith.cmpi eq, %224, %225 : vector<8x8xi32>
    %cst_110 = arith.constant 0.000000e+00 : f32
    %227 = vector.broadcast %cst_110 : f32 to vector<8x8xf32>
    %228 = arith.select %226, %227, %221 : vector<8x8xi1>, vector<8x8xf32>
    %cst_111 = arith.constant dense<0.000000e+00> : vector<8xf32>
    %229 = vector.multi_reduction <add>, %228, %cst_111 [1] : vector<8x8xf32> to vector<8xf32>
    %230 = vector.shape_cast %229 : vector<8xf32> to vector<8x1xf32>
    %cst_112 = arith.constant 0.000000e+00 : f32
    %231 = vector.broadcast %cst_112 : f32 to vector<8x1xf32>
    %232 = arith.subf %231, %217 : vector<8x1xf32>
    %233 = math.exp %232 : vector<8x1xf32>
    %cst_113 = arith.constant 1.000000e-10 : f32
    %234 = vector.broadcast %cst_113 : f32 to vector<8x1xf32>
    %235 = arith.mulf %234, %233 : vector<8x1xf32>
    %236 = arith.addf %230, %235 : vector<8x1xf32>
    %cst_114 = arith.constant 1.000000e+00 : f32
    %237 = vector.broadcast %cst_114 : f32 to vector<8x1xf32>
    %238 = arith.divf %237, %236 : vector<8x1xf32>
    %239 = vector.broadcast %238 : vector<8x1xf32> to vector<8x8xf32>
    %240 = arith.mulf %228, %239 : vector<8x8xf32>
    %241 = arith.truncf %240 : vector<8x8xf32> to vector<8x8xbf16>
    %c0_115 = arith.constant 0 : index
    %c0_116 = arith.constant 0 : index
    %242 = vector.load %arg3[%c0_115, %c0_116] : memref<8x128xbf16, #tpu.memory_space<vmem>>, vector<8x128xbf16>
    %cst_117 = arith.constant dense<0.000000e+00> : vector<8x128xf32>
    %243 = tpu.matmul %241, %242, %cst_117 {dimension_numbers = #tpu.dot_dimension_numbers<[1], [0], [0], [1], [0, 0, 1, 1], [], []>} : vector<8x8xbf16>, vector<8x128xbf16>, vector<8x128xf32> -> vector<8x128xf32>
    %c0_118 = arith.constant 0 : index
    %c0_119 = arith.constant 0 : index
    %244 = vector.load %arg9[%c0_118, %c0_119] : memref<8x128xf32, #tpu.memory_space<vmem>>, vector<8x128xf32>
    tpu.vector_store %arg9[%c0_118, %c0_119], %243 {strides = array<i32>} : memref<8x128xf32, #tpu.memory_space<vmem>>, vector<8x128xf32>,
    return
  }
  func.func @transform_0(%arg0: i32) -> (i32, i32) {
    %c0_i32 = arith.constant 0 : i32
    %c0_i32_0 = arith.constant 0 : i32
    return %arg0, %c0_i32 : i32, i32
  }
  func.func @transform_1(%arg0: i32) -> (i32, i32) {
    %c0_i32 = arith.constant 0 : i32
    %c0_i32_0 = arith.constant 0 : i32
    %c0_i32_1 = arith.constant 0 : i32
    return %c0_i32, %c0_i32_0 : i32, i32
  }
  func.func @transform_2(%arg0: i32) -> (i32, i32) {
    %c0_i32 = arith.constant 0 : i32
    %c0_i32_0 = arith.constant 0 : i32
    %c0_i32_1 = arith.constant 0 : i32
    return %c0_i32, %c0_i32_0 : i32, i32
  }
  func.func @transform_3(%arg0: i32) -> (i32, i32) {
    %c0_i32 = arith.constant 0 : i32
    %c0_i32_0 = arith.constant 0 : i32
    return %arg0, %c0_i32 : i32, i32
  }
  func.func @transform_4(%arg0: i32) -> (i32, i32) {
    %c0_i32 = arith.constant 0 : i32
    %c0_i32_0 = arith.constant 0 : i32
    %c0_i32_1 = arith.constant 0 : i32
    return %c0_i32, %c0_i32_0 : i32, i32
  }
  func.func @transform_5(%arg0: i32) -> (i32, i32) {
    %c0_i32 = arith.constant 0 : i32
    %c0_i32_0 = arith.constant 0 : i32
    %c0_i32_1 = arith.constant 0 : i32
    return %c0_i32, %c0_i32_0 : i32, i32
  }
  func.func @transform_6(%arg0: i32) -> (i32, i32) {
    %c0_i32 = arith.constant 0 : i32
    %c0_i32_0 = arith.constant 0 : i32
    %c0_i32_1 = arith.constant 0 : i32
    return %c0_i32, %c0_i32_0 : i32, i32
  }
  func.func @transform_7(%arg0: i32) -> i32 {
    %c0_i32 = arith.constant 0 : i32
    %c0_i32_0 = arith.constant 0 : i32
    return %c0_i32 : i32
  }
  func.func @transform_8(%arg0: i32) -> (i32, i32) {
    %c0_i32 = arith.constant 0 : i32
    %c0_i32_0 = arith.constant 0 : i32
    return %arg0, %c0_i32 : i32, i32
  }
}

</mosaic_0001>

<bundles_post_ra>
// kernel: tpu_custom_call.1
= control target key start
LH: loop header
LB: loop body
LE: loop exit
PB: predicated region body
PF: predicated region fallthrough
CT: control target
= control target key end

     0   :  { %14 = vsyncpa [#allocation4], 0  ;;  %s6181_s0 = inlined_call_operand.vmem [shape: bf16[8,32], index: 0, kind: input, shape index: {}]   ;;  %s6182_s1 = inlined_call_operand.vmem [shape: bf16[32,8], index: 1, kind: input, shape index: {}]   ;;  %s6183_s2 = inlined_call_operand.hbm [shape: bf16[8,128], index: 2, kind: input, shape index: {}]   ;;  %s6184_s3 = inlined_call_operand.vmem [shape: f32[8,8], index: 3, kind: input, shape index: {}]   ;;  %s6185_s4 = inlined_call_operand.vmem [shape: f32[8,8], index: 4, kind: input, shape index: {}]   ;;  %s6186_s5 = inlined_call_operand.vmem [shape: f32[4,4], index: 5, kind: input, shape index: {}]   ;;  %s6187_s6 = inlined_call_operand.hbm [shape: f32[4,4], index: 6, kind: input, shape index: {}]   ;;  %s6188_s7 = inlined_call_operand.<no memory space> [shape: f32[1], index: 7, kind: input, shape index: {}]   ;;  %s6189_s8 = inlined_call_operand.hbm [shape: f32[8,128], index: 8, kind: output, shape index: {}]  }
   0x1   :  { %15 = vsyncpa [#allocation7], 0 }
   0x2   :  { %16 = vsyncpa [#allocation6], 0 }
   0x3   :  { %17 = vsyncpa [#allocation5], 0  ;;  %s27_s29 = sshll.u32 %s6183_s2, 4  ;;  %s3059_s30 = smov [#allocation3]   ;;  %s28_s29 = int_to_ptr.hbm [resolvable:$true] %s27_s29 }
   0x4   :  { %s29_s9 = sshll.u32 %s3059_s30, 4  ;;  %s42_s12 = sshll.u32 %s6186_s5, 4  ;;  %s30_s9 = int_to_ptr.vmem [resolvable:$true] %s29_s9  ;;  %s43_s12 = int_to_ptr.vmem [resolvable:$true] %s42_s12 }
   0x5   :  { %32 = dma.hbm_to_vmem [thread:$0]  %s28_s29, 64, %s30_s9, [#allocation4]  }
   0x6   :  { %s3060_s13 = smov [#allocation8]   ;;  %s51_s16 = sshll.u32 %s6187_s6, 4  ;;  %s52_s16 = int_to_ptr.hbm [resolvable:$true] %s51_s16 }
   0x7   :  { %45 = dma.vmem_to_smem %s43_s12, 64, %s3060_s13, [#allocation7]  }
   0x8   :  { %s3061_s17 = smov [#allocation9]  }
   0x9   :  { %54 = dma.hbm_to_smem %s52_s16, 64, %s3061_s17, [#allocation6]  }
   0xa   :  { %3051 = dma.done.wait [#allocation4], 64  }
   0xb   :  { %3052 = vsyncadd [#allocation4], 4294967232 }
   0xc   :  { %3053 = dma.done.wait [#allocation7], 64  }
   0xd   :  { %3054 = vsyncadd [#allocation7], 4294967232 }
   0xe   :  { %3055 = dma.done.wait [#allocation6], 64  }
   0xf   :  { %3056 = vsyncadd [#allocation6], 4294967232 }
  0x10   :  { %69 = sfence }
  0x11   :  { %v106_v0 = vld [vmem:[%s6184_s3] sm:$0xff]  ;;  %v3062_v1 = vmov 4   ;;  %v3063_v2 = vmov 1   ;;  %v2941_v3 = vld [vmem:[%s6182_s1 + $0x8] sm:$0xff]  ;;  %v6198_v4 = vmov 0   ;;  %vm89_vm0 = vcmask 261120  }
  0x12   :  { %2962 = vset.pattern.permute.xlu2 %v3062_v1  ;;  %2960 = vset.pattern.permute.xlu1 %v3063_v2  ;;  %v2940_v5 = vld [vmem:[%s6182_s1] sm:$0xff]  ;;  %v3065_v7 = vmov 5   ;;  %v3066_v8 = vmov 3   ;;  %v3067_v9 = vmov 2   ;;  %vm2770_vm2 = vcmask 64512   ;;  %s2865_s23 = sld [smem:[#allocation9 + $0x1]] }
  0x13   :  { %2958 = vset.pattern.permute.xlu0 %v6198_v4  ;;  %1454 = vperm.xlu2 %2962, %v106_v0   ;;  %v72_v6 = vld [vmem:[%s6181_s0] sm:$0xf]  ;;  %s134_s0 = sld [smem:[#allocation9]]  ;;  %v6223_v36 = vmov 920167782  }
  0x14   :  { %785 = vperm.xlu1 %2960, %v106_v0   ;;  %116 = vperm.xlu0 %2958, %v106_v0   ;;  %v2965_v11 = vld [vmem:[%s6185_s4] ss:$0 sm:$0xff]  ;;  %v6210_v39 = vmov 2102212464   ;;  %v6196_v41 = vmov 1326507024  }
  0x15   :  { %99 = vmatpush.bf16.msra.mxu0 %v2941_v3  ;;  %v6217_v45 = vmov 2475754826   ;;  %v6221_v47 = vmov 2131351028   ;;  %v6193_v52 = vmov 683565275  }
  0x16   :  { %s2870_s24 = sld [smem:[#allocation9 + $0x2]] }
  0x17   :  { %s3345_s25 = sld [smem:[#allocation9 + $0x3]] }
  0x18   :  { %v298_v33 = vstv %s2865_s23  ;;  %s3507_s28 = sld [smem:[#allocation9 + $0x80]] }
  0x19   :  { %100 = vmatpush.bf16.msra.mxu0 %v2940_v5  ;;  %v135_v22 = vstv %s134_s0  ;;  %s3607_s29 = sld [smem:[#allocation9 + $0x81]] }
  0x1a   :  { %s3750_s30 = sld [smem:[#allocation8]] }
  0x1b   :  { %2963 = vset.pattern.permute.xlu2 %v3065_v7  ;;  %s3849_s11 = sld [smem:[#allocation9 + $0x82]] }
  0x1c   :  { %2961 = vset.pattern.permute.xlu1 %v3066_v8  ;;  %2959 = vset.pattern.permute.xlu0 %v3067_v9  ;;  %s3950_s12 = sld [smem:[#allocation8 + $0x1]] }
  0x1d   :  { %2860 = vmatmul.msk.bf16.vlgmr.msra.gmra.mxu0 %vm89_vm0, %v72_v6  ;;  %2112 = vperm.xlu2 %2963, %v106_v0   ;;  %s3974_s13 = sld [smem:[#allocation9 + $0x83]] }
  0x1e   :  { %792 = vperm.xlu1 %2961, %v106_v0   ;;  %123 = vperm.xlu0 %2959, %v106_v0   ;;  %s4188_s16 = sld [smem:[#allocation9 + $0x100]] }
  0x1f   :  { %s4448_s5 = sld [smem:[#allocation9 + $0x101]] }
  0x20   :  { %s4576_s18 = sld [smem:[#allocation8 + $0x3]] }
  0x21   :  { %s4711_s6 = sld [smem:[#allocation9 + $0x102]] }
  0x22   :  { %s4841_s19 = sld [smem:[#allocation8 + $0x80]] }
  0x23   :  { %s4882_s20 = sld [smem:[#allocation9 + $0x103]] }
  0x24   :  { %s4958_s3 = sld [smem:[#allocation8 + $0x81]] }
  0x25   :  { %s5045_s21 = sld [smem:[#allocation8 + $0x82]] }
  0x26   :  { %2964 = vset.pattern.permute.xlu0 %v3065_v7  ;;  %s5146_s0 = sld [smem:[#allocation8 + $0x83]] }
  0x27   :  { %s5280_s23 = sld [smem:[#allocation9 + $0x181]] }
  0x28   :  { %s5661_s26 = sld [smem:[#allocation9 + $0x183]] }
  0x29   :  { %s5990_s27 = sld [smem:[#allocation8 + $0x101]] }
  0x2a   :  { %s6155_s9 = sld [smem:[#allocation8 + $0x181]] }
  0x2b   :  { %s6163_s10 = sld [smem:[#allocation8 + $0x182]] }
  0x86   :  { %v117_v10 = vpop.permute.xlu0 %116 }
  0x87   :  { %v120_v12 = vsub.f32 %v117_v10, %v2965_v11 }
  0x89   :  { %v121_v13 = vand.u32 2147483647, %v120_v12 }
  0x90   :  { %v124_v14 = vpop.permute.xlu0 %123 }
  0x91   :  { %v126_v15 = vmul.f32 %v124_v14, %v121_v13 }
  0x93   :  { %vm127_vm1 = vcmp.eq.f32.partialorder %v126_v15, 0.0 }
  0x94   :  { %v128_v16 = vsel %vm127_vm1, 1.0, %v126_v15 }
  0x95   :  { %2969 = vlog2.f32 %v128_v16 }
  0x9a   :  { %v3145_v17 = vpop.f32.mrf.mxu0 }
  0x9b   :  { %6264 = vst [vmem:[#allocation15_spill] sm:$0xff] %v3145_v17  ;;  %v2970_v18 = vpop.eup %2969  ;;  %v2771_v19 = vsel %vm2770_vm2, %v3145_v17, -inf }
  0x9c   :  { %2772 = vmax.xlane.f32.xlu1 %v2771_v19  ;;  %v130_v20 = vmul.f32 0.6931472, %v2970_v18 }
  0x9e   :  { %v3149_v21 = vsel %vm127_vm1, 0.0, %v130_v20  ;;  %v461_v20 = vstv %s2870_s24  ;;  %s5574_s24 = sld [smem:[#allocation9 + $0x182]] }
  0x9f   :  { %v133_v23 = vmul.f32 100.0, %v3149_v21  ;;  %v296_v32 = vmul.f32 17.782795, %v3149_v21  ;;  %v459_v16 = vmul.f32 3.1622777, %v3149_v21 }
  0xa1   :  { %v3152_v24 = vadd.f32 %v135_v22, %v133_v23  ;;  %v3158_v35 = vadd.f32 %v298_v33, %v296_v32 }
  0xa2   :  { %v104_v25 = vpop.f32.mrf.mxu0 }
  0xa3   :  { %v140_v26 = vand.u32 2139095040, %v3152_v24  ;;  %6265 = vst [vmem:[#allocation16_spill] sm:$0xff] %v3158_v35  ;;  %v137_v38 = vand.u32 2147483647, %v3152_v24  ;;  %v303_v43 = vand.u32 2139095040, %v3158_v35 }
  0xa5   :  { %v141_v27 = vshrl.u32 %v140_v26, 23  ;;  %v144_v56 = vand.u32 8388607, %v137_v38  ;;  %v304_v58 = vshrl.u32 %v303_v43, 23 }
  0xa7   :  { %v2861_v28 = vadd.s32 4294967169, %v141_v27  ;;  %v2866_v0 = vadd.s32 4294967169, %v304_v58  ;;  %v145_v1 = vor.u32 8388608, %v144_v56  ;;  %v3222_v27 = vadd.f32 %v461_v20, %v459_v16 }
  0xa9   :  { %v147_v29 = vadd.s32 1, %v2861_v28  ;;  %v310_v8 = vadd.s32 1, %v2866_v0  ;;  %v3210_v9 = vshll.u32 %v145_v1, 8  ;;  %6266 = vst [vmem:[#allocation17_spill] sm:$0xff] %v3222_v27 }
  0xab   :  { %vm148_vm3 = vcmp.gt.s32.totalorder %v147_v29, 0  ;;  %vm311_vm8 = vcmp.gt.s32.totalorder %v310_v8, 0  ;;  %v186_v12 = vand.u32 65535, %v3210_v9  ;;  %v187_v23 = vshrl.u32 %v3210_v9, 16 }
  0xac   :  { %v149_v30 = vsel %vm148_vm3, %v147_v29, 0  ;;  %v312_v15 = vsel %vm311_vm8, %v310_v8, 0 }
  0xad   :  { %v151_v31 = vand.u32 31, %v149_v30  ;;  %v3167_v44 = vshrl.u32 %v149_v30, 5  ;;  %v314_v22 = vand.u32 31, %v312_v15  ;;  %v3246_v56 = vshrl.u32 %v312_v15, 5 }
  0xaf   :  { %v3156_v34 = vsub.s32 32, %v151_v31  ;;  %v163_v40 = vshll.u32 %v6210_v39, %v151_v31  ;;  %v166_v51 = vshll.u32 %v6223_v36, %v151_v31  ;;  %v154_v53 = vshll.u32 %v6193_v52, %v151_v31 }
  0xb0   :  { %v157_v54 = vshll.u32 %v6217_v45, %v151_v31  ;;  %v160_v55 = vshll.u32 %v6221_v47, %v151_v31  ;;  %vm172_vm4 = vcmp.lt.s32.totalorder %v3167_v44, 4  ;;  %vm169_vm5 = vcmp.lt.s32.totalorder %v3167_v44, 1 }
  0xb1   :  { %v164_v37 = vshrl.u32 %v6223_v36, %v3156_v34  ;;  %v167_v42 = vshrl.u32 %v6196_v41, %v3156_v34  ;;  %v155_v46 = vshrl.u32 %v6217_v45, %v3156_v34  ;;  %v158_v48 = vshrl.u32 %v6221_v47, %v3156_v34 }
  0xb2   :  { %v161_v49 = vshrl.u32 %v6210_v39, %v3156_v34  ;;  %vm171_vm6 = vcmp.lt.s32.totalorder %v3167_v44, 3  ;;  %vm170_vm7 = vcmp.lt.s32.totalorder %v3167_v44, 2  ;;  %v3227_v31 = vsub.s32 32, %v314_v22 }
  0xb3   :  { %v165_v50 = vor.u32 %v164_v37, %v163_v40  ;;  %v168_v57 = vor.u32 %v167_v42, %v166_v51  ;;  %v3181_v59 = vor.u32 %v155_v46, %v154_v53  ;;  %v3183_v60 = vor.u32 %v158_v48, %v157_v54 }
  0xb4   :  { %v3185_v61 = vor.u32 %v161_v49, %v160_v55  ;;  %v466_v40 = vand.u32 2139095040, %v3222_v27  ;;  %v300_v49 = vand.u32 2147483647, %v3158_v35  ;;  %v327_v51 = vshrl.u32 %v6223_v36, %v3227_v31 }
  0xb5   :  { %v178_v62 = vsel %vm172_vm4, %v165_v50, 920167782  ;;  %v182_v63 = vsel %vm172_vm4, %v168_v57, 1326507024  ;;  %v177_v2 = vsel %vm169_vm5, %v3181_v59, %v3183_v60  ;;  %v330_v53 = vshrl.u32 %v6196_v41, %v3227_v31 }
  0xb6   :  { %v179_v3 = vsel %vm171_vm6, %v3185_v61, %v178_v62  ;;  %v181_v5 = vsel %vm169_vm5, %v3183_v60, %v3185_v61  ;;  %v183_v6 = vsel %vm171_vm6, %v165_v50, %v182_v63  ;;  %v467_v57 = vshrl.u32 %v466_v40, 23 }
  0xb7   :  { %v180_v7 = vsel %vm170_vm7, %v177_v2, %v179_v3  ;;  %v184_v10 = vsel %vm170_vm7, %v181_v5, %v183_v6  ;;  %v326_v62 = vshll.u32 %v6210_v39, %v314_v22  ;;  %v329_v63 = vshll.u32 %v6223_v36, %v314_v22 }
  0xb8   :  { %v211_v11 = vshrl.u32 %v180_v7, 16  ;;  %v189_v13 = vshrl.u32 %v184_v10, 16  ;;  %v210_v19 = vand.u32 65535, %v180_v7  ;;  %v188_v25 = vand.u32 65535, %v184_v10 }
  0xb9   :  { %v318_v1 = vshrl.u32 %v6217_v45, %v3227_v31  ;;  %v321_v2 = vshrl.u32 %v6221_v47, %v3227_v31  ;;  %v324_v3 = vshrl.u32 %v6210_v39, %v3227_v31  ;;  %v307_v6 = vand.u32 8388607, %v300_v49 }
  0xba   :  { %v3215_v14 = vmul.u32 %v211_v11, %v186_v12  ;;  %v3218_v18 = vmul.u32 %v189_v13, %v186_v12  ;;  %v212_v29 = vmul.u32 %v210_v19, %v186_v12  ;;  %v3225_v30 = vmul.u32 %v210_v19, %v187_v23 }
  0xbb   :  { %v190_v32 = vmul.u32 %v188_v25, %v186_v12  ;;  %v3229_v33 = vmul.u32 %v188_v25, %v187_v23  ;;  %v215_v46 = vmul.u32 %v211_v11, %v187_v23  ;;  %v193_v54 = vmul.u32 %v189_v13, %v187_v23 }
  0xbc   :  { %v216_v26 = vshll.u32 %v3215_v14, 16  ;;  %v194_v28 = vshll.u32 %v3218_v18, 16  ;;  %v218_v43 = vshll.u32 %v3225_v30, 16  ;;  %v328_v7 = vor.u32 %v327_v51, %v326_v62 }
  0xbd   :  { %v196_v50 = vshll.u32 %v3229_v33, 16  ;;  %v331_v8 = vor.u32 %v330_v53, %v329_v63  ;;  %v317_v11 = vshll.u32 %v6193_v52, %v314_v22  ;;  %v320_v12 = vshll.u32 %v6217_v45, %v314_v22 }
  0xbe   :  { %vm220_vm9 = vc.u32 %v212_v29, %v216_v26  ;;  %v3231_v37 = vadd.s32 %v216_v26, %v212_v29  ;;  %vm198_vm10 = vc.u32 %v190_v32, %v194_v28  ;;  %v200_v42 = vadd.s32 %v194_v28, %v190_v32 }
  0xbf   :  { %v221_v48 = vsel %vm220_vm9, 1, %v6198_v4  ;;  %v199_v55 = vsel %vm198_vm10, 1, %v6198_v4  ;;  %v323_v13 = vshll.u32 %v6221_v47, %v314_v22  ;;  %v2871_v16 = vadd.s32 4294967169, %v467_v57 }
  0xc0   :  { %vm224_vm11 = vc.u32 %v3231_v37, %v218_v43  ;;  %vm202_vm12 = vc.u32 %v200_v42, %v196_v50  ;;  %v223_v58 = vadd.s32 %v221_v48, %v215_v46  ;;  %v201_v5 = vadd.s32 %v199_v55, %v193_v54 }
  0xc1   :  { %v225_v0 = vsel %vm224_vm11, 1, %v6198_v4  ;;  %v203_v10 = vsel %vm202_vm12, 1, %v6198_v4  ;;  %v3263_v19 = vor.u32 %v318_v1, %v317_v11  ;;  %v3265_v20 = vor.u32 %v321_v2, %v320_v12 }
  0xc2   :  { %v227_v15 = vadd.s32 %v225_v0, %v223_v58  ;;  %v3267_v23 = vor.u32 %v324_v3, %v323_v13  ;;  %vm335_vm13 = vcmp.lt.s32.totalorder %v3246_v56, 4  ;;  %v205_v25 = vadd.s32 %v203_v10, %v201_v5 }
  0xc3   :  { %v217_v26 = vshrl.u32 %v3215_v14, 16  ;;  %v341_v28 = vsel %vm335_vm13, %v328_v7, 920167782  ;;  %v345_v29 = vsel %vm335_vm13, %v331_v8, 1326507024  ;;  %v308_v22 = vor.u32 8388608, %v307_v6 }
  0xc4   :  { %v195_v32 = vshrl.u32 %v3218_v18, 16  ;;  %vm332_vm14 = vcmp.lt.s32.totalorder %v3246_v56, 1  ;;  %vm334_vm15 = vcmp.lt.s32.totalorder %v3246_v56, 3  ;;  %v473_v50 = vadd.s32 1, %v2871_v16 }
  0xc5   :  { %v228_v40 = vadd.s32 %v227_v15, %v217_v26  ;;  %v340_v42 = vsel %vm332_vm14, %v3263_v19, %v3265_v20  ;;  %v342_v14 = vsel %vm334_vm15, %v3267_v23, %v341_v28  ;;  %v344_v46 = vsel %vm332_vm14, %v3265_v20, %v3267_v23 }
  0xc6   :  { %v346_v18 = vsel %vm334_vm15, %v328_v7, %v345_v29  ;;  %v206_v48 = vadd.s32 %v205_v25, %v195_v32  ;;  %v219_v51 = vshrl.u32 %v3225_v30, 16  ;;  %vm333_vm0 = vcmp.lt.s32.totalorder %v3246_v56, 2 }
  0xc7   :  { %v197_v53 = vshrl.u32 %v3229_v33, 16  ;;  %v343_v54 = vsel %vm333_vm0, %v340_v42, %v342_v14  ;;  %v347_v55 = vsel %vm333_vm0, %v344_v46, %v346_v18  ;;  %v174_v57 = vsel %vm172_vm4, %v3185_v61, 2102212464 }
  0xc8   :  { %v229_v58 = vadd.s32 %v228_v40, %v219_v51  ;;  %v3301_v62 = vshll.u32 %v308_v22, 8  ;;  %v153_v63 = vshrl.u32 %v6193_v52, %v3156_v34  ;;  %vm474_vm1 = vcmp.gt.s32.totalorder %v473_v50, 0 }
  0xc9   :  { %v3305_v0 = vadd.s32 %v206_v48, %v197_v53  ;;  %v352_v33 = vshrl.u32 %v347_v55, 16  ;;  %v374_v1 = vshrl.u32 %v343_v54, 16  ;;  %v175_v3 = vsel %vm171_vm6, %v3183_v60, %v174_v57 }
  0xca   :  { %v173_v2 = vsel %vm169_vm5, %v153_v63, %v3181_v59  ;;  %v3316_v61 = vadd.s32 %v3231_v37, %v218_v43  ;;  %v233_v5 = vadd.s32 1, %v229_v58  ;;  %v349_v34 = vand.u32 65535, %v3301_v62 }
  0xcb   :  { %v475_v6 = vsel %vm474_vm1, %v473_v50, 0  ;;  %v176_v7 = vsel %vm170_vm7, %v173_v2, %v175_v3  ;;  %v351_v30 = vand.u32 65535, %v347_v55  ;;  %v373_v11 = vand.u32 65535, %v343_v54 }
  0xcc   :  { %vm232_vm3 = vc.u32 %v3305_v0, %v3316_v61  ;;  %v3323_v59 = vmul.u32 %v352_v33, %v349_v34  ;;  %v3325_v8 = vmul.u32 %v374_v1, %v349_v34  ;;  %v477_v60 = vand.u32 31, %v475_v6 }
  0xcd   :  { %v234_v10 = vsel %vm232_vm3, %v233_v5, %v229_v58  ;;  %v230_v37 = vmul.u32 %v3210_v9, %v176_v7  ;;  %v350_v43 = vshrl.u32 %v3301_v62, 16  ;;  %v353_v44 = vmul.u32 %v351_v30, %v349_v34 }
  0xce   :  { %v357_v12 = vshll.u32 %v3323_v59, 16  ;;  %v379_v13 = vshll.u32 %v3325_v8, 16  ;;  %v3331_v16 = vsub.s32 32, %v477_v60  ;;  %v375_v25 = vmul.u32 %v373_v11, %v349_v34 }
  0xcf   :  { %v235_v15 = vadd.s32 %v234_v10, %v230_v37  ;;  %v3333_v26 = vmul.u32 %v373_v11, %v350_v43  ;;  %v3335_v28 = vmul.u32 %v351_v30, %v350_v43  ;;  %v6192_v29 = vand.u32 2147483647, %v3222_v27 }
  0xd0   :  { %vm361_vm4 = vc.u32 %v353_v44, %v357_v12  ;;  %vm383_vm5 = vc.u32 %v375_v25, %v379_v13  ;;  %v378_v22 = vmul.u32 %v374_v1, %v350_v43  ;;  %v3338_v32 = vadd.s32 %v379_v13, %v375_v25 }
  0xd1   :  { %v236_v9 = vadd.s32 536870912, %v235_v15  ;;  %v493_v40 = vshrl.u32 %v6196_v41, %v3331_v16  ;;  %v356_v42 = vmul.u32 %v352_v33, %v350_v43  ;;  %v363_v14 = vadd.s32 %v357_v12, %v353_v44 }
  0xd2   :  { %v381_v46 = vshll.u32 %v3333_v26, 16  ;;  %v490_v18 = vshrl.u32 %v6223_v36, %v3331_v16  ;;  %v359_v48 = vshll.u32 %v3335_v28, 16  ;;  %v362_v50 = vsel %vm361_vm4, 1, %v6198_v4 }
  0xd3   :  { %v384_v51 = vsel %vm383_vm5, 1, %v6198_v4  ;;  %v492_v53 = vshll.u32 %v6223_v36, %v477_v60  ;;  %v3351_v54 = vshrl.u32 %v475_v6, 5  ;;  %v484_v55 = vshrl.u32 %v6221_v47, %v3331_v16 }
  0xd4   :  { %v487_v57 = vshrl.u32 %v6210_v39, %v3331_v16  ;;  %v489_v58 = vshll.u32 %v6210_v39, %v477_v60  ;;  %v3358_v63 = vshrl.u32 %v236_v9, 30  ;;  %vm387_vm6 = vc.u32 %v3338_v32, %v381_v46 }
  0xd5   :  { %v481_v33 = vshrl.u32 %v6217_v45, %v3331_v16  ;;  %v494_v1 = vor.u32 %v493_v40, %v492_v53  ;;  %vm365_vm7 = vc.u32 %v363_v14, %v359_v48  ;;  %v483_v2 = vshll.u32 %v6217_v45, %v477_v60 }
  0xd6   :  { %v486_v3 = vshll.u32 %v6221_v47, %v477_v60  ;;  %v491_v5 = vor.u32 %v490_v18, %v489_v58  ;;  %v364_v34 = vadd.s32 %v362_v50, %v356_v42  ;;  %v386_v6 = vadd.s32 %v384_v51, %v378_v22 }
  0xd7   :  { %v470_v7 = vand.u32 8388607, %v6192_v29  ;;  %v480_v10 = vshll.u32 %v6193_v52, %v477_v60  ;;  %v388_v30 = vsel %vm387_vm6, 1, %v6198_v4  ;;  %v3371_v11 = vor.u32 %v484_v55, %v483_v2 }
  0xd8   :  { %v3373_v37 = vor.u32 %v487_v57, %v486_v3  ;;  %vm498_vm8 = vcmp.lt.s32.totalorder %v3351_v54, 4  ;;  %v366_v43 = vsel %vm365_vm7, 1, %v6198_v4  ;;  %v238_v44 = vshll.u32 %v3358_v63, 30  ;;  %v786_v57 = vpop.permute.xlu1 %785 }
  0xd9   :  { %v3377_v12 = vor.u32 %v481_v33, %v480_v10  ;;  %v508_v13 = vsel %vm498_vm8, %v494_v1, 1326507024  ;;  %v504_v60 = vsel %vm498_vm8, %v491_v5, 920167782  ;;  %v622_v25 = vmul.f32 0.56234133, %v3149_v21 }
  0xda   :  { %v624_v9 = vstv %s3345_s25  ;;  %v390_v22 = vadd.s32 %v388_v30, %v386_v6  ;;  %v471_v40 = vor.u32 8388608, %v470_v7  ;;  %vm495_vm9 = vcmp.lt.s32.totalorder %v3351_v54, 1  ;;  %s5642_s25 = sld [smem:[#allocation8 + $0x100]] }
  0xdb   :  { %vm497_vm10 = vcmp.lt.s32.totalorder %v3351_v54, 3  ;;  %v368_v42 = vadd.s32 %v366_v43, %v364_v34  ;;  %v507_v14 = vsel %vm495_vm9, %v3371_v11, %v3373_v37  ;;  %v3394_v48 = vadd.f32 %v624_v9, %v622_v25 }
  0xdc   :  { %v509_v18 = vsel %vm497_vm10, %v491_v5, %v508_v13  ;;  %v380_v21 = vshrl.u32 %v3325_v8, 16  ;;  %v503_v50 = vsel %vm495_vm9, %v3377_v12, %v3371_v11  ;;  %v505_v51 = vsel %vm497_vm10, %v3373_v37, %v504_v60 }
  0xdd   :  { %6267 = vst [vmem:[#allocation18_spill] sm:$0xff] %v3394_v48  ;;  %v3404_v53 = vsub.s32 %v235_v15, %v238_v44  ;;  %v358_v55 = vshrl.u32 %v3323_v59, 16  ;;  %vm496_vm11 = vcmp.lt.s32.totalorder %v3351_v54, 2  ;;  %v629_v33 = vand.u32 2139095040, %v3394_v48  ;;  %v2966_v15 = vld [vmem:[%s6185_s4 + $0x1] ss:$0 sm:$0xff] }
  0xde   :  { %v391_v58 = vadd.s32 %v390_v22, %v380_v21  ;;  %v510_v8 = vsel %vm496_vm11, %v507_v14, %v509_v18  ;;  %v506_v2 = vsel %vm496_vm11, %v503_v50, %v505_v51  ;;  %v3413_v3 = vshll.u32 %v471_v40, 8 }
  0xdf   :  { %v369_v1 = vadd.s32 %v368_v42, %v358_v55  ;;  %v337_v59 = vsel %vm335_vm13, %v3267_v23, 2102212464  ;;  %v382_v5 = vshrl.u32 %v3333_v26, 16  ;;  %v241_v34 = vsub.s32 0, %v3404_v53 }
  0xe0   :  { %v360_v6 = vshrl.u32 %v3335_v28, 16  ;;  %v515_v7 = vshrl.u32 %v510_v8, 16  ;;  %v630_v10 = vshrl.u32 %v629_v33, 23  ;;  %vm240_vm12 = vcmp.lt.s32.totalorder %v3404_v53, 0  ;;  %v793_v50 = vpop.permute.xlu1 %792 }
  0xe1   :  { %v316_v30 = vshrl.u32 %v6193_v52, %v3227_v31  ;;  %v392_v43 = vadd.s32 %v391_v58, %v382_v5  ;;  %v537_v13 = vshrl.u32 %v506_v2, 16  ;;  %v512_v60 = vand.u32 65535, %v3413_v3 }
  0xe2   :  { %v3427_v44 = vadd.s32 %v369_v1, %v360_v6  ;;  %v2876_v23 = vadd.s32 4294967169, %v630_v10  ;;  %v789_v25 = vsub.f32 %v786_v57, %v2966_v15  ;;  %v338_v28 = vsel %vm334_vm15, %v3265_v20, %v337_v59 }
  0xe3   :  { %v336_v9 = vsel %vm332_vm14, %v316_v30, %v3263_v19  ;;  %v242_v22 = vsel %vm240_vm12, %v241_v34, %v3404_v53  ;;  %v3440_v31 = vadd.s32 %v3338_v32, %v381_v46  ;;  %v3442_v40 = vmul.u32 %v515_v7, %v512_v60 }
  0xe4   :  { %v636_v42 = vadd.s32 1, %v2876_v23  ;;  %v396_v14 = vadd.s32 1, %v392_v43  ;;  %v3444_v18 = vmul.u32 %v537_v13, %v512_v60  ;;  %v339_v19 = vsel %vm333_vm0, %v336_v9, %v338_v28 }
  0xe5   :  { %vm395_vm13 = vc.u32 %v3427_v44, %v3440_v31  ;;  %v514_v20 = vand.u32 65535, %v510_v8  ;;  %v790_v21 = vand.u32 2147483647, %v789_v25  ;;  %v243_v51 = vclz %v242_v22 }
  0xe6   :  { %v536_v26 = vand.u32 65535, %v506_v2  ;;  %vm637_vm14 = vcmp.gt.s32.totalorder %v636_v42, 0  ;;  %v513_v32 = vshrl.u32 %v3413_v3, 16  ;;  %v520_v46 = vshll.u32 %v3442_v40, 16 }
  0xe7   :  { %v393_v55 = vmul.u32 %v3301_v62, %v339_v19  ;;  %v397_v57 = vsel %vm395_vm13, %v396_v14, %v392_v43  ;;  %v542_v58 = vshll.u32 %v3444_v18, 16  ;;  %v516_v56 = vmul.u32 %v514_v20, %v512_v60 }
  0xe8   :  { %v3454_v33 = vmul.u32 %v514_v20, %v513_v32  ;;  %v638_v1 = vsel %vm637_vm14, %v636_v42, 0  ;;  %v3456_v15 = vmul.f32 %v793_v50, %v790_v21  ;;  %v2862_v8 = vadd.s32 4294967294, %v243_v51 }
  0xe9   :  { %v538_v59 = vmul.u32 %v536_v26, %v512_v60  ;;  %v3458_v5 = vmul.u32 %v536_v26, %v513_v32  ;;  %v398_v2 = vadd.s32 %v397_v57, %v393_v55  ;;  %vm524_vm15 = vc.u32 %v516_v56, %v520_v46 }
  0xea   :  { %v526_v34 = vadd.s32 %v520_v46, %v516_v56  ;;  %v640_v62 = vand.u32 31, %v638_v1  ;;  %v522_v10 = vshll.u32 %v3454_v33, 16  ;;  %vm796_vm1 = vcmp.eq.f32.partialorder %v3456_v15, 0.0 }
  0xeb   :  { %vm546_vm0 = vc.u32 %v538_v59, %v542_v58  ;;  %v3460_v6 = vadd.s32 %v542_v58, %v538_v59  ;;  %vm2863_vm3 = vcmp.lt.s32.totalorder %v2862_v8, 0  ;;  %v525_v30 = vsel %vm524_vm15, 1, %v6198_v4 }
  0xec   :  { %v544_v43 = vshll.u32 %v3458_v5, 16  ;;  %v399_v23 = vadd.s32 536870912, %v398_v2  ;;  %v519_v60 = vmul.u32 %v515_v7, %v513_v32  ;;  %vm528_vm4 = vc.u32 %v526_v34, %v522_v10 }
  0xed   :  { %v547_v25 = vsel %vm546_vm0, 1, %v6198_v4  ;;  %v541_v9 = vmul.u32 %v537_v13, %v513_v32  ;;  %v3470_v28 = vsub.s32 32, %v640_v62  ;;  %v797_v22 = vsel %vm796_vm1, 1.0, %v3456_v15 }
  0xee   :  { %vm550_vm5 = vc.u32 %v3460_v6, %v544_v43  ;;  %v527_v42 = vadd.s32 %v525_v30, %v519_v60  ;;  %v3475_v14 = vsel %vm2863_vm3, 0, %v2862_v8  ;;  %v529_v19 = vsel %vm528_vm4, 1, %v6198_v4 }
  0xef   :  { %v549_v7 = vadd.s32 %v547_v25, %v541_v9  ;;  %v551_v20 = vsel %vm550_vm5, 1, %v6198_v4  ;;  %2971 = vlog2.f32 %v797_v22  ;;  %v3479_v13 = vshrl.u32 %v399_v23, 30 }
  0xf0   :  { %v653_v21 = vshrl.u32 %v6223_v36, %v3470_v28  ;;  %v251_v50 = vsub.s32 4294967266, %v3475_v14  ;;  %v531_v51 = vadd.s32 %v529_v19, %v527_v42  ;;  %v656_v26 = vshrl.u32 %v6196_v41, %v3470_v28 }
  0xf1   :  { %v553_v32 = vadd.s32 %v551_v20, %v549_v7  ;;  %v6191_v46 = vand.u32 2147483647, %v3394_v48  ;;  %v3487_v55 = vshrl.u32 %v638_v1, 5  ;;  %v652_v57 = vshll.u32 %v6210_v39, %v640_v62 }
  0xf2   :  { %v644_v58 = vshrl.u32 %v6217_v45, %v3470_v28  ;;  %v647_v56 = vshrl.u32 %v6221_v47, %v3470_v28  ;;  %v650_v8 = vshrl.u32 %v6210_v39, %v3470_v28  ;;  %v655_v59 = vshll.u32 %v6223_v36, %v640_v62 }
  0xf3   :  { %v401_v34 = vshll.u32 %v3479_v13, 30  ;;  %v521_v10 = vshrl.u32 %v3442_v40, 16  ;;  %v543_v1 = vshrl.u32 %v3444_v18, 16  ;;  %v654_v30 = vor.u32 %v653_v21, %v652_v57 }
  0xf4   :  { %v643_v60 = vshll.u32 %v6193_v52, %v640_v62  ;;  %v646_v25 = vshll.u32 %v6217_v45, %v640_v62  ;;  %v649_v9 = vshll.u32 %v6221_v47, %v640_v62  ;;  %v657_v22 = vor.u32 %v656_v26, %v655_v59 }
  0xf5   :  { %v2972_v23 = vpop.eup %2971  ;;  %v479_v42 = vshrl.u32 %v6193_v52, %v3331_v16  ;;  %v532_v19 = vadd.s32 %v531_v51, %v521_v10  ;;  %v554_v7 = vadd.s32 %v553_v32, %v543_v1  ;;  %v633_v20 = vand.u32 8388607, %v6191_v46 }
  0xf6   :  { %v3509_v40 = vor.u32 %v644_v58, %v643_v60  ;;  %v3511_v18 = vor.u32 %v647_v56, %v646_v25  ;;  %v3513_v21 = vor.u32 %v650_v8, %v649_v9  ;;  %vm661_vm6 = vcmp.lt.s32.totalorder %v3487_v55, 4 }
  0xf7   :  { %v247_v62 = vsub.s32 32, %v3475_v14  ;;  %v545_v26 = vshrl.u32 %v3458_v5, 16  ;;  %v667_v16 = vsel %vm661_vm6, %v654_v30, 920167782  ;;  %v799_v51 = vmul.f32 0.6931472, %v2972_v23 }
  0xf8   :  { %v252_v32 = vadd.s32 127, %v251_v50  ;;  %v3520_v57 = vsub.s32 %v398_v2, %v401_v34  ;;  %v523_v58 = vshrl.u32 %v3454_v33, 16  ;;  %v671_v56 = vsel %vm661_vm6, %v657_v22, 1326507024 }
  0xf9   :  { %v500_v8 = vsel %vm498_vm8, %v3373_v37, 2102212464  ;;  %v555_v59 = vadd.s32 %v554_v7, %v545_v26  ;;  %vm658_vm7 = vcmp.lt.s32.totalorder %v3487_v55, 1  ;;  %vm660_vm12 = vcmp.lt.s32.totalorder %v3487_v55, 3 }
  0xfa   :  { %v3530_v10 = vadd.s32 %v532_v19, %v523_v58  ;;  %v634_v50 = vor.u32 8388608, %v633_v20  ;;  %v666_v33 = vsel %vm658_vm7, %v3509_v40, %v3511_v18  ;;  %v668_v2 = vsel %vm660_vm12, %v3513_v21, %v667_v16 }
  0xfb   :  { %v499_v37 = vsel %vm495_vm9, %v479_v42, %v3377_v12  ;;  %v670_v34 = vsel %vm658_vm7, %v3511_v18, %v3513_v21  ;;  %v672_v1 = vsel %vm660_vm12, %v654_v30, %v671_v56  ;;  %v3550_v23 = vsel %vm796_vm1, 0.0, %v799_v51 }
  0xfc   :  { %vm403_vm8 = vcmp.lt.s32.totalorder %v3520_v57, 0  ;;  %v501_v60 = vsel %vm497_vm10, %v3371_v11, %v500_v8  ;;  %v3559_v12 = vadd.s32 %v3460_v6, %v544_v43  ;;  %vm659_vm9 = vcmp.lt.s32.totalorder %v3487_v55, 2 }
  0xfd   :  { %v404_v25 = vsub.s32 0, %v3520_v57  ;;  %v559_v30 = vadd.s32 1, %v555_v59  ;;  %v669_v15 = vsel %vm659_vm9, %v666_v33, %v668_v2  ;;  %v804_v9 = vstv %s3507_s28  ;;  %s6052_s28 = sld [smem:[#allocation8 + $0x102]] }
  0xfe   :  { %vm558_vm13 = vc.u32 %v3530_v10, %v3559_v12  ;;  %v673_v11 = vsel %vm659_vm9, %v670_v34, %v672_v1  ;;  %v3570_v22 = vshll.u32 %v634_v50, 8  ;;  %v802_v5 = vmul.f32 100.0, %v3550_v23 }
  0xff   :  { %v231_v6 = vadd.s32 %v3316_v61, %v3305_v0  ;;  %v253_v43 = vshll.u32 %v252_v32, 23  ;;  %v502_v42 = vsel %vm496_vm11, %v499_v37, %v501_v60  ;;  %v700_v19 = vshrl.u32 %v669_v15, 16 }
 0x100   :  { %v3577_v7 = vadd.f32 %v804_v9, %v802_v5  ;;  %v405_v26 = vsel %vm403_vm8, %v404_v25, %v3520_v57  ;;  %v560_v16 = vsel %vm558_vm13, %v559_v30, %v555_v59  ;;  %v678_v51 = vshrl.u32 %v673_v11, 16 }
 0x101   :  { %v249_v20 = vshrl.u32 %v231_v6, %v247_v62  ;;  %v556_v58 = vmul.u32 %v3413_v3, %v502_v42  ;;  %v675_v56 = vand.u32 65535, %v3570_v22  ;;  %v248_v61 = vshll.u32 %v3404_v53, %v3475_v14 }
 0x102   :  { %6268 = vst [vmem:[#allocation19_spill] sm:$0xff] %v3577_v7  ;;  %v809_v0 = vand.u32 2139095040, %v3577_v7  ;;  %v254_v54 = vor.u32 4788187, %v253_v43  ;;  %v406_v32 = vclz %v405_v26  ;;  %v699_v59 = vand.u32 65535, %v669_v15 }
 0x103   :  { %v561_v8 = vadd.s32 %v560_v16, %v556_v58  ;;  %v3587_v50 = vmul.u32 %v700_v19, %v675_v56  ;;  %v250_v62 = vor.u32 %v249_v20, %v248_v61  ;;  %v3589_v33 = vmul.u32 %v678_v51, %v675_v56 }
 0x104   :  { %v810_v2 = vshrl.u32 %v809_v0, 23  ;;  %v255_v37 = vand.u32 2147483647, %v254_v54  ;;  %v677_v34 = vand.u32 65535, %v673_v11  ;;  %v2867_v3 = vadd.s32 4294967294, %v406_v32 }
 0x105   :  { %v562_v1 = vadd.s32 536870912, %v561_v8  ;;  %v705_v60 = vshll.u32 %v3587_v50, 16  ;;  %v257_v25 = vcvt.s32.f32 %v250_v62  ;;  %v676_v30 = vshrl.u32 %v3570_v22, 16 }
 0x106   :  { %v683_v53 = vshll.u32 %v3589_v33, 16  ;;  %v2881_v14 = vadd.s32 4294967169, %v810_v2  ;;  %v701_v9 = vmul.u32 %v699_v59, %v675_v56  ;;  %v679_v6 = vmul.u32 %v677_v34, %v675_v56 }
 0x107   :  { %v258_v5 = vmul.f32 %v257_v25, %v255_v37  ;;  %v3594_v43 = vmul.u32 %v677_v34, %v676_v30  ;;  %v3596_v42 = vmul.u32 %v699_v59, %v676_v30  ;;  %vm2868_vm10 = vcmp.lt.s32.totalorder %v2867_v3, 0 }
 0x108   :  { %v3598_v15 = vshrl.u32 %v562_v1, 30  ;;  %vm709_vm11 = vc.u32 %v701_v9, %v705_v60  ;;  %vm687_vm14 = vc.u32 %v679_v6, %v683_v53  ;;  %v689_v11 = vadd.s32 %v683_v53, %v679_v6 }
 0x109   :  { %v3600_v20 = vadd.s32 %v705_v60, %v701_v9  ;;  %v816_v26 = vadd.s32 1, %v2881_v14  ;;  %v259_v16 = vxor.u32 2147483648, %v258_v5  ;;  %v409_v58 = vsel %vm2868_vm10, 0, %v2867_v3 }
 0x10a   :  { %v685_v0 = vshll.u32 %v3594_v43, 16  ;;  %v707_v61 = vshll.u32 %v3596_v42, 16  ;;  %v564_v56 = vshll.u32 %v3598_v15, 30  ;;  %v688_v54 = vsel %vm687_vm14, 1, %v6198_v4 }
 0x10b   :  { %v704_v32 = vmul.u32 %v700_v19, %v676_v30  ;;  %v710_v62 = vsel %vm709_vm11, 1, %v6198_v4  ;;  %v682_v2 = vmul.u32 %v678_v51, %v676_v30  ;;  %vm817_vm1 = vcmp.gt.s32.totalorder %v816_v26, 0 }
 0x10c   :  { %vm691_vm15 = vc.u32 %v689_v11, %v685_v0  ;;  %vm713_vm0 = vc.u32 %v3600_v20, %v707_v61  ;;  %vm139_vm3 = vcmp.lt.s32.totalorder %v3152_v24, 0  ;;  %v414_v59 = vsub.s32 4294967266, %v409_v58 }
 0x10d   :  { %v260_v37 = vsel %vm139_vm3, %v259_v16, %v258_v5  ;;  %v690_v34 = vadd.s32 %v688_v54, %v682_v2  ;;  %v712_v3 = vadd.s32 %v710_v62, %v704_v32  ;;  %v692_v19 = vsel %vm691_vm15, 1, %v6198_v4 }
 0x10e   :  { %v714_v1 = vsel %vm713_vm0, 1, %v6198_v4  ;;  %v818_v60 = vsel %vm817_vm1, %v816_v26, 0  ;;  %vm3617_vm4 = vcmp.le.f32.partialorder %v137_v38, 0.7853982  ;;  %v3621_v25 = vsub.s32 %v561_v8, %v564_v56 }
 0x10f   :  { %v3626_v30 = vsel %vm3617_vm4, %v3152_v24, %v260_v37  ;;  %v410_v53 = vsub.s32 32, %v409_v58  ;;  %v415_v14 = vadd.s32 127, %v414_v59  ;;  %v694_v9 = vadd.s32 %v692_v19, %v690_v34 }
 0x110   :  { %v716_v5 = vadd.s32 %v714_v1, %v712_v3  ;;  %v820_v6 = vand.u32 31, %v818_v60  ;;  %v965_v11 = vmul.f32 17.782795, %v3550_v23  ;;  %v394_v38 = vadd.s32 %v3440_v31, %v3427_v44 }
 0x111   :  { %v967_v26 = vstv %s3607_s29  ;;  %v567_v16 = vsub.s32 0, %v3621_v25  ;;  %v684_v8 = vshrl.u32 %v3589_v33, 16  ;;  %v706_v0 = vshrl.u32 %v3587_v50, 16  ;;  %s6110_s29 = sld [smem:[#allocation8 + $0x103]] }
 0x112   :  { %v3637_v56 = vmul.f32 %v3626_v30, %v3626_v30  ;;  %v412_v54 = vshrl.u32 %v394_v38, %v410_v53  ;;  %v416_v32 = vshll.u32 %v415_v14, 23  ;;  %vm566_vm5 = vcmp.lt.s32.totalorder %v3621_v25, 0 }
 0x113   :  { %v695_v62 = vadd.s32 %v694_v9, %v684_v8  ;;  %v717_v2 = vadd.s32 %v716_v5, %v706_v0  ;;  %v3640_v59 = vsub.s32 32, %v820_v6  ;;  %v3642_v44 = vadd.f32 %v967_v26, %v965_v11 }
 0x114   :  { %v261_v31 = vsub.s32 4, %v3358_v63  ;;  %v411_v33 = vshll.u32 %v3520_v57, %v409_v58  ;;  %v424_v50 = vsub.s32 4, %v3479_v13  ;;  %v568_v37 = vsel %vm566_vm5, %v567_v16, %v3621_v25 }
 0x115   :  { %6271 = vst [vmem:[#allocation20_spill] sm:$0xff] %v3642_v44  ;;  %v663_v34 = vsel %vm661_vm6, %v3513_v21, 2102212464  ;;  %v686_v3 = vshrl.u32 %v3594_v43, 16  ;;  %v708_v19 = vshrl.u32 %v3596_v42, 16  ;;  %v642_v9 = vshrl.u32 %v6193_v52, %v3470_v28 }
 0x116   :  { %v266_v1 = vmul.f32 -0.001358992, %v3637_v56  ;;  %v413_v53 = vor.u32 %v412_v54, %v411_v33  ;;  %v417_v14 = vor.u32 4788187, %v416_v32  ;;  %v833_v5 = vshrl.u32 %v6223_v36, %v3640_v59 }
 0x117   :  { %v3656_v57 = vadd.s32 %v695_v62, %v686_v3  ;;  %v718_v58 = vadd.s32 %v717_v2, %v708_v19  ;;  %v972_v11 = vand.u32 2139095040, %v3642_v44  ;;  %v569_v21 = vclz %v568_v37 }
 0x118   :  { %v662_v43 = vsel %vm658_vm7, %v642_v9, %v3509_v40  ;;  %v664_v42 = vsel %vm660_vm12, %v3511_v18, %v663_v34  ;;  %v836_v28 = vshrl.u32 %v6196_v41, %v3640_v59  ;;  %v3670_v38 = vadd.s32 %v3600_v20, %v707_v61 }
 0x119   :  { %v6190_v26 = vand.u32 2147483647, %v3577_v7  ;;  %v3673_v16 = vshrl.u32 %v818_v60, 5  ;;  %v832_v8 = vshll.u32 %v6210_v39, %v820_v6  ;;  %vm302_vm6 = vcmp.lt.s32.totalorder %v3158_v35, 0 }
 0x11a   :  { %v824_v40 = vshrl.u32 %v6217_v45, %v3640_v59  ;;  %v827_v18 = vshrl.u32 %v6221_v47, %v3640_v59  ;;  %v830_v0 = vshrl.u32 %v6210_v39, %v3640_v59  ;;  %v835_v20 = vshll.u32 %v6223_v36, %v820_v6 }
 0x11b   :  { %vm721_vm7 = vc.u32 %v3656_v57, %v3670_v38  ;;  %v722_v61 = vadd.s32 1, %v718_v58  ;;  %v834_v60 = vor.u32 %v833_v5, %v832_v8  ;;  %v973_v54 = vshrl.u32 %v972_v11, 23 }
 0x11c   :  { %v823_v32 = vshll.u32 %v6193_v52, %v820_v6  ;;  %v826_v62 = vshll.u32 %v6217_v45, %v820_v6  ;;  %v829_v2 = vshll.u32 %v6221_v47, %v820_v6  ;;  %v837_v33 = vor.u32 %v836_v28, %v835_v20 }
 0x11d   :  { %v273_v37 = vmul.f32 -0.00019511016, %v3637_v56  ;;  %v418_v34 = vand.u32 2147483647, %v417_v14  ;;  %v665_v3 = vsel %vm659_vm9, %v662_v43, %v664_v42  ;;  %v813_v19 = vand.u32 8388607, %v6190_v26 }
 0x11e   :  { %v3694_v9 = vor.u32 %v824_v40, %v823_v32  ;;  %v3696_v5 = vor.u32 %v827_v18, %v826_v62  ;;  %v3698_v11 = vor.u32 %v830_v0, %v829_v2  ;;  %vm841_vm12 = vcmp.lt.s32.totalorder %v3673_v16, 4 }
 0x11f   :  { %v420_v8 = vcvt.s32.f32 %v413_v53  ;;  %v2872_v6 = vadd.s32 4294967294, %v569_v21  ;;  %v723_v14 = vsel %vm721_vm7, %v722_v61, %v718_v58  ;;  %v847_v55 = vsel %vm841_vm12, %v834_v60, 920167782 }
 0x120   :  { %v267_v43 = vadd.f32 0.041655596, %v266_v1  ;;  %v719_v42 = vmul.u32 %v3570_v22, %v665_v3  ;;  %v851_v28 = vsel %vm841_vm12, %v837_v33, 1326507024  ;;  %v2886_v40 = vadd.s32 4294967169, %v973_v54 }
 0x121   :  { %v262_v18 = vsel %vm139_vm3, %v261_v31, %v3358_v63  ;;  %v421_v53 = vmul.f32 %v420_v8, %v418_v34  ;;  %vm838_vm8 = vcmp.lt.s32.totalorder %v3673_v16, 1  ;;  %vm840_vm9 = vcmp.lt.s32.totalorder %v3673_v16, 3 }
 0x122   :  { %v724_v58 = vadd.s32 %v723_v14, %v719_v42  ;;  %v814_v21 = vor.u32 8388608, %v813_v19  ;;  %v846_v22 = vsel %vm838_vm8, %v3694_v9, %v3696_v5  ;;  %v848_v1 = vsel %vm840_vm9, %v3698_v11, %v847_v55 }
 0x123   :  { %v425_v63 = vsel %vm302_vm6, %v424_v50, %v3479_v13  ;;  %vm2873_vm13 = vcmp.lt.s32.totalorder %v2872_v6, 0  ;;  %v850_v31 = vsel %vm838_vm8, %v3696_v5, %v3698_v11  ;;  %v852_v0 = vsel %vm840_vm9, %v834_v60, %v851_v28 }
 0x124   :  { %v268_v20 = vmul.f32 %v267_v43, %v3637_v56  ;;  %v274_v61 = vadd.f32 0.008332121, %v273_v37  ;;  %vm839_vm10 = vcmp.lt.s32.totalorder %v3673_v16, 2  ;;  %v979_v54 = vadd.s32 1, %v2886_v40 }
 0x125   :  { %vm3734_vm11 = vcmp.le.f32.partialorder %v300_v49, 0.7853982  ;;  %v422_v13 = vxor.u32 2147483648, %v421_v53  ;;  %v3740_v50 = vsel %vm839_vm10, %v846_v22, %v848_v1  ;;  %v3742_v62 = vsel %vm2873_vm13, 0, %v2872_v6 }
 0x126   :  { %v725_v60 = vadd.s32 536870912, %v724_v58  ;;  %v3746_v2 = vsel %vm839_vm10, %v850_v31, %v852_v0  ;;  %v3748_v33 = vshll.u32 %v814_v21, 8  ;;  %v264_v49 = vsel %vm3617_vm4, 0, %v262_v18 }
 0x127   :  { %v427_v37 = vsel %vm3734_vm11, 0, %v425_v63  ;;  %v269_v34 = vadd.f32 -0.4999988, %v268_v20  ;;  %v275_v3 = vmul.f32 %v274_v61, %v3637_v56  ;;  %v880_v19 = vshrl.u32 %v3740_v50, 16 }
 0x128   :  { %vm980_vm14 = vcmp.gt.s32.totalorder %v979_v54, 0  ;;  %v577_v8 = vsub.s32 4294967266, %v3742_v62  ;;  %v858_v6 = vshrl.u32 %v3746_v2, 16  ;;  %v281_v14 = vadd.s32 3, %v264_v49 }
 0x129   :  { %v423_v55 = vsel %vm302_vm6, %v422_v13, %v421_v53  ;;  %v3762_v51 = vshrl.u32 %v725_v60, 30  ;;  %v855_v43 = vand.u32 65535, %v3748_v33  ;;  %v444_v42 = vadd.s32 3, %v427_v37 }
 0x12a   :  { %v981_v28 = vsel %vm980_vm14, %v979_v54, 0  ;;  %v270_v40 = vmul.f32 %v269_v34, %v3637_v56  ;;  %v276_v18 = vadd.f32 -0.16666654, %v275_v3  ;;  %v3773_v22 = vsel %vm3734_vm11, %v3158_v35, %v423_v55 }
 0x12b   :  { %6274 = vst [vmem:[#allocation21_spill] sm:$0xff] %v3762_v51  ;;  %v3768_v21 = vmul.u32 %v880_v19, %v855_v43  ;;  %v578_v53 = vadd.s32 127, %v577_v8  ;;  %v3775_v1 = vmul.u32 %v858_v6, %v855_v43  ;;  %v3777_v63 = vand.u32 3, %v281_v14 }
 0x12c   :  { %v727_v31 = vshll.u32 %v3762_v51, 30  ;;  %v879_v0 = vand.u32 65535, %v3740_v50  ;;  %v983_v20 = vand.u32 31, %v981_v28  ;;  %v3785_v13 = vand.u32 3, %v444_v42 }
 0x12d   :  { %v857_v32 = vand.u32 65535, %v3746_v2  ;;  %v3788_v60 = vadd.f32 1.0, %v270_v40  ;;  %v277_v49 = vmul.f32 %v276_v18, %v3637_v56  ;;  %v3793_v37 = vmul.f32 %v3773_v22, %v3773_v22 }
 0x12e   :  { %v885_v34 = vshll.u32 %v3768_v21, 16  ;;  %v573_v3 = vsub.s32 32, %v3742_v62  ;;  %v579_v8 = vshll.u32 %v578_v53, 23  ;;  %v856_v14 = vshrl.u32 %v3748_v33, 16 }
 0x12f   :  { %v863_v55 = vshll.u32 %v3775_v1, 16  ;;  %v3799_v42 = vsub.s32 %v724_v58, %v727_v31  ;;  %v881_v2 = vmul.u32 %v879_v0, %v855_v43  ;;  %v6195_v40 = vand.u32 2147483647, %v3642_v44 }
 0x130   :  { %v3802_v26 = vsub.s32 32, %v983_v20  ;;  %v557_v56 = vadd.s32 %v3559_v12, %v3530_v10  ;;  %v859_v18 = vmul.u32 %v857_v32, %v855_v43  ;;  %v3806_v61 = vmul.u32 %v857_v32, %v856_v14 }
 0x131   :  { %v3808_v54 = vmul.u32 %v879_v0, %v856_v14  ;;  %v278_v53 = vadd.f32 1.0, %v277_v49  ;;  %v429_v46 = vmul.f32 -0.001358992, %v3793_v37  ;;  %v574_v58 = vshll.u32 %v3621_v25, %v3742_v62 }
 0x132   :  { %vm889_vm15 = vc.u32 %v881_v2, %v885_v34  ;;  %v575_v31 = vshrl.u32 %v557_v56, %v573_v3  ;;  %v3813_v29 = vor.u32 4788187, %v579_v8  ;;  %vm867_vm0 = vc.u32 %v859_v18, %v863_v55 }
 0x133   :  { %v3815_v52 = vadd.s32 %v885_v34, %v881_v2  ;;  %vm729_vm1 = vcmp.lt.s32.totalorder %v3799_v42, 0  ;;  %v730_v10 = vsub.s32 0, %v3799_v42  ;;  %v3821_v12 = vand.u32 8388607, %v6195_v40 }
 0x134   :  { %v996_v43 = vshrl.u32 %v6223_v36, %v3802_v26  ;;  %v865_v25 = vshll.u32 %v3806_v61, 16  ;;  %v869_v62 = vadd.s32 %v863_v55, %v859_v18  ;;  %v6201_v0 = vshll.u32 %v3808_v54, 16 }
 0x135   :  { %v890_v32 = vsel %vm889_vm15, 1, %v6198_v4  ;;  %v868_v49 = vsel %vm867_vm0, 1, %v6198_v4  ;;  %v3829_v34 = vshrl.u32 %v981_v28, 5  ;;  %v995_v3 = vshll.u32 %v6210_v39, %v983_v20 }
 0x136   :  { %v999_v8 = vshrl.u32 %v6196_v41, %v3802_v26  ;;  %vm893_vm3 = vc.u32 %v3815_v52, %v6201_v0  ;;  %v987_v55 = vshrl.u32 %v6217_v45, %v3802_v26  ;;  %v990_v2 = vshrl.u32 %v6221_v47, %v3802_v26 }
 0x137   :  { %v993_v56 = vshrl.u32 %v6210_v39, %v3802_v26  ;;  %v862_v28 = vmul.u32 %v858_v6, %v856_v14  ;;  %v884_v18 = vmul.u32 %v880_v19, %v856_v14  ;;  %v997_v40 = vor.u32 %v996_v43, %v995_v3 }
 0x138   :  { %v998_v41 = vshll.u32 %v6223_v36, %v983_v20  ;;  %vm871_vm4 = vc.u32 %v869_v62, %v865_v25  ;;  %v6275_v4 = vmov 683565275   ;;  %v989_v0 = vshll.u32 %v6217_v45, %v983_v20 }
 0x139   :  { %v986_v17 = vshll.u32 %v6275_v4, %v983_v20  ;;  %v992_v44 = vshll.u32 %v6221_v47, %v983_v20  ;;  %v870_v7 = vadd.s32 %v868_v49, %v862_v28  ;;  %v892_v51 = vadd.s32 %v890_v32, %v884_v18 }
 0x13a   :  { %v6276_v35 = vmov 0   ;;  %v1000_v6 = vor.u32 %v999_v8, %v998_v41  ;;  %v3854_v50 = vor.u32 %v990_v2, %v989_v0  ;;  %vm1004_vm5 = vcmp.lt.s32.totalorder %v3829_v34, 4 }
 0x13b   :  { %v894_v39 = vsel %vm893_vm3, 1, %v6276_v35  ;;  %v3852_v48 = vor.u32 %v987_v55, %v986_v17  ;;  %v3856_v19 = vor.u32 %v993_v56, %v992_v44  ;;  %v3860_v14 = vmul.f32 %v278_v53, %v3626_v30 }
 0x13c   :  { %v436_v20 = vmul.f32 -0.00019511016, %v3793_v37  ;;  %v872_v43 = vsel %vm871_vm4, 1, %v6276_v35  ;;  %v1010_v25 = vsel %vm1004_vm5, %v997_v40, 920167782  ;;  %v576_v41 = vor.u32 %v575_v31, %v574_v58 }
 0x13d   :  { %v430_v62 = vadd.f32 0.041655596, %v429_v46  ;;  %v581_v17 = vand.u32 2147483647, %v3813_v29  ;;  %v731_v44 = vsel %vm729_vm1, %v730_v10, %v3799_v42  ;;  %v896_v0 = vadd.s32 %v894_v39, %v892_v51 }
 0x13e   :  { %vm1001_vm6 = vcmp.lt.s32.totalorder %v3829_v34, 1  ;;  %vm1003_vm7 = vcmp.lt.s32.totalorder %v3829_v34, 3  ;;  %v1014_v30 = vsel %vm1004_vm5, %v1000_v6, 1326507024  ;;  %v874_v53 = vadd.s32 %v872_v43, %v870_v7 }
 0x13f   :  { %v977_v32 = vor.u32 8388608, %v3821_v12  ;;  %v1009_v29 = vsel %vm1001_vm6, %v3852_v48, %v3854_v50  ;;  %v1011_v39 = vsel %vm1003_vm7, %v3856_v19, %v1010_v25  ;;  %v732_v46 = vclz %v731_v44 }
 0x140   :  { %v864_v51 = vshrl.u32 %v3775_v1, 16  ;;  %v886_v58 = vshrl.u32 %v3768_v21, 16  ;;  %v1128_v31 = vmul.f32 3.1622777, %v3550_v23  ;;  %vm287_vm13 = vcmp.eq.s32.totalorder %v3777_v63, 2 }
 0x141   :  { %vm1002_vm11 = vcmp.lt.s32.totalorder %v3829_v34, 2  ;;  %v1013_v7 = vsel %vm1001_vm6, %v3854_v50, %v3856_v19  ;;  %v1015_v10 = vsel %vm1003_vm7, %v997_v40, %v1014_v30  ;;  %v1130_v12 = vstv %s3849_s11  ;;  %s6169_s11 = sld [smem:[#allocation8 + $0x183]] }
 0x142   :  { %v583_v49 = vcvt.s32.f32 %v576_v41  ;;  %v897_v3 = vadd.s32 %v896_v0, %v886_v58  ;;  %v3896_v21 = vsel %vm1002_vm11, %v1009_v29, %v1011_v39  ;;  %v3898_v1 = vadd.f32 %v1130_v12, %v1128_v31 }
 0x143   :  { %v288_v8 = vxor.u32 2147483648, %v3788_v60  ;;  %v437_v55 = vadd.f32 0.008332121, %v436_v20  ;;  %vm465_vm14 = vcmp.lt.s32.totalorder %v3222_v27, 0  ;;  %v875_v2 = vadd.s32 %v874_v53, %v864_v51 }
 0x144   :  { %v3902_v56 = vshll.u32 %v977_v32, 8  ;;  %v584_v28 = vmul.f32 %v583_v49, %v581_v17  ;;  %v888_v40 = vshrl.u32 %v3808_v54, 16  ;;  %v3907_v18 = vsel %vm1002_vm11, %v1013_v7, %v1015_v10 }
 0x145   :  { %v1135_v6 = vand.u32 2139095040, %v3898_v1  ;;  %vm284_vm15 = vcmp.eq.s32.totalorder %v3777_v63, 0  ;;  %v431_v43 = vmul.f32 %v430_v62, %v3793_v37  ;;  %v2877_v25 = vadd.s32 4294967294, %v732_v46 }
 0x146   :  { %v866_v20 = vshrl.u32 %v3806_v61, 16  ;;  %v1043_v41 = vshrl.u32 %v3896_v21, 16  ;;  %v822_v17 = vshrl.u32 %v6275_v4, %v3640_v59  ;;  %v843_v44 = vsel %vm841_vm12, %v3698_v11, 2102212464 }
 0x147   :  { %v898_v0 = vadd.s32 %v897_v3, %v888_v40  ;;  %v1136_v30 = vshrl.u32 %v1135_v6, 23  ;;  %v438_v53 = vmul.f32 %v437_v55, %v3793_v37  ;;  %v6277_v32 = vand.u32 2147483647, %v3222_v27 }
 0x148   :  { %v3926_v61 = vadd.s32 %v875_v2, %v866_v20  ;;  %v1018_v29 = vand.u32 65535, %v3902_v56  ;;  %v1021_v59 = vshrl.u32 %v3907_v18, 16  ;;  %v285_v39 = vxor.u32 2147483648, %v3860_v14 }
 0x149   :  { %vm3922_vm0 = vcmp.le.f32.partialorder %v6277_v32, 0.7853982  ;;  %v585_v46 = vxor.u32 2147483648, %v584_v28  ;;  %v842_v11 = vsel %vm838_vm8, %v822_v17, %v3694_v9  ;;  %v2891_v51 = vadd.s32 4294967169, %v1136_v30 }
 0x14a   :  { %vm283_vm12 = vcmp.lt.s32.totalorder %v3777_v63, 2  ;;  %vm2878_vm1 = vcmp.lt.s32.totalorder %v2877_v25, 0  ;;  %v844_v58 = vsel %vm840_vm9, %v3696_v5, %v843_v44  ;;  %v6280_v31 = vshll.u32 %v3808_v54, 16 }
 0x14b   :  { %v3945_v10 = vmul.u32 %v1043_v41, %v1018_v29  ;;  %v289_v9 = vsel %vm287_vm13, %v288_v8, %v3860_v14  ;;  %v432_v12 = vadd.f32 -0.4999988, %v431_v43  ;;  %v902_v49 = vadd.s32 1, %v898_v0 }
 0x14c   :  { %v3941_v7 = vadd.s32 %v3815_v52, %v6280_v31  ;;  %v1142_v3 = vadd.s32 1, %v2891_v51  ;;  %v439_v55 = vadd.f32 -0.16666654, %v438_v53  ;;  %v3954_v5 = vmul.u32 %v1021_v59, %v1018_v29 }
 0x14d   :  { %v1042_v52 = vand.u32 65535, %v3896_v21  ;;  %v586_v54 = vsel %vm465_vm14, %v585_v46, %v584_v28  ;;  %v3959_v2 = vsel %vm2878_vm1, 0, %v2877_v25  ;;  %v845_v14 = vsel %vm839_vm10, %v842_v11, %v844_v58 }
 0x14e   :  { %vm901_vm8 = vc.u32 %v3926_v61, %v3941_v7  ;;  %vm1143_vm9 = vcmp.gt.s32.totalorder %v1142_v3, 0  ;;  %v1019_v8 = vshrl.u32 %v3902_v56, 16  ;;  %v1020_v40 = vand.u32 65535, %v3907_v18 }
 0x14f   :  { %v1048_v6 = vshll.u32 %v3945_v10, 16  ;;  %v1144_v43 = vsel %vm1143_vm9, %v1142_v3, 0  ;;  %v286_v20 = vsel %vm284_vm15, %v3788_v60, %v285_v39  ;;  %v433_v17 = vmul.f32 %v432_v12, %v3793_v37 }
 0x150   :  { %v587_v28 = vsub.s32 4, %v3598_v15  ;;  %v903_v25 = vsel %vm901_vm8, %v902_v49, %v898_v0  ;;  %v1026_v16 = vshll.u32 %v3954_v5, 16  ;;  %v1044_v44 = vmul.u32 %v1042_v52, %v1018_v29 }
 0x151   :  { %v3972_v30 = vmul.u32 %v1042_v52, %v1019_v8  ;;  %v1146_v53 = vand.u32 31, %v1144_v43  ;;  %v440_v18 = vmul.f32 %v439_v55, %v3793_v37  ;;  %v3980_v60 = vsel %vm3922_vm0, %v3222_v27, %v586_v54 }
 0x152   :  { %v740_v32 = vsub.s32 4294967266, %v3959_v2  ;;  %v899_v39 = vmul.u32 %v3748_v33, %v845_v14  ;;  %v1022_v0 = vmul.u32 %v1020_v40, %v1018_v29  ;;  %v3984_v46 = vmul.u32 %v1020_v40, %v1019_v8 }
 0x153   :  { %vm1052_vm10 = vc.u32 %v1044_v44, %v1048_v6  ;;  %v3986_v11 = vadd.s32 %v1048_v6, %v1044_v44  ;;  %v3990_v51 = vsel %vm283_vm12, %v286_v20, %v289_v9  ;;  %v3996_v58 = vsel %vm465_vm14, %v587_v28, %v3598_v15 }
 0x154   :  { %v3998_v31 = vadd.s32 %v903_v25, %v899_v39  ;;  %vm1030_vm3 = vc.u32 %v1022_v0, %v1026_v16  ;;  %v1032_v33 = vadd.s32 %v1026_v16, %v1022_v0  ;;  %v6214_v29 = vshll.u32 %v3972_v30, 16 }
 0x155   :  { %v4001_v12 = vsub.s32 32, %v1146_v53  ;;  %v4003_v49 = vadd.f32 1.0, %v433_v17  ;;  %v4005_v63 = vadd.f32 1.0, %v440_v18  ;;  %v4009_v9 = vmul.f32 %v3980_v60, %v3980_v60 }
 0x156   :  { %v1053_v15 = vsel %vm1052_vm10, 1, %v6276_v35  ;;  %v741_v3 = vadd.s32 127, %v740_v32  ;;  %v1028_v55 = vshll.u32 %v3984_v46, 16  ;;  %v1047_v52 = vmul.u32 %v1043_v41, %v1019_v8 }
 0x157   :  { %vm1056_vm4 = vc.u32 %v3986_v11, %v6214_v29  ;;  %v905_v54 = vadd.s32 536870912, %v3998_v31  ;;  %v1025_v14 = vmul.u32 %v1021_v59, %v1019_v8  ;;  %v1031_v40 = vsel %vm1030_vm3, 1, %v6276_v35 }
 0x158   :  { %v1291_v6 = vmul.f32 0.56234133, %v3550_v23  ;;  %vm4021_vm13 = vc.u32 %v1032_v33, %v1028_v55  ;;  %v1055_v17 = vadd.s32 %v1053_v15, %v1047_v52  ;;  %v1159_v21 = vshrl.u32 %v6223_v36, %v4001_v12 }
 0x159   :  { %v1293_v41 = vstv %s3974_s13  ;;  %v1057_v28 = vsel %vm1056_vm4, 1, %v6276_v35  ;;  %v6283_v16 = vmov 2102212464   ;;  %v6284_v59 = vmov 1326507024  }
 0x15a   :  { %v1158_v44 = vshll.u32 %v6283_v16, %v1146_v53  ;;  %v1162_v8 = vshrl.u32 %v6284_v59, %v4001_v12  ;;  %v4033_v18 = vshrl.u32 %v1144_v43, 5  ;;  %v1150_v23 = vshrl.u32 %v6217_v45, %v4001_v12 }
 0x15b   :  { %v1153_v32 = vshrl.u32 %v6221_v47, %v4001_v12  ;;  %v1156_v39 = vshrl.u32 %v6283_v16, %v4001_v12  ;;  %v1033_v0 = vadd.s32 %v1031_v40, %v1025_v14  ;;  %v1161_v15 = vshll.u32 %v6223_v36, %v1146_v53 }
 0x15c   :  { %v1160_v33 = vor.u32 %v1159_v21, %v1158_v44  ;;  %v4042_v55 = vadd.f32 %v1293_v41, %v1291_v6  ;;  %v1035_v43 = vsel %vm4021_vm13, 1, %v6276_v35  ;;  %v1149_v52 = vshll.u32 %v6275_v4, %v1146_v53 }
 0x15d   :  { %v1152_v37 = vshll.u32 %v6217_v45, %v1146_v53  ;;  %v1155_v29 = vshll.u32 %v6221_v47, %v1146_v53  ;;  %v592_v25 = vmul.f32 -0.001358992, %v4009_v9  ;;  %v1059_v27 = vadd.s32 %v1057_v28, %v1055_v17 }
 0x15e   :  { %6285 = vst [vmem:[#allocation22_spill] sm:$0xff] %v4042_v55  ;;  %v6286_v14 = vand.u32 2147483647, %v3898_v1  ;;  %v1163_v21 = vor.u32 %v1162_v8, %v1161_v15  ;;  %v4053_v44 = vor.u32 %v1150_v23, %v1149_v52  ;;  %vm1167_vm14 = vcmp.lt.s32.totalorder %v4033_v18, 4 }
 0x15f   :  { %v4055_v6 = vor.u32 %v1153_v32, %v1152_v37  ;;  %v4057_v41 = vor.u32 %v1156_v39, %v1155_v29  ;;  %v720_v20 = vadd.s32 %v3670_v38, %v3656_v57  ;;  %v1037_v45 = vadd.s32 %v1035_v43, %v1033_v0 }
 0x160   :  { %v1139_v40 = vand.u32 8388607, %v6286_v14  ;;  %v1173_v53 = vsel %vm1167_vm14, %v1160_v33, 920167782  ;;  %v1298_v17 = vand.u32 2139095040, %v4042_v55  ;;  %v736_v28 = vsub.s32 32, %v3959_v2 }
 0x161   :  { %v742_v8 = vshll.u32 %v741_v3, 23  ;;  %v4066_v23 = vshrl.u32 %v905_v54, 30  ;;  %v1049_v37 = vshrl.u32 %v3945_v10, 16  ;;  %v1027_v29 = vshrl.u32 %v3954_v5, 16 }
 0x162   :  { %vm1164_vm15 = vcmp.lt.s32.totalorder %v4033_v18, 1  ;;  %vm1166_vm12 = vcmp.lt.s32.totalorder %v4033_v18, 3  ;;  %v1177_v57 = vsel %vm1167_vm14, %v1163_v21, 1326507024  ;;  %vm280_vm1 = vweird.f32 %v3152_v24 }
 0x163   :  { %v1060_v38 = vadd.s32 %v1059_v27, %v1049_v37  ;;  %v1140_v32 = vor.u32 8388608, %v1139_v40  ;;  %v1172_v3 = vsel %vm1164_vm15, %v4053_v44, %v4055_v6  ;;  %v1174_v10 = vsel %vm1166_vm12, %v4057_v41, %v1173_v53 }
 0x164   :  { %v1038_v5 = vadd.s32 %v1037_v45, %v1027_v29  ;;  %v1176_v54 = vsel %vm1164_vm15, %v4055_v6, %v4057_v41  ;;  %v1178_v39 = vsel %vm1166_vm12, %v1160_v33, %v1177_v57  ;;  %v1299_v27 = vshrl.u32 %v1298_v17, 23 }
 0x165   :  { %v599_v0 = vmul.f32 -0.00019511016, %v4009_v9  ;;  %v738_v15 = vshrl.u32 %v720_v20, %v736_v28  ;;  %v1051_v43 = vshrl.u32 %v3972_v30, 16  ;;  %vm1165_vm8 = vcmp.lt.s32.totalorder %v4033_v18, 2 }
 0x166   :  { %v737_v52 = vshll.u32 %v3799_v42, %v3959_v2  ;;  %v743_v45 = vor.u32 4788187, %v742_v8  ;;  %v1029_v14 = vshrl.u32 %v3984_v46, 16  ;;  %v4096_v40 = vsel %vm1165_vm8, %v1172_v3, %v1174_v10 }
 0x167   :  { %v1006_v33 = vsel %vm1004_vm5, %v3856_v19, 2102212464  ;;  %v1061_v21 = vadd.s32 %v1060_v38, %v1051_v43  ;;  %v4103_v20 = vsel %vm1165_vm8, %v1176_v54, %v1178_v39  ;;  %v4105_v53 = vshll.u32 %v1140_v32, 8 }
 0x168   :  { %v907_v42 = vshll.u32 %v4066_v23, 30  ;;  %v985_v2 = vshrl.u32 %v6275_v4, %v3802_v26  ;;  %v4110_v46 = vadd.s32 %v1038_v5, %v1029_v14  ;;  %v2896_v17 = vadd.s32 4294967169, %v1299_v27  ;;  %v6288_v27 = vld [vmem:[#allocation18_spill] sm:$0xff] }
 0x169   :  { %v442_v28 = vmul.f32 %v4005_v63, %v3773_v22  ;;  %vm447_vm5 = vcmp.eq.s32.totalorder %v3785_v13, 0  ;;  %v600_v19 = vadd.f32 0.008332121, %v599_v0  ;;  %v739_v8 = vor.u32 %v738_v15, %v737_v52 }
 0x16a   :  { %v1206_v37 = vshrl.u32 %v4096_v40, 16  ;;  %v1005_v29 = vsel %vm1001_vm6, %v985_v2, %v3852_v48  ;;  %v1007_v26 = vsel %vm1003_vm7, %v3854_v50, %v1006_v33  ;;  %v6287_v57 = vshll.u32 %v3972_v30, 16 }
 0x16b   :  { %v1184_v22 = vshrl.u32 %v4103_v20, 16  ;;  %v593_v63 = vadd.f32 0.041655596, %v592_v25  ;;  %v744_v32 = vand.u32 2147483647, %v743_v45  ;;  %v1065_v3 = vadd.s32 1, %v1061_v21 }
 0x16c   :  { %v4125_v38 = vadd.s32 %v3986_v11, %v6287_v57  ;;  %v1181_v10 = vand.u32 65535, %v4105_v53  ;;  %v4132_v48 = vsel %vm280_vm1, nan, %v3990_v51  ;;  %vm450_vm6 = vcmp.eq.s32.totalorder %v3785_v13, 2 }
 0x16d   :  { %v4136_v50 = vsub.s32 %v3998_v31, %v907_v42  ;;  %v1305_v30 = vadd.s32 1, %v2896_v17  ;;  %v601_v11 = vmul.f32 %v600_v19, %v4009_v9  ;;  %v746_v25 = vcvt.s32.f32 %v739_v8 }
 0x16e   :  { %vm1064_vm7 = vc.u32 %v4110_v46, %v4125_v38  ;;  %v1008_v5 = vsel %vm1002_vm11, %v1005_v29, %v1007_v26  ;;  %v4145_v24 = vmul.u32 %v1206_v37, %v1181_v10  ;;  %vm446_vm9 = vcmp.lt.s32.totalorder %v3785_v13, 2 }
 0x16f   :  { %v448_v51 = vxor.u32 2147483648, %v442_v28  ;;  %v451_v31 = vxor.u32 2147483648, %v4003_v49  ;;  %v590_v54 = vsel %vm3922_vm0, 0, %v3996_v58  ;;  %v4154_v39 = vmul.u32 %v1184_v22, %v1181_v10 }
 0x170   :  { %v594_v34 = vmul.f32 %v593_v63, %v4009_v9  ;;  %vm628_vm11 = vcmp.lt.s32.totalorder %v6288_v27, 0  ;;  %v747_v0 = vmul.f32 %v746_v25, %v744_v32  ;;  %v1066_v15 = vsel %vm1064_vm7, %v1065_v3, %v1061_v21  ;;  %v1455_v63 = vpop.permute.xlu2 %1454  ;;  %v6292_v32 = vld [vmem:[#allocation16_spill] sm:$0xff] }
 0x171   :  { %v1205_v43 = vand.u32 65535, %v4096_v40  ;;  %v910_v52 = vsub.s32 0, %v4136_v50  ;;  %v1062_v45 = vmul.u32 %v3902_v56, %v1008_v5  ;;  %v1183_v14 = vand.u32 65535, %v4103_v20 }
 0x172   :  { %vm1306_vm10 = vcmp.gt.s32.totalorder %v1305_v30, 0  ;;  %v602_v62 = vadd.f32 -0.16666654, %v601_v11  ;;  %vm909_vm0 = vcmp.lt.s32.totalorder %v4136_v50, 0  ;;  %v1182_v58 = vshrl.u32 %v4105_v53, 16 }
 0x173   :  { %v1211_v33 = vshll.u32 %v4145_v24, 16  ;;  %v449_v21 = vsel %vm447_vm5, %v4003_v49, %v448_v51  ;;  %v607_v42 = vadd.s32 3, %v590_v54  ;;  %v6289_v2 = vand.u32 2147483647, %v6288_v27  ;;  %v2967_v49 = vld [vmem:[%s6185_s4 + $0x4] ss:$0 sm:$0xff] }
 0x174   :  { %v4174_v56 = vadd.s32 %v1066_v15, %v1062_v45  ;;  %v1189_v19 = vshll.u32 %v4154_v39, 16  ;;  %v595_v8 = vadd.f32 -0.4999988, %v594_v34  ;;  %v1207_v29 = vmul.u32 %v1205_v43, %v1181_v10 }
 0x175   :  { %vm4170_vm3 = vcmp.le.f32.partialorder %v6289_v2, 0.7853982  ;;  %v4177_v26 = vmul.u32 %v1205_v43, %v1182_v58  ;;  %v1307_v57 = vsel %vm1306_vm10, %v1305_v30, 0  ;;  %vm443_vm4 = vweird.f32 %v6292_v32 }
 0x176   :  { %v748_v3 = vxor.u32 2147483648, %v747_v0  ;;  %v911_v11 = vsel %vm909_vm0, %v910_v52, %v4136_v50  ;;  %v1185_v25 = vmul.u32 %v1183_v14, %v1181_v10  ;;  %v4186_v5 = vmul.u32 %v1183_v14, %v1182_v58 }
 0x177   :  { %v452_v30 = vsel %vm450_vm6, %v451_v31, %v442_v28  ;;  %v603_v51 = vmul.f32 %v602_v62, %v4009_v9  ;;  %vm1215_vm13 = vc.u32 %v1207_v29, %v1211_v33  ;;  %v4193_v54 = vadd.s32 %v1211_v33, %v1207_v29 }
 0x178   :  { %v1068_v34 = vadd.s32 536870912, %v4174_v56  ;;  %vm1193_vm1 = vc.u32 %v1185_v25, %v1189_v19  ;;  %v1195_v15 = vadd.s32 %v1189_v19, %v1185_v25  ;;  %v1309_v43 = vand.u32 31, %v1307_v57 }
 0x179   :  { %v453_v10 = vsel %vm446_vm9, %v449_v21, %v452_v30  ;;  %v912_v52 = vclz %v911_v11  ;;  %v6219_v45 = vshll.u32 %v4177_v26, 16  ;;  %v4199_v14 = vsub.f32 %v1455_v63, %v2967_v49 }
 0x17a   :  { %v596_v28 = vmul.f32 %v595_v8, %v4009_v9  ;;  %v749_v31 = vsel %vm628_vm11, %v748_v3, %v747_v0  ;;  %v1191_v62 = vshll.u32 %v4186_v5, 16  ;;  %v1216_v33 = vsel %vm1215_vm13, 1, %v6276_v35 }
 0x17b   :  { %v604_v2 = vadd.f32 1.0, %v603_v51  ;;  %v1194_v13 = vsel %vm1193_vm1, 1, %v6276_v35  ;;  %v1210_v21 = vmul.u32 %v1206_v37, %v1182_v58  ;;  %vm1219_vm5 = vc.u32 %v4193_v54, %v6219_v45 }
 0x17c   :  { %v4212_v9 = vshrl.u32 %v1068_v34, 30  ;;  %v1188_v0 = vmul.u32 %v1184_v22, %v1182_v58  ;;  %vm1197_vm6 = vc.u32 %v1195_v15, %v1191_v62  ;;  %v4216_v19 = vsub.s32 32, %v1309_v43 }
 0x17d   :  { %v4221_v8 = vsel %vm4170_vm3, %v6288_v27, %v749_v31  ;;  %v2882_v29 = vadd.s32 4294967294, %v912_v52  ;;  %v1218_v40 = vadd.s32 %v1216_v33, %v1210_v21  ;;  %v1460_v37 = vmul.f32 100.0, %v4199_v14 }
 0x17e   :  { %v6293_v49 = vstv %s3750_s30  ;;  %v1196_v3 = vadd.s32 %v1194_v13, %v1188_v0  ;;  %v1220_v20 = vsel %vm1219_vm5, 1, %v6276_v35  ;;  %v1462_v22 = vstv %s4188_s16  ;;  %s6134_s30 = sld [smem:[#allocation8 + $0x180]]  ;;  %s2840_s16 = sshll.u32 %s6189_s8, 4  ;;  %s2841_s16 = int_to_ptr.hbm [resolvable:$true] %s2840_s16 }
 0x17f   :  { %v4227_v63 = vmul.f32 %v6293_v49, %v4132_v48  ;;  %v4233_v58 = vsel %vm443_vm4, nan, %v453_v10  ;;  %v4235_v11 = vadd.f32 1.0, %v596_v28  ;;  %v4237_v25 = vand.u32 3, %v607_v42 }
 0x180   :  { %v1198_v30 = vsel %vm1197_vm6, 1, %v6276_v35  ;;  %v4241_v51 = vmul.f32 %v604_v2, %v3980_v60  ;;  %v4245_v48 = vmul.f32 %v4221_v8, %v4221_v8  ;;  %v1070_v34 = vshll.u32 %v4212_v9, 30 }
 0x181   :  { %v1322_v32 = vshrl.u32 %v6223_v36, %v4216_v19  ;;  %vm2883_vm7 = vcmp.lt.s32.totalorder %v2882_v29, 0  ;;  %v1222_v15 = vadd.s32 %v1220_v20, %v1218_v40  ;;  %v6220_v10 = vand.u32 2147483647, %v4042_v55 }
 0x182   :  { %v4251_v42 = vadd.f32 %v1462_v22, %v1460_v37  ;;  %v1200_v52 = vadd.s32 %v1198_v30, %v1196_v3  ;;  %v4253_v28 = vshrl.u32 %v1307_v57, 5  ;;  %v6295_v60 = vmov 2475754826  }
 0x183   :  { %v1313_v31 = vshrl.u32 %v6295_v60, %v4216_v19  ;;  %v1321_v62 = vshll.u32 %v6283_v16, %v1309_v43  ;;  %v1212_v33 = vshrl.u32 %v4145_v24, 16  ;;  %v1316_v2 = vshrl.u32 %v6221_v47, %v4216_v19 }
 0x184   :  { %6294 = vst [vmem:[#allocation18_spill] sm:$0xff] %v4251_v42  ;;  %v1319_v13 = vshrl.u32 %v6283_v16, %v4216_v19  ;;  %v1325_v21 = vshrl.u32 %v6284_v59, %v4216_v19  ;;  %v4266_v0 = vsub.s32 %v4174_v56, %v1070_v34  ;;  %v1190_v57 = vshrl.u32 %v4154_v39, 16 }
 0x185   :  { %v1312_v40 = vshll.u32 %v6275_v4, %v1309_v43  ;;  %v1323_v37 = vor.u32 %v1322_v32, %v1321_v62  ;;  %v1223_v49 = vadd.s32 %v1222_v15, %v1212_v33  ;;  %v1315_v24 = vshll.u32 %v6295_v60, %v1309_v43 }
 0x186   :  { %v1318_v3 = vshll.u32 %v6221_v47, %v1309_v43  ;;  %v1324_v20 = vshll.u32 %v6223_v36, %v1309_v43  ;;  %v1201_v22 = vadd.s32 %v1200_v52, %v1190_v57  ;;  %v1214_v30 = vshrl.u32 %v4177_v26, 16 }
 0x187   :  { %v1302_v45 = vand.u32 8388607, %v6220_v10  ;;  %v4276_v56 = vor.u32 %v1313_v31, %v1312_v40  ;;  %v4278_v34 = vor.u32 %v1316_v2, %v1315_v24  ;;  %vm1330_vm9 = vcmp.lt.s32.totalorder %v4253_v28, 4 }
 0x188   :  { %v4280_v39 = vor.u32 %v1319_v13, %v1318_v3  ;;  %v1326_v32 = vor.u32 %v1325_v21, %v1324_v20  ;;  %v4284_v15 = vsel %vm2883_vm7, 0, %v2882_v29  ;;  %v1192_v43 = vshrl.u32 %v4186_v5, 16 }
 0x189   :  { %v1336_v52 = vsel %vm1330_vm9, %v1323_v37, 920167782  ;;  %v1467_v62 = vand.u32 2139095040, %v4251_v42  ;;  %v1073_v31 = vsub.s32 0, %v4266_v0  ;;  %v1148_v33 = vshrl.u32 %v6275_v4, %v4001_v12 }
 0x18a   :  { %v1169_v2 = vsel %vm1167_vm14, %v4057_v41, 2102212464  ;;  %v1224_v13 = vadd.s32 %v1223_v49, %v1214_v30  ;;  %vm1072_vm10 = vcmp.lt.s32.totalorder %v4266_v0, 0  ;;  %v4297_v29 = vadd.s32 %v1201_v22, %v1192_v43 }
 0x18b   :  { %vm1327_vm0 = vcmp.lt.s32.totalorder %v4253_v28, 1  ;;  %vm1329_vm4 = vcmp.lt.s32.totalorder %v4253_v28, 3  ;;  %v1303_v5 = vor.u32 8388608, %v1302_v45  ;;  %v1340_v41 = vsel %vm1330_vm9, %v1326_v32, 1326507024 }
 0x18c   :  { %v1335_v21 = vsel %vm1327_vm0, %v4276_v56, %v4278_v34  ;;  %v1337_v12 = vsel %vm1329_vm4, %v4280_v39, %v1336_v52  ;;  %v762_v57 = vmul.f32 -0.00019511016, %v4245_v48  ;;  %v1168_v40 = vsel %vm1164_vm15, %v1148_v33, %v4053_v44 }
 0x18d   :  { %v1170_v45 = vsel %vm1166_vm12, %v4055_v6, %v1169_v2  ;;  %v6296_v49 = vshll.u32 %v4177_v26, 16  ;;  %v920_v3 = vsub.s32 4294967266, %v4284_v15  ;;  %v1074_v20 = vsel %vm1072_vm10, %v1073_v31, %v4266_v0 }
 0x18e   :  { %v1228_v22 = vadd.s32 1, %v1224_v13  ;;  %vm1328_vm14 = vcmp.lt.s32.totalorder %v4253_v28, 2  ;;  %v1339_v6 = vsel %vm1327_vm0, %v4278_v34, %v4280_v39  ;;  %v1341_v26 = vsel %vm1329_vm4, %v1323_v37, %v1340_v41 }
 0x18f   :  { %v4320_v24 = vadd.s32 %v4193_v54, %v6296_v49  ;;  %v4329_v44 = vsel %vm1328_vm14, %v1335_v21, %v1337_v12  ;;  %v6297_v54 = vstv %s6188_s7  ;;  %v1171_v32 = vsel %vm1165_vm8, %v1168_v40, %v1170_v45  ;;  %s4357_s7 = sld [smem:[#allocation8 + $0x2]] }
 0x190   :  { %v294_v30 = vadd.f32 %v4227_v63, %v6297_v54  ;;  %v4344_v43 = vshll.u32 %v1303_v5, 8  ;;  %v1468_v52 = vshrl.u32 %v1467_v62, 23  ;;  %v6298_v31 = vstv %s3950_s12  ;;  %s3074_s12 = smov [#allocation10]  }
 0x191   :  { %vm1227_vm13 = vc.u32 %v4297_v29, %v4320_v24  ;;  %v456_v33 = vmul.f32 %v6298_v31, %v4233_v58  ;;  %vm610_vm15 = vcmp.eq.s32.totalorder %v4237_v25, 0  ;;  %v755_v2 = vmul.f32 -0.001358992, %v4245_v48  ;;  %s2838_s13 = sshll.u32 %s3074_s12, 4  ;;  %s2839_s13 = int_to_ptr.vmem [resolvable:$true] %s2838_s13 }
 0x192   :  { %v763_v37 = vadd.f32 0.008332121, %v762_v57  ;;  %vm609_vm12 = vcmp.lt.s32.totalorder %v4237_v25, 2  ;;  %v1075_v21 = vclz %v1074_v20  ;;  %v1229_v12 = vsel %vm1227_vm13, %v1228_v22, %v1224_v13  ;;  %v6299_v57 = vld [vmem:[#allocation21_spill] sm:$0xff] }
 0x193   :  { %v4354_v63 = vsel %vm1328_vm14, %v1339_v6, %v1341_v26  ;;  %v1369_v18 = vshrl.u32 %v4329_v44, 16  ;;  %v611_v62 = vxor.u32 2147483648, %v4241_v51  ;;  %v614_v58 = vxor.u32 2147483648, %v4235_v11 }
 0x194   :  { %v921_v5 = vadd.s32 127, %v920_v3  ;;  %v1225_v41 = vmul.u32 %v4105_v53, %v1171_v32  ;;  %v750_v40 = vsub.s32 4, %v6299_v57  ;;  %v916_v45 = vsub.s32 32, %v4284_v15 }
 0x195   :  { %v1344_v13 = vand.u32 65535, %v4344_v43  ;;  %v2901_v49 = vadd.s32 4294967169, %v1468_v52  ;;  %v756_v20 = vadd.f32 0.041655596, %v755_v2  ;;  %v764_v22 = vmul.f32 %v763_v37, %v4245_v48 }
 0x196   :  { %v4366_v6 = vadd.s32 %v1229_v12, %v1225_v41  ;;  %v1347_v26 = vshrl.u32 %v4354_v63, 16  ;;  %vm613_vm8 = vcmp.eq.s32.totalorder %v4237_v25, 2  ;;  %v900_v3 = vadd.s32 %v3941_v7, %v3926_v61 }
 0x197   :  { %v2887_v53 = vadd.s32 4294967294, %v1075_v21  ;;  %v4374_v54 = vmul.u32 %v1369_v18, %v1344_v13  ;;  %v4376_v32 = vadd.f32 %v456_v33, %v294_v30  ;;  %v612_v52 = vsel %vm610_vm15, %v4235_v11, %v611_v62 }
 0x198   :  { %v615_v31 = vsel %vm613_vm8, %v614_v58, %v4241_v51  ;;  %v922_v2 = vshll.u32 %v921_v5, 23  ;;  %v751_v37 = vsel %vm628_vm11, %v750_v40, %v6299_v57  ;;  %v918_v61 = vshrl.u32 %v900_v3, %v916_v45  ;;  %v6300_v51 = vld [vmem:[#allocation17_spill] sm:$0xff] }
 0x199   :  { %v1368_v7 = vand.u32 65535, %v4329_v44  ;;  %v1474_v21 = vadd.s32 1, %v2901_v49  ;;  %v757_v12 = vmul.f32 %v756_v20, %v4245_v48  ;;  %v765_v30 = vadd.f32 -0.16666654, %v764_v22 }
 0x19a   :  { %v1231_v33 = vadd.s32 536870912, %v4366_v6  ;;  %v4390_v11 = vmul.u32 %v1347_v26, %v1344_v13  ;;  %vm606_vm1 = vweird.f32 %v6300_v51  ;;  %v917_v62 = vshll.u32 %v4136_v50, %v4284_v15 }
 0x19b   :  { %vm2888_vm5 = vcmp.lt.s32.totalorder %v2887_v53, 0  ;;  %v1345_v58 = vshrl.u32 %v4344_v43, 16  ;;  %v1374_v5 = vshll.u32 %v4374_v54, 16  ;;  %v616_v41 = vsel %vm609_vm12, %v612_v52, %v615_v31 }
 0x19c   :  { %v618_v57 = vstv %s4357_s7  ;;  %v923_v40 = vor.u32 4788187, %v922_v2  ;;  %v1346_v45 = vand.u32 65535, %v4354_v63  ;;  %v919_v49 = vor.u32 %v918_v61, %v917_v62 }
 0x19d   :  { %v1370_v20 = vmul.u32 %v1368_v7, %v1344_v13  ;;  %v4401_v22 = vmul.u32 %v1368_v7, %v1345_v58  ;;  %vm1475_vm11 = vcmp.gt.s32.totalorder %v1474_v21, 0  ;;  %v753_v50 = vsel %vm4170_vm3, 0, %v751_v37 }
 0x19e   :  { %v4405_v15 = vsel %vm2888_vm5, 0, %v2887_v53  ;;  %v4407_v3 = vshrl.u32 %v1231_v33, 30  ;;  %v1352_v10 = vshll.u32 %v4390_v11, 16  ;;  %v758_v25 = vadd.f32 -0.4999988, %v757_v12 }
 0x19f   :  { %v766_v52 = vmul.f32 %v765_v30, %v4245_v48  ;;  %vm1378_vm6 = vc.u32 %v1370_v20, %v1374_v5  ;;  %v4411_v31 = vadd.s32 %v1374_v5, %v1370_v20  ;;  %v924_v2 = vand.u32 2147483647, %v923_v40 }
 0x1a0   :  { %6301 = vst [vmem:[#allocation16_spill] sm:$0xff] %v4407_v3  ;;  %v1348_v61 = vmul.u32 %v1346_v45, %v1344_v13  ;;  %v4413_v7 = vmul.u32 %v1346_v45, %v1345_v58  ;;  %v1476_v62 = vsel %vm1475_vm11, %v1474_v21, 0  ;;  %v770_v47 = vadd.s32 3, %v753_v50 }
 0x1a1   :  { %v926_v17 = vcvt.s32.f32 %v919_v49  ;;  %v1083_v53 = vsub.s32 4294967266, %v4405_v15  ;;  %v1376_v37 = vshll.u32 %v4401_v22, 16  ;;  %v1233_v33 = vshll.u32 %v4407_v3, 30 }
 0x1a2   :  { %vm1356_vm3 = vc.u32 %v1348_v61, %v1352_v10  ;;  %v1358_v12 = vadd.s32 %v1352_v10, %v1348_v61  ;;  %v1379_v30 = vsel %vm1378_vm6, 1, %v6276_v35  ;;  %v759_v5 = vmul.f32 %v758_v25, %v4245_v48 }
 0x1a3   :  { %v1373_v13 = vmul.u32 %v1369_v18, %v1345_v58  ;;  %vm1382_vm7 = vc.u32 %v4411_v31, %v1376_v37  ;;  %v1478_v21 = vand.u32 31, %v1476_v62  ;;  %v617_v40 = vsel %vm606_vm1, nan, %v616_v41 }
 0x1a4   :  { %v767_v45 = vadd.f32 1.0, %v766_v52  ;;  %v4427_v49 = vmul.f32 %v926_v17, %v924_v2  ;;  %v1354_v10 = vshll.u32 %v4413_v7, 16  ;;  %v1079_v20 = vsub.s32 32, %v4405_v15 }
 0x1a5   :  { %v4431_v50 = vadd.s32 127, %v1083_v53  ;;  %v1357_v48 = vsel %vm1356_vm3, 1, %v6276_v35  ;;  %v1381_v44 = vadd.s32 %v1379_v30, %v1373_v13  ;;  %v4435_v18 = vsub.s32 %v4366_v6, %v1233_v33 }
 0x1a6   :  { %v1351_v25 = vmul.u32 %v1347_v26, %v1345_v58  ;;  %vm1360_vm10 = vc.u32 %v1358_v12, %v1354_v10  ;;  %v1383_v51 = vsel %vm1382_vm7, 1, %v6276_v35  ;;  %v4440_v41 = vmul.f32 %v618_v57, %v617_v40 }
 0x1a7   :  { %v4442_v52 = vadd.f32 1.0, %v759_v5  ;;  %v4444_v2 = vand.u32 3, %v770_v47  ;;  %v4446_v61 = vsub.s32 32, %v1478_v21  ;;  %v4451_v17 = vmul.f32 %v767_v45, %v4221_v8 }
 0x1a8   :  { %v1063_v63 = vadd.s32 %v4125_v38, %v4110_v46  ;;  %v1359_v26 = vadd.s32 %v1357_v48, %v1351_v25  ;;  %v1361_v57 = vsel %vm1360_vm10, 1, %v6276_v35  ;;  %v1385_v53 = vadd.s32 %v1383_v51, %v1381_v44  ;;  %v6303_v51 = vld [vmem:[#allocation19_spill] sm:$0xff] }
 0x1a9   :  { %v6225_v47 = vand.u32 2147483647, %v4251_v42  ;;  %v1080_v33 = vshll.u32 %v4266_v0, %v4405_v15  ;;  %v1085_v8 = vshll.u32 %v4431_v50, 23  ;;  %vm1235_vm13 = vcmp.lt.s32.totalorder %v4435_v18, 0 }
 0x1aa   :  { %v1081_v12 = vshrl.u32 %v1063_v63, %v1079_v20  ;;  %v1236_v30 = vsub.s32 0, %v4435_v18  ;;  %v1375_v46 = vshrl.u32 %v4374_v54, 16  ;;  %v1493_v38 = vshll.u32 %v6223_v36, %v1478_v21 }
 0x1ab   :  { %v1494_v5 = vshrl.u32 %v6284_v59, %v4446_v61  ;;  %v1363_v13 = vadd.s32 %v1361_v57, %v1359_v26  ;;  %v4468_v40 = vshrl.u32 %v1476_v62, 5  ;;  %v1490_v0 = vshll.u32 %v6283_v16, %v1478_v21 }
 0x1ac   :  { %v1491_v15 = vshrl.u32 %v6223_v36, %v4446_v61  ;;  %v1353_v45 = vshrl.u32 %v4390_v11, 16  ;;  %v1377_v10 = vshrl.u32 %v4401_v22, 16  ;;  %v1386_v20 = vadd.s32 %v1385_v53, %v1375_v46 }
 0x1ad   :  { %v1623_v54 = vmul.f32 17.782795, %v4199_v14  ;;  %v1484_v50 = vshll.u32 %v6295_v60, %v1478_v21  ;;  %v6302_v48 = vmov 2131351028   ;;  %v1488_v25 = vshrl.u32 %v6283_v16, %v4446_v61 }
 0x1ae   :  { %v1485_v44 = vshrl.u32 %v6302_v48, %v4446_v61  ;;  %v1487_v62 = vshll.u32 %v6302_v48, %v1478_v21  ;;  %vm808_vm15 = vcmp.lt.s32.totalorder %v6303_v51, 0  ;;  %v1481_v63 = vshll.u32 %v6275_v4, %v1478_v21 }
 0x1af   :  { %v1482_v11 = vshrl.u32 %v6295_v60, %v4446_v61  ;;  %v1495_v26 = vor.u32 %v1494_v5, %v1493_v38  ;;  %v1625_v57 = vstv %s4448_s5  ;;  %v1364_v53 = vadd.s32 %v1363_v13, %v1353_v45 }
 0x1b0   :  { %v1471_v46 = vand.u32 8388607, %v6225_v47  ;;  %v1492_v36 = vor.u32 %v1491_v15, %v1490_v0  ;;  %vm1499_vm12 = vcmp.lt.s32.totalorder %v4468_v40, 4  ;;  %v1237_v6 = vsel %vm1235_vm13, %v1236_v30, %v4435_v18 }
 0x1b1   :  { %v1311_v58 = vshrl.u32 %v6275_v4, %v4216_v19  ;;  %v1332_v21 = vsel %vm1330_vm9, %v4280_v39, 2102212464  ;;  %v1355_v38 = vshrl.u32 %v4413_v7, 16  ;;  %v6304_v5 = vand.u32 2147483647, %v6303_v51 }
 0x1b2   :  { %v1387_v0 = vadd.s32 %v1386_v20, %v1377_v10  ;;  %v4505_v15 = vor.u32 %v1485_v44, %v1484_v50  ;;  %v4507_v45 = vor.u32 %v1488_v25, %v1487_v62  ;;  %v4509_v30 = vadd.f32 %v1625_v57, %v1623_v54 }
 0x1b3   :  { %vm4501_vm8 = vcmp.le.f32.partialorder %v6304_v5, 0.7853982  ;;  %v4511_v19 = vor.u32 %v1482_v11, %v1481_v63  ;;  %vm1496_vm1 = vcmp.lt.s32.totalorder %v4468_v40, 1  ;;  %vm1498_vm9 = vcmp.lt.s32.totalorder %v4468_v40, 3 }
 0x1b4   :  { %6307 = vst [vmem:[#allocation21_spill] sm:$0xff] %v4509_v30  ;;  %v1509_v39 = vsel %vm1499_vm12, %v1495_v26, 1326507024  ;;  %v1238_v7 = vclz %v1237_v6  ;;  %v4517_v5 = vadd.s32 %v1364_v53, %v1355_v38  ;;  %v1472_v47 = vor.u32 8388608, %v1471_v46 }
 0x1b5   :  { %v1505_v10 = vsel %vm1499_vm12, %v1492_v36, 920167782  ;;  %v1086_v20 = vor.u32 4788187, %v1085_v8  ;;  %v1331_v54 = vsel %vm1327_vm0, %v1311_v58, %v4276_v56  ;;  %v1333_v50 = vsel %vm1329_vm4, %v4278_v34, %v1332_v21  ;;  %v6312_v21 = vld [vmem:[#allocation20_spill] sm:$0xff] }
 0x1b6   :  { %6308 = vst [vmem:[#allocation17_spill] sm:$0xff] %v4517_v5  ;;  %v4530_v44 = vadd.s32 %v4411_v31, %v1376_v37  ;;  %vm1497_vm5 = vcmp.lt.s32.totalorder %v4468_v40, 2  ;;  %v1508_v6 = vsel %vm1496_vm1, %v4505_v15, %v4507_v45  ;;  %v1510_v8 = vsel %vm1498_vm9, %v1492_v36, %v1509_v39 }
 0x1b7   :  { %v1630_v56 = vand.u32 2139095040, %v4509_v30  ;;  %v1082_v58 = vor.u32 %v1081_v12, %v1080_v33  ;;  %v1391_v62 = vadd.s32 1, %v1387_v0  ;;  %v1504_v34 = vsel %vm1496_vm1, %v4511_v19, %v4505_v15 }
 0x1b8   :  { %6309 = vst [vmem:[#allocation19_spill] sm:$0xff] %v4530_v44  ;;  %v1506_v22 = vsel %vm1498_vm9, %v4507_v45, %v1505_v10  ;;  %v6310_v31 = vxor.u32 2147483648, %v4427_v49  ;;  %v2892_v36 = vadd.s32 4294967294, %v1238_v7  ;;  %vm1390_vm0 = vc.u32 %v4517_v5, %v4530_v44 }
 0x1b9   :  { %v4554_v33 = vshll.u32 %v1472_v47, 8  ;;  %v4558_v12 = vadd.f32 %v4440_v41, %v4376_v32  ;;  %v1087_v25 = vand.u32 2147483647, %v1086_v20  ;;  %v1334_v63 = vsel %vm1328_vm14, %v1331_v54, %v1333_v50 }
 0x1ba   :  { %v929_v37 = vsel %vm808_vm15, %v6310_v31, %v4427_v49  ;;  %v4564_v11 = vsel %vm1497_vm5, %v1508_v6, %v1510_v8  ;;  %v777_v49 = vxor.u32 2147483648, %v4442_v52  ;;  %v6311_v26 = vsub.s32 4, %v4066_v23 }
 0x1bb   :  { %v4574_v32 = vsel %vm1497_vm5, %v1504_v34, %v1506_v22  ;;  %v1631_v41 = vshrl.u32 %v1630_v56, 23  ;;  %v774_v28 = vxor.u32 2147483648, %v4451_v17  ;;  %v4582_v57 = vsel %vm4501_vm8, %v6303_v51, %v929_v37 }
 0x1bc   :  { %v931_v47 = vsel %vm808_vm15, %v6311_v26, %v4066_v23  ;;  %v1089_v53 = vcvt.s32.f32 %v1082_v58  ;;  %v1392_v46 = vsel %vm1390_vm0, %v1391_v62, %v1387_v0  ;;  %vm971_vm4 = vcmp.lt.s32.totalorder %v6312_v21, 0 }
 0x1bd   :  { %vm2893_vm14 = vcmp.lt.s32.totalorder %v2892_v36, 0  ;;  %v1388_v23 = vmul.u32 %v4344_v43, %v1334_v63  ;;  %v1513_v38 = vand.u32 65535, %v4554_v33  ;;  %v1516_v39 = vshrl.u32 %v4564_v11, 16 }
 0x1be   :  { %vm776_vm11 = vcmp.eq.s32.totalorder %v4444_v2, 2  ;;  %v1090_v7 = vmul.f32 %v1089_v53, %v1087_v25  ;;  %v1538_v10 = vshrl.u32 %v4574_v32, 16  ;;  %v2906_v20 = vadd.s32 4294967169, %v1631_v41 }
 0x1bf   :  { %vm769_vm6 = vweird.f32 %v6288_v27  ;;  %vm772_vm3 = vcmp.lt.s32.totalorder %v4444_v2, 2  ;;  %vm773_vm7 = vcmp.eq.s32.totalorder %v4444_v2, 0  ;;  %v778_v0 = vsel %vm776_vm11, %v777_v49, %v4451_v17 }
 0x1c0   :  { %v4594_v54 = vadd.s32 %v1392_v46, %v1388_v23  ;;  %v933_v43 = vsel %vm4501_vm8, 0, %v931_v47  ;;  %v4600_v50 = vmul.f32 %v4582_v57, %v4582_v57  ;;  %v6313_v6 = vand.u32 2147483647, %v6312_v21 }
 0x1c1   :  { %v4609_v56 = vsel %vm2893_vm14, 0, %v2892_v36  ;;  %v1637_v17 = vadd.s32 1, %v2906_v20  ;;  %v775_v58 = vsel %vm773_vm7, %v4442_v52, %v774_v28  ;;  %v1514_v13 = vshrl.u32 %v4554_v33, 16 }
 0x1c2   :  { %vm4604_vm10 = vcmp.le.f32.partialorder %v6313_v6, 0.7853982  ;;  %v1515_v62 = vand.u32 65535, %v4564_v11  ;;  %v4614_v34 = vmul.u32 %v1516_v39, %v1513_v38  ;;  %v1091_v22 = vxor.u32 2147483648, %v1090_v7 }
 0x1c3   :  { %v1537_v31 = vand.u32 65535, %v4574_v32  ;;  %v4617_v37 = vmul.u32 %v1538_v10, %v1513_v38  ;;  %vm1638_vm13 = vcmp.gt.s32.totalorder %v1637_v17, 0  ;;  %v950_v25 = vadd.s32 3, %v933_v43 }
 0x1c4   :  { %v1246_v63 = vsub.s32 4294967266, %v4609_v56  ;;  %v1394_v36 = vadd.s32 536870912, %v4594_v54  ;;  %v1639_v49 = vsel %vm1638_vm13, %v1637_v17, 0  ;;  %v779_v52 = vsel %vm772_vm3, %v775_v58, %v778_v0 }
 0x1c5   :  { %v942_v11 = vmul.f32 -0.00019511016, %v4600_v50  ;;  %v1641_v47 = vand.u32 31, %v1639_v49  ;;  %v1242_v41 = vsub.s32 32, %v4609_v56  ;;  %v1517_v28 = vmul.u32 %v1515_v62, %v1513_v38 }
 0x1c6   :  { %v4626_v32 = vmul.u32 %v1515_v62, %v1514_v13  ;;  %v1521_v53 = vshll.u32 %v4614_v34, 16  ;;  %v1092_v46 = vsel %vm971_vm4, %v1091_v22, %v1090_v7  ;;  %v1539_v23 = vmul.u32 %v1537_v31, %v1513_v38 }
 0x1c7   :  { %v4631_v20 = vmul.u32 %v1537_v31, %v1514_v13  ;;  %v1543_v2 = vshll.u32 %v4617_v37, 16  ;;  %v4634_v0 = vand.u32 3, %v950_v25  ;;  %v1226_v43 = vadd.s32 %v4320_v24, %v4297_v29 }
 0x1c8   :  { %v1247_v6 = vadd.s32 127, %v1246_v63  ;;  %v4638_v17 = vshrl.u32 %v1394_v36, 30  ;;  %v4642_v58 = vsel %vm769_vm6, nan, %v779_v52  ;;  %v4645_v62 = vmul.f32 -0.001358992, %v4600_v50 }
 0x1c9   :  { %v4647_v38 = vadd.f32 0.008332121, %v942_v11  ;;  %v4649_v7 = vsub.s32 32, %v1641_v47  ;;  %v4654_v22 = vsel %vm4604_vm10, %v6312_v21, %v1092_v46  ;;  %v1244_v29 = vshrl.u32 %v1226_v43, %v1242_v41 }
 0x1ca   :  { %6316 = vst [vmem:[#allocation20_spill] sm:$0xff] %v4638_v17  ;;  %v1523_v24 = vshll.u32 %v4626_v32, 16  ;;  %vm1525_vm15 = vc.u32 %v1517_v28, %v1521_v53  ;;  %v1527_v31 = vadd.s32 %v1521_v53, %v1517_v28  ;;  %v6230_v27 = vshll.u32 %v4631_v20, 16 }
 0x1cb   :  { %vm1547_vm8 = vc.u32 %v1539_v23, %v1543_v2  ;;  %v4658_v25 = vadd.s32 %v1543_v2, %v1539_v23  ;;  %v1248_v63 = vshll.u32 %v1247_v6, 23  ;;  %v1396_v36 = vshll.u32 %v4638_v17, 30 }
 0x1cc   :  { %v1520_v52 = vmul.u32 %v1516_v39, %v1514_v13  ;;  %v1526_v26 = vsel %vm1525_vm15, 1, %v6276_v35  ;;  %v1542_v46 = vmul.u32 %v1538_v10, %v1514_v13  ;;  %v1653_v41 = vshll.u32 %v6283_v16, %v1641_v47 }
 0x1cd   :  { %v6317_v43 = vmov 920167782   ;;  %v1548_v28 = vsel %vm1547_vm8, 1, %v6276_v35  ;;  %v4667_v53 = vshrl.u32 %v1639_v49, 5  ;;  %v1657_v2 = vshrl.u32 %v6284_v59, %v4649_v7 }
 0x1ce   :  { %v1654_v42 = vshrl.u32 %v6317_v43, %v4649_v7  ;;  %v1656_v23 = vshll.u32 %v6317_v43, %v1641_v47  ;;  %vm4672_vm0 = vc.u32 %v1527_v31, %v1523_v24  ;;  %vm1551_vm14 = vc.u32 %v4658_v25, %v6230_v27 }
 0x1cf   :  { %v1644_v10 = vshll.u32 %v6275_v4, %v1641_v47  ;;  %v1647_v13 = vshll.u32 %v6295_v60, %v1641_v47  ;;  %v1645_v49 = vshrl.u32 %v6295_v60, %v4649_v7  ;;  %v1648_v6 = vshrl.u32 %v6302_v48, %v4649_v7 }
 0x1d0   :  { %v1650_v11 = vshll.u32 %v6302_v48, %v1641_v47  ;;  %v1651_v24 = vshrl.u32 %v6283_v16, %v4649_v7  ;;  %v1243_v31 = vshll.u32 %v4435_v18, %v4609_v56  ;;  %v1528_v17 = vadd.s32 %v1526_v26, %v1520_v52 }
 0x1d1   :  { %v1550_v27 = vadd.s32 %v1548_v28, %v1542_v46  ;;  %v1655_v55 = vor.u32 %v1654_v42, %v1653_v41  ;;  %v1552_v59 = vsel %vm1551_vm14, 1, %v6276_v35  ;;  %v6320_v43 = vand.u32 2147483647, %v4509_v30 }
 0x1d2   :  { %v1658_v60 = vor.u32 %v1657_v2, %v1656_v23  ;;  %vm1662_vm11 = vcmp.lt.s32.totalorder %v4667_v53, 4  ;;  %v1245_v44 = vor.u32 %v1244_v29, %v1243_v31  ;;  %v1249_v5 = vor.u32 4788187, %v1248_v63 }
 0x1d3   :  { %v1634_v3 = vand.u32 8388607, %v6320_v43  ;;  %v4695_v47 = vsub.s32 %v4594_v54, %v1396_v36  ;;  %v1530_v18 = vsel %vm4672_vm0, 1, %v6276_v35  ;;  %v1544_v56 = vshrl.u32 %v4617_v37, 16 }
 0x1d4   :  { %v4701_v42 = vor.u32 %v1645_v49, %v1644_v10  ;;  %v4703_v26 = vor.u32 %v1648_v6, %v1647_v13  ;;  %v4705_v52 = vor.u32 %v1651_v24, %v1650_v11  ;;  %v1554_v46 = vadd.s32 %v1552_v59, %v1550_v27 }
 0x1d5   :  { %vm1659_vm6 = vcmp.lt.s32.totalorder %v4667_v53, 1  ;;  %vm1661_vm3 = vcmp.lt.s32.totalorder %v4667_v53, 3  ;;  %v1668_v54 = vsel %vm1662_vm11, %v1655_v55, 920167782  ;;  %v1522_v29 = vshrl.u32 %v4614_v34, 16 }
 0x1d6   :  { %v1532_v63 = vadd.s32 %v1530_v18, %v1528_v17  ;;  %v1635_v37 = vor.u32 8388608, %v1634_v3  ;;  %v1672_v36 = vsel %vm1662_vm11, %v1658_v60, 1326507024  ;;  %v1250_v41 = vand.u32 2147483647, %v1249_v5 }
 0x1d7   :  { %v1252_v11 = vcvt.s32.f32 %v1245_v44  ;;  %v1480_v59 = vshrl.u32 %v6275_v4, %v4446_v61  ;;  %v1501_v27 = vsel %vm1499_vm12, %v4507_v45, 2102212464  ;;  %v1399_v43 = vsub.s32 0, %v4695_v47 }
 0x1d8   :  { %vm1660_vm7 = vcmp.lt.s32.totalorder %v4667_v53, 2  ;;  %v1667_v3 = vsel %vm1659_vm6, %v4701_v42, %v4703_v26  ;;  %v1669_v60 = vsel %vm1661_vm3, %v4705_v52, %v1668_v54  ;;  %v1546_v5 = vshrl.u32 %v4631_v20, 16 }
 0x1d9   :  { %v1555_v61 = vadd.s32 %v1554_v46, %v1544_v56  ;;  %v1671_v45 = vsel %vm1659_vm6, %v4703_v26, %v4705_v52  ;;  %v1673_v44 = vsel %vm1661_vm3, %v1655_v55, %v1672_v36  ;;  %vm1398_vm12 = vcmp.lt.s32.totalorder %v4695_v47, 0 }
 0x1da   :  { %v1524_v34 = vshrl.u32 %v4626_v32, 16  ;;  %v1533_v17 = vadd.s32 %v1532_v63, %v1522_v29  ;;  %v4739_v28 = vshll.u32 %v1635_v37, 8  ;;  %v936_v23 = vadd.f32 0.041655596, %v4645_v62 }
 0x1db   :  { %v944_v2 = vmul.f32 %v4647_v38, %v4600_v50  ;;  %v4746_v39 = vmul.f32 %v4654_v22, %v4654_v22  ;;  %v4750_v55 = vsel %vm1660_vm7, %v1667_v3, %v1669_v60  ;;  %v1253_v10 = vmul.f32 %v1252_v11, %v1250_v41 }
 0x1dc   :  { %v1500_v32 = vsel %vm1496_vm1, %v1480_v59, %v4511_v19  ;;  %v4757_v62 = vsel %vm1660_vm7, %v1671_v45, %v1673_v44  ;;  %v1786_v13 = vmul.f32 3.1622777, %v4199_v14  ;;  %v1400_v38 = vsel %vm1398_vm12, %v1399_v43, %v4695_v47 }
 0x1dd   :  { %v1502_v49 = vsel %vm1498_vm9, %v4505_v15, %v1501_v27  ;;  %v1556_v6 = vadd.s32 %v1555_v61, %v1546_v5  ;;  %v1788_v24 = vstv %s4711_s6  ;;  %v4765_v31 = vadd.s32 %v1533_v17, %v1524_v34 }
 0x1de   :  { %v6321_v18 = vshll.u32 %v4631_v20, 16  ;;  %v1676_v56 = vand.u32 65535, %v4739_v28  ;;  %v1701_v46 = vshrl.u32 %v4750_v55, 16  ;;  %v6322_v54 = vstv %s4576_s18 }
 0x1df   :  { %v4777_v29 = vmul.f32 %v6322_v54, %v4642_v58  ;;  %v937_v63 = vmul.f32 %v936_v23, %v4600_v50  ;;  %v1093_v15 = vsub.s32 4, %v4212_v9  ;;  %v1679_v37 = vshrl.u32 %v4757_v62, 16 }
 0x1e0   :  { %v4770_v19 = vadd.s32 %v4658_v25, %v6321_v18  ;;  %v945_v36 = vadd.f32 -0.16666654, %v944_v2  ;;  %v1098_v20 = vmul.f32 -0.001358992, %v4746_v39  ;;  %v1105_v25 = vmul.f32 -0.00019511016, %v4746_v39 }
 0x1e1   :  { %v4784_v41 = vadd.f32 %v1788_v24, %v1786_v13  ;;  %v1254_v11 = vxor.u32 2147483648, %v1253_v10  ;;  %v1401_v59 = vclz %v1400_v38  ;;  %v1503_v27 = vsel %vm1497_vm5, %v1500_v32, %v1502_v49 }
 0x1e2   :  { %v1560_v58 = vadd.s32 1, %v1556_v6  ;;  %vm1559_vm1 = vc.u32 %v4765_v31, %v4770_v19  ;;  %v1677_v43 = vshrl.u32 %v4739_v28, 16  ;;  %v1700_v3 = vand.u32 65535, %v4750_v55 }
 0x1e3   :  { %6323 = vst [vmem:[#allocation23_spill] sm:$0xff] %v4784_v41  ;;  %v4792_v60 = vmul.u32 %v1701_v46, %v1676_v56  ;;  %v938_v5 = vadd.f32 -0.4999988, %v937_v63  ;;  %vm1134_vm9 = vcmp.lt.s32.totalorder %v3898_v1, 0  ;;  %v1678_v61 = vand.u32 65535, %v4757_v62 }
 0x1e4   :  { %v4796_v45 = vmul.u32 %v1679_v37, %v1676_v56  ;;  %v946_v40 = vmul.f32 %v945_v36, %v4600_v50  ;;  %v1094_v44 = vsel %vm971_vm4, %v1093_v15, %v4212_v9  ;;  %v1557_v34 = vmul.u32 %v4554_v33, %v1503_v27 }
 0x1e5   :  { %v1793_v17 = vand.u32 2139095040, %v4784_v41  ;;  %v1099_v23 = vadd.f32 0.041655596, %v1098_v20  ;;  %v1255_v2 = vsel %vm1134_vm9, %v1254_v11, %v1253_v10  ;;  %v2897_v55 = vadd.s32 4294967294, %v1401_v59 }
 0x1e6   :  { %v1561_v32 = vsel %vm1559_vm1, %v1560_v58, %v1556_v6  ;;  %v1106_v13 = vadd.f32 0.008332121, %v1105_v25  ;;  %v1702_v62 = vmul.u32 %v1700_v3, %v1676_v56  ;;  %v4806_v38 = vmul.u32 %v1700_v3, %v1677_v43 }
 0x1e7   :  { %v1706_v49 = vshll.u32 %v4792_v60, 16  ;;  %v6324_v24 = vand.u32 2147483647, %v3898_v1  ;;  %v1680_v33 = vmul.u32 %v1678_v61, %v1676_v56  ;;  %v4815_v18 = vmul.u32 %v1678_v61, %v1677_v43 }
 0x1e8   :  { %v1684_v54 = vshll.u32 %v4796_v45, 16  ;;  %v1096_v10 = vsel %vm4604_vm10, 0, %v1094_v44  ;;  %v4825_v63 = vadd.s32 %v1561_v32, %v1557_v34  ;;  %v1794_v15 = vshrl.u32 %v1793_v17, 23 }
 0x1e9   :  { %vm4811_vm5 = vcmp.le.f32.partialorder %v6324_v24, 0.7853982  ;;  %v939_v36 = vmul.f32 %v938_v5, %v4600_v50  ;;  %v947_v20 = vadd.f32 1.0, %v946_v40  ;;  %v1100_v56 = vmul.f32 %v1099_v23, %v4746_v39 }
 0x1ea   :  { %v4823_v6 = vsel %vm4811_vm5, %v3898_v1, %v1255_v2  ;;  %vm2898_vm4 = vcmp.lt.s32.totalorder %v2897_v55, 0  ;;  %v1107_v25 = vmul.f32 %v1106_v13, %v4746_v39  ;;  %v1708_v11 = vshll.u32 %v4806_v38, 16 }
 0x1eb   :  { %vm1710_vm13 = vc.u32 %v1702_v62, %v1706_v49  ;;  %v4831_v8 = vadd.s32 %v1706_v49, %v1702_v62  ;;  %v4835_v59 = vmul.f32 %v4823_v6, %v4823_v6  ;;  %v1686_v27 = vshll.u32 %v4815_v18, 16 }
 0x1ec   :  { %vm1688_vm10 = vc.u32 %v1680_v33, %v1684_v54  ;;  %v1690_v58 = vadd.s32 %v1684_v54, %v1680_v33  ;;  %v4838_v50 = vsel %vm2898_vm4, 0, %v2897_v55  ;;  %v1563_v3 = vadd.s32 536870912, %v4825_v63 }
 0x1ed   :  { %v1705_v5 = vmul.u32 %v1701_v46, %v1677_v43  ;;  %v2911_v61 = vadd.s32 4294967169, %v1794_v15  ;;  %v940_v40 = vadd.f32 1.0, %v939_v36  ;;  %v948_v44 = vmul.f32 %v947_v20, %v4582_v57 }
 0x1ee   :  { %v1683_v34 = vmul.u32 %v1679_v37, %v1677_v43  ;;  %v1711_v17 = vsel %vm1710_vm13, 1, %v6276_v35  ;;  %v1101_v23 = vadd.f32 -0.4999988, %v1100_v56  ;;  %v1108_v2 = vadd.f32 -0.16666654, %v1107_v25 }
 0x1ef   :  { %v1689_v32 = vsel %vm1688_vm10, 1, %v6276_v35  ;;  %vm1714_vm15 = vc.u32 %v4831_v8, %v1708_v11  ;;  %v1113_v55 = vadd.s32 3, %v1096_v10  ;;  %v1268_v46 = vmul.f32 -0.00019511016, %v4835_v59 }
 0x1f0   :  { %v1409_v13 = vsub.s32 4294967266, %v4838_v50  ;;  %vm1692_vm8 = vc.u32 %v1690_v58, %v1686_v27  ;;  %vm952_vm0 = vcmp.lt.s32.totalorder %v4634_v0, 2  ;;  %vm953_vm14 = vcmp.eq.s32.totalorder %v4634_v0, 0 }
 0x1f1   :  { %v4853_v57 = vshrl.u32 %v1563_v3, 30  ;;  %v1713_v37 = vadd.s32 %v1711_v17, %v1705_v5  ;;  %v1800_v43 = vadd.s32 1, %v2911_v61  ;;  %vm956_vm12 = vcmp.eq.s32.totalorder %v4634_v0, 2 }
 0x1f2   :  { %v957_v62 = vxor.u32 2147483648, %v940_v40  ;;  %v1691_v49 = vadd.s32 %v1689_v32, %v1683_v34  ;;  %v1715_v24 = vsel %vm1714_vm15, 1, %v6276_v35  ;;  %v954_v33 = vxor.u32 2147483648, %v948_v44  ;;  %v6328_v32 = vld [vmem:[#allocation19_spill] sm:$0xff] }
 0x1f3   :  { %v1102_v54 = vmul.f32 %v1101_v23, %v4746_v39  ;;  %v1109_v10 = vmul.f32 %v1108_v2, %v4746_v39  ;;  %v1693_v15 = vsel %vm1692_vm8, 1, %v6276_v35  ;;  %v4862_v36 = vadd.f32 %v4777_v29, %v4558_v12  ;;  %v6327_v2 = vld [vmem:[#allocation17_spill] sm:$0xff] }
 0x1f4   :  { %v4864_v20 = vand.u32 3, %v1113_v55  ;;  %v1269_v56 = vadd.f32 0.008332121, %v1268_v46  ;;  %v1410_v25 = vadd.s32 127, %v1409_v13  ;;  %v1565_v27 = vshll.u32 %v4853_v57, 30 }
 0x1f5   :  { %v1707_v58 = vshrl.u32 %v4792_v60, 16  ;;  %v1717_v3 = vadd.s32 %v1715_v24, %v1713_v37  ;;  %vm1801_vm1 = vcmp.gt.s32.totalorder %v1800_v43, 0  ;;  %v961_v5 = vstv %s4841_s19 }
 0x1f6   :  { %v1405_v61 = vsub.s32 32, %v4838_v50  ;;  %v1685_v39 = vshrl.u32 %v4796_v45, 16  ;;  %v1695_v34 = vadd.s32 %v1693_v15, %v1691_v49  ;;  %vm949_vm4 = vweird.f32 %v6303_v51 }
 0x1f7   :  { %v955_v12 = vsel %vm953_vm14, %v940_v40, %v954_v33  ;;  %v958_v29 = vsel %vm956_vm12, %v957_v62, %v948_v44  ;;  %v4876_v17 = vadd.f32 1.0, %v1102_v54  ;;  %v1110_v23 = vadd.f32 1.0, %v1109_v10 }
 0x1f8   :  { %vm1119_vm13 = vcmp.eq.s32.totalorder %v4864_v20, 2  ;;  %v1261_v60 = vmul.f32 -0.001358992, %v4835_v59  ;;  %v1389_v55 = vadd.s32 %v6328_v32, %v6327_v2  ;;  %v1411_v45 = vshll.u32 %v1410_v25, 23 }
 0x1f9   :  { %v1802_v46 = vsel %vm1801_vm1, %v1800_v43, 0  ;;  %v1270_v13 = vmul.f32 %v1269_v56, %v4835_v59  ;;  %v4886_v40 = vsub.s32 %v4825_v63, %v1565_v27  ;;  %v1709_v44 = vshrl.u32 %v4806_v38, 16  ;;  %v6329_v63 = vld [vmem:[#allocation16_spill] sm:$0xff] }
 0x1fa   :  { %v1718_v37 = vadd.s32 %v1717_v3, %v1707_v58  ;;  %v959_v62 = vsel %vm952_vm0, %v955_v12, %v958_v29  ;;  %v1407_v49 = vshrl.u32 %v1389_v55, %v1405_v61  ;;  %v1687_v24 = vshrl.u32 %v4815_v18, 16 }
 0x1fb   :  { %v1696_v33 = vadd.s32 %v1695_v34, %v1685_v39  ;;  %v1111_v54 = vmul.f32 %v1110_v23, %v4654_v22  ;;  %v1120_v43 = vxor.u32 2147483648, %v4876_v17  ;;  %v1643_v10 = vshrl.u32 %v6275_v4, %v4649_v7 }
 0x1fc   :  { %v1804_v15 = vand.u32 31, %v1802_v46  ;;  %v1256_v56 = vsub.s32 4, %v6329_v63  ;;  %v1406_v25 = vshll.u32 %v4695_v47, %v4838_v50  ;;  %v1412_v27 = vor.u32 4788187, %v1411_v45 }
 0x1fd   :  { %v1664_v0 = vsel %vm1662_vm11, %v4705_v52, 2102212464  ;;  %v1262_v18 = vadd.f32 0.041655596, %v1261_v60  ;;  %v1271_v58 = vadd.f32 -0.16666654, %v1270_v13  ;;  %v1719_v3 = vadd.s32 %v1718_v37, %v1709_v44 }
 0x1fe   :  { %v1568_v22 = vsub.s32 0, %v4886_v40  ;;  %vm1116_vm10 = vcmp.eq.s32.totalorder %v4864_v20, 0  ;;  %v1408_v7 = vor.u32 %v1407_v49, %v1406_v25  ;;  %vm1567_vm15 = vcmp.lt.s32.totalorder %v4886_v40, 0  ;;  %v6333_v37 = vld [vmem:[#allocation22_spill] sm:$0xff] }
 0x1ff   :  { %v4905_v61 = vadd.s32 %v1696_v33, %v1687_v24  ;;  %v4910_v47 = vadd.s32 %v4831_v8, %v1708_v11  ;;  %v1663_v52 = vsel %vm1659_vm6, %v1643_v10, %v4701_v42  ;;  %v1665_v50 = vsel %vm1661_vm3, %v4703_v26, %v1664_v0 }
 0x200   :  { %v4918_v39 = vsub.s32 32, %v1804_v15  ;;  %v1949_v34 = vmul.f32 0.56234133, %v4199_v14  ;;  %v4923_v12 = vsel %vm949_vm4, nan, %v959_v62  ;;  %v1117_v38 = vxor.u32 2147483648, %v1111_v54 }
 0x201   :  { %v1413_v29 = vand.u32 2147483647, %v1412_v27  ;;  %v1951_v11 = vstv %s4882_s20  ;;  %v1121_v8 = vsel %vm1119_vm13, %v1120_v43, %v1111_v54  ;;  %v1257_v42 = vsel %vm1134_vm9, %v1256_v56, %v6329_v63 }
 0x202   :  { %v1569_v26 = vsel %vm1567_vm15, %v1568_v22, %v4886_v40  ;;  %v1723_v23 = vadd.s32 1, %v1719_v3  ;;  %v1263_v60 = vmul.f32 %v1262_v18, %v4835_v59  ;;  %v1415_v14 = vcvt.s32.f32 %v1408_v7 }
 0x203   :  { %v1666_v51 = vsel %vm1660_vm7, %v1663_v52, %v1665_v50  ;;  %vm1722_vm11 = vc.u32 %v4905_v61, %v4910_v47  ;;  %vm1115_vm6 = vcmp.lt.s32.totalorder %v4864_v20, 2  ;;  %v1272_v2 = vmul.f32 %v1271_v58, %v4835_v59 }
 0x204   :  { %v6330_v32 = vmov 920167782   ;;  %v6331_v45 = vmov 1326507024   ;;  %v4942_v44 = vadd.f32 %v1951_v11, %v1949_v34  ;;  %vm1297_vm3 = vcmp.lt.s32.totalorder %v6333_v37, 0 }
 0x205   :  { %v1819_v55 = vshll.u32 %v6330_v32, %v1804_v15  ;;  %v1820_v13 = vshrl.u32 %v6331_v45, %v4918_v39  ;;  %v1416_v62 = vmul.f32 %v1415_v14, %v1413_v29  ;;  %v1570_v49 = vclz %v1569_v26 }
 0x206   :  { %6332 = vst [vmem:[#allocation17_spill] sm:$0xff] %v4942_v44  ;;  %v6240_v53 = vand.u32 2147483647, %v4784_v41  ;;  %v4946_v24 = vshrl.u32 %v1802_v46, 5  ;;  %v1720_v33 = vmul.u32 %v4739_v28, %v1666_v51  ;;  %v1724_v54 = vsel %vm1722_vm11, %v1723_v23, %v1719_v3 }
 0x207   :  { %v6334_v43 = vmov 2475754826   ;;  %v1813_v63 = vshll.u32 %v6302_v48, %v1804_v15  ;;  %v1811_v56 = vshrl.u32 %v6302_v48, %v4918_v39  ;;  %v1814_v25 = vshrl.u32 %v6283_v16, %v4918_v39 }
 0x208   :  { %v1810_v10 = vshll.u32 %v6334_v43, %v1804_v15  ;;  %v1816_v27 = vshll.u32 %v6283_v16, %v1804_v15  ;;  %v1817_v0 = vshrl.u32 %v6330_v32, %v4918_v39  ;;  %v1118_v28 = vsel %vm1116_vm10, %v4876_v17, %v1117_v38 }
 0x209   :  { %v1259_v46 = vsel %vm4811_vm5, 0, %v1257_v42  ;;  %v6335_v18 = vand.u32 2147483647, %v6333_v37  ;;  %v1821_v22 = vor.u32 %v1820_v13, %v1819_v55  ;;  %v1956_v3 = vand.u32 2139095040, %v4942_v44 }
 0x20a   :  { %vm1112_vm9 = vweird.f32 %v6312_v21  ;;  %v1264_v7 = vadd.f32 -0.4999988, %v1263_v60  ;;  %v2902_v52 = vadd.s32 4294967294, %v1570_v49  ;;  %v1797_v50 = vand.u32 8388607, %v6240_v53 }
 0x20b   :  { %vm4967_vm7 = vcmp.le.f32.partialorder %v6335_v18, 0.7853982  ;;  %vm1825_vm8 = vcmp.lt.s32.totalorder %v4946_v24, 4  ;;  %v1417_v9 = vxor.u32 2147483648, %v1416_v62  ;;  %v4976_v17 = vadd.s32 %v1724_v54, %v1720_v33 }
 0x20c   :  { %v1807_v34 = vshll.u32 %v6275_v4, %v1804_v15  ;;  %v1808_v38 = vshrl.u32 %v6334_v43, %v4918_v39  ;;  %v1273_v29 = vadd.f32 1.0, %v1272_v2  ;;  %v4981_v11 = vor.u32 %v1811_v56, %v1810_v10 }
 0x20d   :  { %v4983_v42 = vor.u32 %v1814_v25, %v1813_v63  ;;  %v1818_v26 = vor.u32 %v1817_v0, %v1816_v27  ;;  %vm1822_vm5 = vcmp.lt.s32.totalorder %v4946_v24, 1  ;;  %vm1824_vm0 = vcmp.lt.s32.totalorder %v4946_v24, 3 }
 0x20e   :  { %v1835_v23 = vsel %vm1825_vm8, %v1821_v22, 1326507024  ;;  %v1957_v60 = vshrl.u32 %v1956_v3, 23  ;;  %v1122_v15 = vsel %vm1115_vm6, %v1118_v28, %v1121_v8  ;;  %v1276_v14 = vadd.s32 3, %v1259_v46 }
 0x20f   :  { %vm2903_vm14 = vcmp.lt.s32.totalorder %v2902_v52, 0  ;;  %v1798_v51 = vor.u32 8388608, %v1797_v50  ;;  %v1265_v2 = vmul.f32 %v1264_v7, %v4835_v59  ;;  %v1418_v55 = vsel %vm1297_vm3, %v1417_v9, %v1416_v62  ;;  %v6338_v7 = vld [vmem:[#allocation20_spill] sm:$0xff] }
 0x210   :  { %v1726_v13 = vadd.s32 536870912, %v4976_v17  ;;  %v4995_v49 = vor.u32 %v1808_v38, %v1807_v34  ;;  %vm1823_vm12 = vcmp.lt.s32.totalorder %v4946_v24, 2  ;;  %v1834_v20 = vsel %vm1822_vm5, %v4981_v11, %v4983_v42 }
 0x211   :  { %v1836_v8 = vsel %vm1824_vm0, %v1818_v26, %v1835_v23  ;;  %v2916_v33 = vadd.s32 4294967169, %v1957_v60  ;;  %v962_v59 = vmul.f32 %v961_v5, %v4923_v12  ;;  %v1274_v62 = vmul.f32 %v1273_v29, %v4823_v6 }
 0x212   :  { %v1573_v54 = vsel %vm2903_vm14, 0, %v2902_v52  ;;  %v1831_v10 = vsel %vm1825_vm8, %v1818_v26, 920167782  ;;  %v1124_v63 = vstv %s4958_s3  ;;  %v1277_v56 = vand.u32 3, %v1276_v14 }
 0x213   :  { %v5014_v25 = vsel %vm4967_vm7, %v6333_v37, %v1418_v55  ;;  %v5016_v27 = vshll.u32 %v1798_v51, 8  ;;  %v1123_v0 = vsel %vm1112_vm9, nan, %v1122_v15  ;;  %v1266_v28 = vadd.f32 1.0, %v1265_v2 }
 0x214   :  { %v5022_v6 = vsel %vm1823_vm12, %v1834_v20, %v1836_v8  ;;  %v1963_v5 = vadd.s32 1, %v2916_v33  ;;  %v1578_v12 = vsub.s32 4294967266, %v1573_v54  ;;  %v5024_v46 = vshrl.u32 %v1726_v13, 30 }
 0x215   :  { %v1830_v18 = vsel %vm1822_vm5, %v4995_v49, %v4981_v11  ;;  %v1832_v22 = vsel %vm1824_vm0, %v4983_v42, %v1831_v10  ;;  %v963_v21 = vadd.f32 %v962_v59, %v4862_v36  ;;  %v1280_v3 = vxor.u32 2147483648, %v1274_v62 }
 0x216   :  { %v1419_v52 = vsub.s32 4, %v6338_v7  ;;  %v5037_v50 = vmul.f32 %v5014_v25, %v5014_v25  ;;  %v1125_v9 = vmul.f32 %v1124_v63, %v1123_v0  ;;  %vm1278_vm1 = vcmp.lt.s32.totalorder %v1277_v56, 2 }
 0x217   :  { %v1839_v34 = vand.u32 65535, %v5016_v27  ;;  %v1842_v38 = vshrl.u32 %v5022_v6, 16  ;;  %v1558_v29 = vadd.s32 %v4770_v19, %v4765_v31  ;;  %v1574_v26 = vsub.s32 32, %v1573_v54 }
 0x218   :  { %v1833_v36 = vsel %vm1823_vm12, %v1830_v18, %v1832_v22  ;;  %vm1964_vm4 = vcmp.gt.s32.totalorder %v1963_v5, 0  ;;  %vm1279_vm13 = vcmp.eq.s32.totalorder %v1277_v56, 0  ;;  %v1283_v23 = vxor.u32 2147483648, %v1266_v28 }
 0x219   :  { %v1579_v60 = vadd.s32 127, %v1578_v12  ;;  %v1728_v15 = vshll.u32 %v5024_v46, 30  ;;  %v1281_v14 = vsel %vm1279_vm13, %v1266_v28, %v1280_v3  ;;  %v1420_v51 = vsel %vm1297_vm3, %v1419_v52, %v6338_v7 }
 0x21a   :  { %v1424_v2 = vmul.f32 -0.001358992, %v5037_v50  ;;  %v1431_v31 = vmul.f32 -0.00019511016, %v5037_v50  ;;  %v1841_v19 = vand.u32 65535, %v5022_v6  ;;  %v5054_v55 = vmul.u32 %v1842_v38, %v1839_v34 }
 0x21b   :  { %v1864_v13 = vshrl.u32 %v1833_v36, 16  ;;  %v1965_v20 = vsel %vm1964_vm4, %v1963_v5, 0  ;;  %vm1282_vm10 = vcmp.eq.s32.totalorder %v1277_v56, 2  ;;  %v1575_v8 = vshll.u32 %v4886_v40, %v1573_v54 }
 0x21c   :  { %v1576_v33 = vshrl.u32 %v1558_v29, %v1574_v26  ;;  %v1840_v59 = vshrl.u32 %v5016_v27, 16  ;;  %v1284_v10 = vsel %vm1282_vm10, %v1283_v23, %v1274_v62  ;;  %v1422_v63 = vsel %vm4967_vm7, 0, %v1420_v51 }
 0x21d   :  { %v1580_v0 = vshll.u32 %v1579_v60, 23  ;;  %v5061_v28 = vsub.s32 %v4976_v17, %v1728_v15  ;;  %v1285_v6 = vsel %vm1278_vm1, %v1281_v14, %v1284_v10  ;;  %v1425_v12 = vadd.f32 0.041655596, %v1424_v2  ;;  %v2968_v2 = vld [vmem:[%s6185_s4 + $0x5] ss:$0 sm:$0xff]  ;;  %s5105_s4 = sld [smem:[#allocation9 + $0x180]] }
 0x21e   :  { %v1432_v18 = vadd.f32 0.008332121, %v1431_v31  ;;  %v1967_v5 = vand.u32 31, %v1965_v20  ;;  %v1843_v22 = vmul.u32 %v1841_v19, %v1839_v34  ;;  %v1847_v40 = vshll.u32 %v5054_v55, 16  ;;  %v2113_v31 = vpop.permute.xlu2 %2112 }
 0x21f   :  { %v1863_v54 = vand.u32 65535, %v1833_v36  ;;  %v5065_v3 = vmul.u32 %v1864_v13, %v1839_v34  ;;  %v5067_v62 = vadd.f32 %v1125_v9, %v963_v21  ;;  %vm1275_vm15 = vweird.f32 %v3898_v1 }
 0x220   :  { %v1577_v58 = vor.u32 %v1576_v33, %v1575_v8  ;;  %v5070_v7 = vmul.u32 %v1841_v19, %v1840_v59  ;;  %v5073_v52 = vadd.s32 3, %v1422_v63  ;;  %v1581_v56 = vor.u32 4788187, %v1580_v0 }
 0x221   :  { %v1731_v29 = vsub.s32 0, %v5061_v28  ;;  %v5076_v26 = vsel %vm1275_vm15, nan, %v1285_v6  ;;  %v5079_v23 = vmul.f32 %v1425_v12, %v5037_v50  ;;  %vm1730_vm11 = vcmp.lt.s32.totalorder %v5061_v28, 0 }
 0x222   :  { %v5082_v21 = vsub.s32 32, %v1967_v5  ;;  %v5085_v1 = vmul.f32 %v1432_v18, %v5037_v50  ;;  %vm1851_vm6 = vc.u32 %v1843_v22, %v1847_v40  ;;  %v1865_v9 = vmul.u32 %v1863_v54, %v1839_v34 }
 0x223   :  { %v1869_v36 = vshll.u32 %v5065_v3, 16  ;;  %v1584_v60 = vcvt.s32.f32 %v1577_v58  ;;  %v1849_v15 = vshll.u32 %v5070_v7, 16  ;;  %v1853_v14 = vadd.s32 %v1847_v40, %v1843_v22 }
 0x224   :  { %v5089_v51 = vmul.u32 %v1863_v54, %v1840_v59  ;;  %v1582_v19 = vand.u32 2147483647, %v1581_v56  ;;  %v1732_v8 = vsel %vm1730_vm11, %v1731_v29, %v5061_v28  ;;  %v1846_v33 = vmul.u32 %v1842_v38, %v1840_v59 }
 0x225   :  { %v6243_v10 = vand.u32 2147483647, %v4942_v44  ;;  %v1852_v34 = vsel %vm1851_vm6, 1, %v6276_v35  ;;  %v1868_v63 = vmul.u32 %v1864_v13, %v1840_v59  ;;  %v1982_v0 = vshll.u32 %v6330_v32, %v1967_v5 }
 0x226   :  { %v1983_v6 = vshrl.u32 %v6331_v45, %v5082_v21  ;;  %vm1873_vm3 = vc.u32 %v1865_v9, %v1869_v36  ;;  %v5100_v12 = vshrl.u32 %v1965_v20, 5  ;;  %v1979_v18 = vshll.u32 %v6283_v16, %v1967_v5 }
 0x227   :  { %v1980_v22 = vshrl.u32 %v6330_v32, %v5082_v21  ;;  %vm5107_vm7 = vc.u32 %v1853_v14, %v1849_v15  ;;  %v5112_v59 = vadd.s32 %v1869_v36, %v1865_v9  ;;  %v5114_v40 = vsub.f32 %v2113_v31, %v2968_v2 }
 0x228   :  { %v1973_v20 = vshll.u32 %v6334_v43, %v1967_v5  ;;  %v1974_v54 = vshrl.u32 %v6302_v48, %v5082_v21  ;;  %v1976_v58 = vshll.u32 %v6302_v48, %v1967_v5  ;;  %v1977_v56 = vshrl.u32 %v6283_v16, %v5082_v21 }
 0x229   :  { %v1874_v29 = vsel %vm1873_vm3, 1, %v6276_v35  ;;  %v1970_v15 = vshll.u32 %v6275_v4, %v1967_v5  ;;  %v1971_v9 = vshrl.u32 %v6334_v43, %v5082_v21  ;;  %v1984_v36 = vor.u32 %v1983_v6, %v1982_v0 }
 0x22a   :  { %v1585_v14 = vmul.f32 %v1584_v60, %v1582_v19  ;;  %v1960_v2 = vand.u32 8388607, %v6243_v10  ;;  %v1981_v31 = vor.u32 %v1980_v22, %v1979_v18  ;;  %vm1988_vm9 = vcmp.lt.s32.totalorder %v5100_v12, 4  ;;  %v6342_v22 = vld [vmem:[#allocation18_spill] sm:$0xff] }
 0x22b   :  { %v1733_v53 = vclz %v1732_v8  ;;  %v1854_v17 = vadd.s32 %v1852_v34, %v1846_v33  ;;  %v1856_v13 = vsel %vm5107_vm7, 1, %v6276_v35  ;;  %v6341_v5 = vshll.u32 %v5089_v51, 16 }
 0x22c   :  { %v1876_v41 = vadd.s32 %v1874_v29, %v1868_v63  ;;  %v5135_v0 = vor.u32 %v1974_v54, %v1973_v20  ;;  %v5137_v60 = vor.u32 %v1977_v56, %v1976_v58  ;;  %v2118_v19 = vmul.f32 100.0, %v5114_v40 }
 0x22d   :  { %vm1877_vm14 = vc.u32 %v5112_v59, %v6341_v5  ;;  %v5140_v6 = vor.u32 %v1971_v9, %v1970_v15  ;;  %vm1985_vm1 = vcmp.lt.s32.totalorder %v5100_v12, 1  ;;  %vm1987_vm4 = vcmp.lt.s32.totalorder %v5100_v12, 3 }
 0x22e   :  { %v1998_v8 = vsel %vm1988_vm9, %v1984_v36, 1326507024  ;;  %v1878_v33 = vsel %vm1877_vm14, 1, %v6276_v35  ;;  %v1961_v34 = vor.u32 8388608, %v1960_v2  ;;  %v1994_v63 = vsel %vm1988_vm9, %v1981_v31, 920167782 }
 0x22f   :  { %v2120_v18 = vstv %s5105_s4  ;;  %v6343_v38 = vand.u32 2147483647, %v6342_v22  ;;  %v1586_v54 = vxor.u32 2147483648, %v1585_v14  ;;  %v2907_v58 = vadd.s32 4294967294, %v1733_v53 }
 0x230   :  { %v1848_v56 = vshrl.u32 %v5054_v55, 16  ;;  %v1870_v29 = vshrl.u32 %v5065_v3, 16  ;;  %v1858_v15 = vadd.s32 %v1856_v13, %v1854_v17  ;;  %vm1986_vm10 = vcmp.lt.s32.totalorder %v5100_v12, 2 }
 0x231   :  { %vm5154_vm13 = vcmp.le.f32.partialorder %v6343_v38, 0.7853982  ;;  %v1997_v9 = vsel %vm1985_vm1, %v5135_v0, %v5137_v60  ;;  %v1999_v36 = vsel %vm1987_vm4, %v1981_v31, %v1998_v8  ;;  %v1880_v2 = vadd.s32 %v1878_v33, %v1876_v41 }
 0x232   :  { %v1993_v53 = vsel %vm1985_vm1, %v5140_v6, %v5135_v0  ;;  %v1995_v55 = vsel %vm1987_vm4, %v5137_v60, %v1994_v63  ;;  %v5174_v3 = vadd.f32 %v2120_v18, %v2118_v19  ;;  %v1427_v17 = vadd.f32 -0.4999988, %v5079_v23 }
 0x233   :  { %v5178_v13 = vand.u32 3, %v5073_v52  ;;  %vm1466_vm15 = vcmp.lt.s32.totalorder %v6342_v22, 0  ;;  %v5181_v41 = vshll.u32 %v1961_v34, 8  ;;  %v6347_v31 = vstv %s5045_s21 }
 0x234   :  { %6346 = vst [vmem:[#allocation19_spill] sm:$0xff] %v5174_v3  ;;  %v1288_v5 = vmul.f32 %v6347_v31, %v5076_v26  ;;  %v1434_v8 = vadd.f32 -0.16666654, %v5085_v1  ;;  %v1587_v33 = vsel %vm1466_vm15, %v1586_v54, %v1585_v14  ;;  %v5191_v19 = vsel %vm1986_vm10, %v1997_v9, %v1999_v36 }
 0x235   :  { %vm2908_vm11 = vcmp.lt.s32.totalorder %v2907_v58, 0  ;;  %v1806_v52 = vshrl.u32 %v6275_v4, %v4918_v39  ;;  %v1850_v23 = vshrl.u32 %v5070_v7, 16  ;;  %v5198_v34 = vsel %vm1986_vm10, %v1993_v53, %v1995_v55 }
 0x236   :  { %v1859_v26 = vadd.s32 %v1858_v15, %v1848_v56  ;;  %v1872_v1 = vshrl.u32 %v5089_v51, 16  ;;  %v1881_v63 = vadd.s32 %v1880_v2, %v1870_v29  ;;  %v2125_v14 = vand.u32 2139095040, %v5174_v3 }
 0x237   :  { %v1428_v18 = vmul.f32 %v1427_v17, %v5037_v50  ;;  %v2002_v54 = vand.u32 65535, %v5181_v41  ;;  %v2005_v9 = vshrl.u32 %v5191_v19, 16  ;;  %v1588_v39 = vsub.s32 4, %v4853_v57 }
 0x238   :  { %v1827_v7 = vsel %vm1825_vm8, %v4983_v42, 2102212464  ;;  %v2027_v56 = vshrl.u32 %v5198_v34, 16  ;;  %v2126_v15 = vshrl.u32 %v2125_v14, 23  ;;  %v1435_v29 = vmul.f32 %v1434_v8, %v5037_v50 }
 0x239   :  { %v5215_v36 = vsel %vm5154_vm13, %v6342_v22, %v1587_v33  ;;  %v1736_v2 = vsel %vm2908_vm11, 0, %v2907_v58  ;;  %v1826_v53 = vsel %vm1822_vm5, %v1806_v52, %v4995_v49  ;;  %v5221_v55 = vadd.s32 %v1859_v26, %v1850_v23 }
 0x23a   :  { %6348 = vst [vmem:[#allocation16_spill] sm:$0xff] %v5215_v36  ;;  %v6349_v42 = vshll.u32 %v5089_v51, 16  ;;  %v1882_v31 = vadd.s32 %v1881_v63, %v1872_v1  ;;  %v2921_v50 = vadd.s32 4294967169, %v2126_v15  ;;  %v1828_v8 = vsel %vm1824_vm0, %v4981_v11, %v1827_v7 }
 0x23b   :  { %v2003_v33 = vshrl.u32 %v5181_v41, 16  ;;  %v2004_v58 = vand.u32 65535, %v5191_v19  ;;  %v5233_v14 = vmul.u32 %v2005_v9, %v2002_v54  ;;  %v5238_v49 = vsel %vm1466_vm15, %v1588_v39, %v4853_v57 }
 0x23c   :  { %v5226_v17 = vadd.s32 %v5112_v59, %v6349_v42  ;;  %v2026_v51 = vand.u32 65535, %v5198_v34  ;;  %v5241_v59 = vmul.u32 %v2027_v56, %v2002_v54  ;;  %v2132_v52 = vadd.s32 1, %v2921_v50 }
 0x23d   :  { %v5245_v23 = vmul.f32 %v5215_v36, %v5215_v36  ;;  %v1721_v11 = vadd.s32 %v4910_v47, %v4905_v61  ;;  %v1737_v19 = vsub.s32 32, %v1736_v2  ;;  %v1741_v26 = vsub.s32 4294967266, %v1736_v2 }
 0x23e   :  { %v1829_v1 = vsel %vm1823_vm12, %v1826_v53, %v1828_v8  ;;  %vm1885_vm8 = vc.u32 %v5221_v55, %v5226_v17  ;;  %v1886_v57 = vadd.s32 1, %v1882_v31  ;;  %vm2133_vm5 = vcmp.gt.s32.totalorder %v2132_v52, 0 }
 0x23f   :  { %v2006_v34 = vmul.u32 %v2004_v58, %v2002_v54  ;;  %v5253_v63 = vmul.u32 %v2004_v58, %v2003_v33  ;;  %v2010_v39 = vshll.u32 %v5233_v14, 16  ;;  %v2134_v7 = vsel %vm2133_vm5, %v2132_v52, 0 }
 0x240   :  { %v2028_v15 = vmul.u32 %v2026_v51, %v2002_v54  ;;  %v5256_v42 = vmul.u32 %v2026_v51, %v2003_v33  ;;  %v2032_v61 = vshll.u32 %v5241_v59, 16  ;;  %v2136_v47 = vand.u32 31, %v2134_v7 }
 0x241   :  { %v1738_v24 = vshll.u32 %v5061_v28, %v1736_v2  ;;  %v1739_v53 = vshrl.u32 %v1721_v11, %v1737_v19  ;;  %v1742_v50 = vadd.s32 127, %v1741_v26  ;;  %v1883_v8 = vmul.u32 %v5016_v27, %v1829_v1 }
 0x242   :  { %v5262_v10 = vadd.f32 %v1288_v5, %v5067_v62  ;;  %v5264_v58 = vadd.f32 1.0, %v1428_v18  ;;  %v5266_v38 = vadd.f32 1.0, %v1435_v29  ;;  %v1887_v54 = vsel %vm1885_vm8, %v1886_v57, %v1882_v31 }
 0x243   :  { %v2012_v51 = vshll.u32 %v5253_v63, 16  ;;  %vm2014_vm0 = vc.u32 %v2006_v34, %v2010_v39  ;;  %v2016_v52 = vadd.s32 %v2010_v39, %v2006_v34  ;;  %v5272_v28 = vsub.s32 32, %v2136_v47 }
 0x244   :  { %6350 = vst [vmem:[#allocation20_spill] sm:$0xff] %v5262_v10  ;;  %v6244_v62 = vshll.u32 %v5256_v42, 16  ;;  %vm2036_vm12 = vc.u32 %v2028_v15, %v2032_v61  ;;  %v5278_v5 = vadd.s32 %v2032_v61, %v2028_v15  ;;  %v5283_v18 = vmul.f32 -0.001358992, %v5245_v23 }
 0x245   :  { %v5285_v29 = vor.u32 %v1739_v53, %v1738_v24  ;;  %v1743_v2 = vshll.u32 %v1742_v50, 23  ;;  %v5287_v31 = vadd.s32 %v1887_v54, %v1883_v8  ;;  %v2009_v11 = vmul.u32 %v2005_v9, %v2003_v33 }
 0x246   :  { %v2015_v19 = vsel %vm2014_vm0, 1, %v6276_v35  ;;  %v2031_v26 = vmul.u32 %v2027_v56, %v2003_v33  ;;  %v6248_v1 = vand.u32 2147483647, %v5174_v3  ;;  %vm5291_vm6 = vc.u32 %v2016_v52, %v2012_v51 }
 0x247   :  { %v2037_v34 = vsel %vm2036_vm12, 1, %v6276_v35  ;;  %v2148_v39 = vshll.u32 %v6283_v16, %v2136_v47  ;;  %v2149_v15 = vshrl.u32 %v6330_v32, %v5272_v28  ;;  %vm5302_vm3 = vc.u32 %v5278_v5, %v6244_v62 }
 0x248   :  { %v5306_v56 = vshrl.u32 %v2134_v7, 5  ;;  %v2139_v33 = vshll.u32 %v6275_v4, %v2136_v47  ;;  %v2142_v61 = vshll.u32 %v6334_v43, %v2136_v47  ;;  %v2140_v24 = vshrl.u32 %v6334_v43, %v5272_v28 }
 0x249   :  { %v2143_v53 = vshrl.u32 %v6302_v48, %v5272_v28  ;;  %v2145_v50 = vshll.u32 %v6302_v48, %v2136_v47  ;;  %v2146_v8 = vshrl.u32 %v6283_v16, %v5272_v28  ;;  %v1744_v54 = vor.u32 4788187, %v1743_v2 }
 0x24a   :  { %v2129_v7 = vand.u32 8388607, %v6248_v1  ;;  %v2151_v51 = vshll.u32 %v6330_v32, %v2136_v47  ;;  %v2152_v52 = vshrl.u32 %v6331_v45, %v5272_v28  ;;  %v1889_v62 = vadd.s32 536870912, %v5287_v31 }
 0x24b   :  { %v2017_v27 = vadd.s32 %v2015_v19, %v2009_v11  ;;  %v2019_v22 = vsel %vm5291_vm6, 1, %v6276_v35  ;;  %v2150_v44 = vor.u32 %v2149_v15, %v2148_v39  ;;  %v2039_v10 = vadd.s32 %v2037_v34, %v2031_v26 }
 0x24c   :  { %v2041_v2 = vsel %vm5302_vm3, 1, %v6276_v35  ;;  %v2281_v1 = vmul.f32 17.782795, %v5114_v40  ;;  %v2283_v3 = vstv %s5280_s23  ;;  %v5331_v47 = vor.u32 %v2140_v24, %v2139_v33 }
 0x24d   :  { %v5333_v36 = vor.u32 %v2143_v53, %v2142_v61  ;;  %v5335_v37 = vor.u32 %v2146_v8, %v2145_v50  ;;  %vm2157_vm7 = vcmp.lt.s32.totalorder %v5306_v56, 4  ;;  %v2130_v11 = vor.u32 8388608, %v2129_v7 }
 0x24e   :  { %v2153_v19 = vor.u32 %v2152_v52, %v2151_v51  ;;  %vm2154_vm14 = vcmp.lt.s32.totalorder %v5306_v56, 1  ;;  %vm2156_vm15 = vcmp.lt.s32.totalorder %v5306_v56, 3  ;;  %v1600_v26 = vmul.f32 -0.00019511016, %v5245_v23 }
 0x24f   :  { %v5341_v57 = vshrl.u32 %v1889_v62, 30  ;;  %v2011_v34 = vshrl.u32 %v5233_v14, 16  ;;  %v2163_v39 = vsel %vm2157_vm7, %v2150_v44, 920167782  ;;  %v2021_v15 = vadd.s32 %v2019_v22, %v2017_v27 }
 0x250   :  { %v2033_v9 = vshrl.u32 %v5241_v59, 16  ;;  %v2043_v33 = vadd.s32 %v2041_v2, %v2039_v10  ;;  %v5347_v61 = vadd.f32 %v2283_v3, %v2281_v1  ;;  %vm2155_vm11 = vcmp.lt.s32.totalorder %v5306_v56, 2 }
 0x251   :  { %v2162_v24 = vsel %vm2154_vm14, %v5331_v47, %v5333_v36  ;;  %v2164_v14 = vsel %vm2156_vm15, %v5335_v37, %v2163_v39  ;;  %v2166_v22 = vsel %vm2154_vm14, %v5333_v36, %v5335_v37  ;;  %v1745_v59 = vand.u32 2147483647, %v1744_v54 }
 0x252   :  { %6355 = vst [vmem:[#allocation24_spill] sm:$0xff] %v5347_v61  ;;  %v1747_v10 = vcvt.s32.f32 %v5285_v29  ;;  %v2167_v3 = vsel %vm2157_vm7, %v2153_v19, 1326507024  ;;  %v5364_v27 = vshll.u32 %v2130_v11, 8  ;;  %v1601_v62 = vadd.f32 0.008332121, %v1600_v26 }
 0x253   :  { %v1891_v1 = vshll.u32 %v5341_v57, 30  ;;  %v1969_v53 = vshrl.u32 %v6275_v4, %v5082_v21  ;;  %v2168_v50 = vsel %vm2156_vm15, %v2150_v44, %v2167_v3  ;;  %vm1445_vm8 = vcmp.eq.s32.totalorder %v5178_v13, 2 }
 0x254   :  { %v2035_v8 = vshrl.u32 %v5256_v42, 16  ;;  %v2044_v54 = vadd.s32 %v2043_v33, %v2033_v9  ;;  %v5375_v29 = vsel %vm2155_vm11, %v2162_v24, %v2164_v14  ;;  %v5379_v7 = vsel %vm2155_vm11, %v2166_v22, %v2168_v50 }
 0x255   :  { %v1437_v51 = vmul.f32 %v5266_v38, %v5014_v25  ;;  %vm1629_vm5 = vcmp.lt.s32.totalorder %v4509_v30, 0  ;;  %v2013_v44 = vshrl.u32 %v5253_v63, 16  ;;  %v2022_v21 = vadd.s32 %v2021_v15, %v2011_v34 }
 0x256   :  { %v2288_v52 = vand.u32 2139095040, %v5347_v61  ;;  %v1748_v2 = vmul.f32 %v1747_v10, %v1745_v59  ;;  %v1990_v11 = vsel %vm1988_vm9, %v5137_v60, 2102212464  ;;  %v2171_v19 = vand.u32 65535, %v5364_v27 }
 0x257   :  { %v2174_v26 = vshrl.u32 %v5379_v7, 16  ;;  %vm1442_vm0 = vcmp.eq.s32.totalorder %v5178_v13, 0  ;;  %v1446_v25 = vxor.u32 2147483648, %v5264_v58  ;;  %v1594_v38 = vadd.f32 0.041655596, %v5283_v18 }
 0x258   :  { %v5395_v63 = vsub.s32 %v5287_v31, %v1891_v1  ;;  %v2196_v34 = vshrl.u32 %v5375_v29, 16  ;;  %v1602_v39 = vmul.f32 %v1601_v62, %v5245_v23  ;;  %v6356_v60 = vsel %vm5154_vm13, 0, %v5238_v49 }
 0x259   :  { %v1608_v15 = vadd.s32 3, %v6356_v60  ;;  %v1989_v9 = vsel %vm1985_vm1, %v1969_v53, %v5140_v6  ;;  %v2045_v33 = vadd.s32 %v2044_v54, %v2035_v8  ;;  %v6357_v24 = vand.u32 2147483647, %v4509_v30 }
 0x25a   :  { %v1991_v31 = vsel %vm1987_vm4, %v5135_v0, %v1990_v11  ;;  %v5415_v14 = vadd.s32 %v2022_v21, %v2013_v44  ;;  %v6360_v20 = vshll.u32 %v5256_v42, 16  ;;  %v2289_v22 = vshrl.u32 %v2288_v52, 23 }
 0x25b   :  { %vm5408_vm9 = vcmp.le.f32.partialorder %v6357_v24, 0.7853982  ;;  %v1443_v6 = vxor.u32 2147483648, %v1437_v51  ;;  %v1749_v59 = vxor.u32 2147483648, %v1748_v2  ;;  %v2173_v10 = vand.u32 65535, %v5379_v7 }
 0x25c   :  { %v5420_v49 = vadd.s32 %v5278_v5, %v6360_v20  ;;  %v5423_v3 = vmul.u32 %v2174_v26, %v2171_v19  ;;  %v1595_v62 = vmul.f32 %v1594_v38, %v5245_v23  ;;  %v1894_v1 = vsub.s32 0, %v5395_v63 }
 0x25d   :  { %v2195_v0 = vand.u32 65535, %v5375_v29  ;;  %v5428_v53 = vmul.u32 %v2196_v34, %v2171_v19  ;;  %vm1893_vm1 = vcmp.lt.s32.totalorder %v5395_v63, 0  ;;  %v1992_v42 = vsel %vm1986_vm10, %v1989_v9, %v1991_v31 }
 0x25e   :  { %v2049_v5 = vadd.s32 1, %v2045_v33  ;;  %v2172_v50 = vshrl.u32 %v5364_v27, 16  ;;  %vm1441_vm4 = vcmp.lt.s32.totalorder %v5178_v13, 2  ;;  %v1447_v8 = vsel %vm1445_vm8, %v1446_v25, %v1437_v51 }
 0x25f   :  { %v1603_v54 = vadd.f32 -0.16666654, %v1602_v39  ;;  %vm2048_vm13 = vc.u32 %v5415_v14, %v5420_v49  ;;  %v2926_v29 = vadd.s32 4294967169, %v2289_v22  ;;  %v5439_v7 = vand.u32 3, %v1608_v15 }
 0x260   :  { %v1750_v44 = vsel %vm1629_vm5, %v1749_v59, %v1748_v2  ;;  %v2175_v12 = vmul.u32 %v2173_v10, %v2171_v19  ;;  %v2179_v21 = vshll.u32 %v5423_v3, 16  ;;  %v1895_v52 = vsel %vm1893_vm1, %v1894_v1, %v5395_v63 }
 0x261   :  { %v2046_v11 = vmul.u32 %v5181_v41, %v1992_v42  ;;  %v2197_v38 = vmul.u32 %v2195_v0, %v2171_v19  ;;  %v2201_v51 = vshll.u32 %v5428_v53, 16  ;;  %v1444_v25 = vsel %vm1442_vm0, %v5264_v58, %v1443_v6 }
 0x262   :  { %v1596_v39 = vadd.f32 -0.4999988, %v1595_v62  ;;  %v2050_v60 = vsel %vm2048_vm13, %v2049_v5, %v2045_v33  ;;  %v5450_v15 = vmul.u32 %v2195_v0, %v2172_v50  ;;  %v1604_v2 = vmul.f32 %v1603_v54, %v5245_v23 }
 0x263   :  { %v1751_v9 = vsub.s32 4, %v5024_v46  ;;  %v5454_v24 = vmul.u32 %v2173_v10, %v2172_v50  ;;  %v2295_v31 = vadd.s32 1, %v2926_v29  ;;  %v5459_v41 = vsel %vm5408_vm9, %v4509_v30, %v1750_v44 }
 0x264   :  { %6361 = vst [vmem:[#allocation25_spill] sm:$0xff] %v5459_v41  ;;  %v1896_v19 = vclz %v1895_v52  ;;  %vm2183_vm10 = vc.u32 %v2175_v12, %v2179_v21  ;;  %v6253_v58 = vand.u32 2147483647, %v5347_v61  ;;  %v5462_v20 = vadd.s32 %v2050_v60, %v2046_v11 }
 0x265   :  { %v2200_v33 = vmul.u32 %v2196_v34, %v2172_v50  ;;  %vm2205_vm12 = vc.u32 %v2197_v38, %v2201_v51  ;;  %vm2296_vm6 = vcmp.gt.s32.totalorder %v2295_v31, 0  ;;  %v2178_v22 = vmul.u32 %v2174_v26, %v2172_v50 }
 0x266   :  { %v6254_v6 = vshll.u32 %v5450_v15, 16  ;;  %v5465_v59 = vadd.s32 %v2201_v51, %v2197_v38  ;;  %v2297_v10 = vsel %vm2296_vm6, %v2295_v31, 0  ;;  %v2181_v62 = vshll.u32 %v5454_v24, 16 }
 0x267   :  { %v2184_v1 = vsel %vm2183_vm10, 1, %v6276_v35  ;;  %v2185_v0 = vadd.s32 %v2179_v21, %v2175_v12  ;;  %v2299_v42 = vand.u32 31, %v2297_v10  ;;  %v5471_v5 = vsel %vm1441_vm4, %v1444_v25, %v1447_v8 }
 0x268   :  { %v5474_v34 = vmul.f32 %v1596_v39, %v5245_v23  ;;  %v5476_v54 = vadd.f32 1.0, %v1604_v2  ;;  %v2206_v26 = vsel %vm2205_vm12, 1, %v6276_v35  ;;  %v5482_v50 = vsel %vm1629_vm5, %v1751_v9, %v5024_v46 }
 0x269   :  { %v5486_v29 = vmul.f32 %v5459_v41, %v5459_v41  ;;  %v2912_v44 = vadd.s32 4294967294, %v1896_v19  ;;  %v5488_v13 = vsub.s32 32, %v2299_v42  ;;  %v2052_v8 = vadd.s32 536870912, %v5462_v20 }
 0x26a   :  { %v2186_v23 = vadd.s32 %v2184_v1, %v2178_v22  ;;  %vm2209_vm3 = vc.u32 %v5465_v59, %v6254_v6  ;;  %v2292_v12 = vand.u32 8388607, %v6253_v58  ;;  %vm2187_vm8 = vc.u32 %v2185_v0, %v2181_v62 }
 0x26b   :  { %v2208_v46 = vadd.s32 %v2206_v26, %v2200_v33  ;;  %v2302_v21 = vshll.u32 %v6275_v4, %v2299_v42  ;;  %v2305_v52 = vshll.u32 %v6334_v43, %v2299_v42  ;;  %v5498_v11 = vshrl.u32 %v2297_v10, 5 }
 0x26c   :  { %v2303_v38 = vshrl.u32 %v6334_v43, %v5488_v13  ;;  %v2306_v51 = vshrl.u32 %v6302_v48, %v5488_v13  ;;  %v2311_v25 = vshll.u32 %v6283_v16, %v2299_v42  ;;  %v2210_v39 = vsel %vm2209_vm3, 1, %v6276_v35 }
 0x26d   :  { %v2308_v60 = vshll.u32 %v6302_v48, %v2299_v42  ;;  %v2309_v2 = vshrl.u32 %v6283_v16, %v5488_v13  ;;  %v2312_v9 = vshrl.u32 %v6330_v32, %v5488_v13  ;;  %vm2913_vm5 = vcmp.lt.s32.totalorder %v2912_v44, 0 }
 0x26e   :  { %v5511_v31 = vshrl.u32 %v2052_v8, 30  ;;  %v2188_v19 = vsel %vm2187_vm8, 1, %v6276_v35  ;;  %v2293_v33 = vor.u32 8388608, %v2292_v12  ;;  %v5514_v22 = vor.u32 %v2303_v38, %v2302_v21 }
 0x26f   :  { %v5516_v10 = vor.u32 %v2306_v51, %v2305_v52  ;;  %v2314_v62 = vshll.u32 %v6330_v32, %v2299_v42  ;;  %v2315_v1 = vshrl.u32 %v6331_v45, %v5488_v13  ;;  %v2202_v0 = vshrl.u32 %v5428_v53, 16 }
 0x270   :  { %6362 = vst [vmem:[#allocation26_spill] sm:$0xff] %v5511_v31  ;;  %v2212_v26 = vadd.s32 %v2210_v39, %v2208_v46  ;;  %v2313_v58 = vor.u32 %v2312_v9, %v2311_v25  ;;  %vm2317_vm0 = vcmp.lt.s32.totalorder %v5498_v11, 1  ;;  %v2180_v8 = vshrl.u32 %v5423_v3, 16 }
 0x271   :  { %v2190_v6 = vadd.s32 %v2188_v19, %v2186_v23  ;;  %v5524_v30 = vor.u32 %v2309_v2, %v2308_v60  ;;  %vm2320_vm1 = vcmp.lt.s32.totalorder %v5498_v11, 4  ;;  %v5528_v12 = vsel %vm2913_vm5, 0, %v2912_v44 }
 0x272   :  { %v2054_v42 = vshll.u32 %v5511_v31, 30  ;;  %v2138_v21 = vshrl.u32 %v6275_v4, %v5272_v28  ;;  %vm2319_vm4 = vcmp.lt.s32.totalorder %v5498_v11, 3  ;;  %v2159_v53 = vsel %vm2157_vm7, %v5335_v37, 2102212464 }
 0x273   :  { %v2316_v3 = vor.u32 %v2315_v1, %v2314_v62  ;;  %vm2318_vm13 = vcmp.lt.s32.totalorder %v5498_v11, 2  ;;  %v2325_v44 = vsel %vm2317_vm0, %v5514_v22, %v5516_v10  ;;  %v2204_v23 = vshrl.u32 %v5450_v15, 16  ;;  %v6365_v11 = vld [vmem:[#allocation16_spill] sm:$0xff] }
 0x274   :  { %v2213_v46 = vadd.s32 %v2212_v26, %v2202_v0  ;;  %v2326_v28 = vsel %vm2320_vm1, %v2313_v58, 920167782  ;;  %v5545_v52 = vshll.u32 %v2293_v33, 8  ;;  %v1884_v38 = vadd.s32 %v5226_v17, %v5221_v55 }
 0x275   :  { %v2182_v37 = vshrl.u32 %v5454_v24, 16  ;;  %v2191_v51 = vadd.s32 %v2190_v6, %v2180_v8  ;;  %v2327_v25 = vsel %vm2319_vm4, %v5524_v30, %v2326_v28  ;;  %v5554_v39 = vmul.f32 -0.001358992, %v5486_v29 }
 0x276   :  { %v1904_v60 = vsub.s32 4294967266, %v5528_v12  ;;  %v5558_v2 = vsub.s32 %v5462_v20, %v2054_v42  ;;  %v2328_v9 = vsel %vm2318_vm13, %v2325_v44, %v2327_v25  ;;  %v2158_v55 = vsel %vm2154_vm14, %v2138_v21, %v5331_v47 }
 0x277   :  { %v2160_v17 = vsel %vm2156_vm15, %v5333_v36, %v2159_v53  ;;  %v2329_v24 = vsel %vm2317_vm0, %v5516_v10, %v5524_v30  ;;  %v2330_v20 = vsel %vm2320_vm1, %v2316_v3, 1326507024  ;;  %v6363_v6 = vshll.u32 %v5450_v15, 16 }
 0x278   :  { %v2214_v47 = vadd.s32 %v2213_v46, %v2204_v23  ;;  %v2331_v33 = vsel %vm2319_vm4, %v2313_v58, %v2330_v20  ;;  %v2334_v36 = vand.u32 65535, %v5545_v52  ;;  %v5584_v62 = vadd.s32 %v2191_v51, %v2182_v37 }
 0x279   :  { %v5579_v19 = vadd.s32 %v5465_v59, %v6363_v6  ;;  %v2332_v1 = vsel %vm2318_vm13, %v2329_v24, %v2331_v33  ;;  %v2335_v0 = vshrl.u32 %v5545_v52, 16  ;;  %v2359_v26 = vshrl.u32 %v2328_v9, 16 }
 0x27a   :  { %v5590_v8 = vmul.f32 -0.00019511016, %v5486_v29  ;;  %v1900_v15 = vsub.s32 32, %v5528_v12  ;;  %v2057_v59 = vsub.s32 0, %v5558_v2  ;;  %v2358_v42 = vand.u32 65535, %v2328_v9 }
 0x27b   :  { %v1901_v58 = vshll.u32 %v5395_v63, %v5528_v12  ;;  %vm2056_vm7 = vcmp.lt.s32.totalorder %v5558_v2, 0  ;;  %v2336_v21 = vand.u32 65535, %v2332_v1  ;;  %v2337_v53 = vshrl.u32 %v2332_v1, 16 }
 0x27c   :  { %v1905_v3 = vadd.s32 127, %v1904_v60  ;;  %v2161_v44 = vsel %vm2155_vm11, %v2158_v55, %v2160_v17  ;;  %v2218_v23 = vadd.s32 1, %v2214_v47  ;;  %v2361_v46 = vmul.u32 %v2359_v26, %v2334_v36 }
 0x27d   :  { %vm2217_vm14 = vc.u32 %v5584_v62, %v5579_v19  ;;  %v2338_v28 = vmul.u32 %v2336_v21, %v2334_v36  ;;  %v2339_v37 = vmul.u32 %v2337_v53, %v2334_v36  ;;  %v2340_v51 = vmul.u32 %v2336_v21, %v2335_v0  ;;  %v6364_v21 = vld [vmem:[#allocation22_spill] sm:$0xff] }
 0x27e   :  { %v1902_v25 = vshrl.u32 %v1884_v38, %v1900_v15  ;;  %v2058_v63 = vsel %vm2056_vm7, %v2057_v59, %v5558_v2  ;;  %v2362_v12 = vmul.u32 %v2358_v42, %v2335_v0  ;;  %v2444_v9 = vmul.f32 3.1622777, %v5114_v40 }
 0x27f   :  { %v2215_v24 = vmul.u32 %v5364_v27, %v2161_v44  ;;  %v2341_v60 = vmul.u32 %v2337_v53, %v2335_v0  ;;  %v2342_v20 = vshll.u32 %v2339_v37, 16  ;;  %v2446_v56 = vstv %s5574_s24 }
 0x280   :  { %v2219_v55 = vsel %vm2217_vm14, %v2218_v23, %v2214_v47  ;;  %v2344_v17 = vshll.u32 %v2340_v51, 16  ;;  %v2360_v6 = vmul.u32 %v2358_v42, %v2334_v36  ;;  %v2364_v33 = vshll.u32 %v2361_v46, 16 }
 0x281   :  { %v1906_v1 = vshll.u32 %v1905_v3, 23  ;;  %v2059_v31 = vclz %v2058_v63  ;;  %vm2346_vm15 = vc.u32 %v2338_v28, %v2342_v20  ;;  %v2348_v61 = vadd.s32 %v2342_v20, %v2338_v28 }
 0x282   :  { %vm1438_vm11 = vweird.f32 %v6364_v21  ;;  %v2347_v38 = vsel %vm2346_vm15, 1, %v6276_v35  ;;  %v2363_v15 = vmul.u32 %v2359_v26, %v2335_v0  ;;  %v2366_v59 = vshll.u32 %v2362_v12, 16 }
 0x283   :  { %v5607_v41 = vadd.f32 %v2446_v56, %v2444_v9  ;;  %v5609_v27 = vadd.s32 %v2219_v55, %v2215_v24  ;;  %v2301_v47 = vshrl.u32 %v6275_v4, %v5488_v13  ;;  %v2322_v36 = vsel %vm2320_vm1, %v5524_v30, 2102212464 }
 0x284   :  { %v2349_v42 = vadd.s32 %v2347_v38, %v2341_v60  ;;  %v2343_v53 = vshrl.u32 %v2339_v37, 16  ;;  %vm2350_vm10 = vc.u32 %v2348_v61, %v2344_v17  ;;  %vm2368_vm12 = vc.u32 %v2360_v6, %v2364_v33 }
 0x285   :  { %v2370_v3 = vadd.s32 %v2364_v33, %v2360_v6  ;;  %v2917_v44 = vadd.s32 4294967294, %v2059_v31  ;;  %v2345_v23 = vshrl.u32 %v2340_v51, 16  ;;  %v2351_v0 = vsel %vm2350_vm10, 1, %v6276_v35 }
 0x286   :  { %v2369_v26 = vsel %vm2368_vm12, 1, %v6276_v35  ;;  %v2353_v28 = vadd.s32 %v2351_v0, %v2349_v42  ;;  %v2365_v63 = vshrl.u32 %v2361_v46, 16  ;;  %v2221_v13 = vadd.s32 536870912, %v5609_v27 }
 0x287   :  { %v2371_v9 = vadd.s32 %v2369_v26, %v2363_v15  ;;  %vm2372_vm6 = vc.u32 %v2370_v3, %v2366_v59  ;;  %v2321_v30 = vsel %vm2317_vm0, %v2301_v47, %v5514_v22  ;;  %v2323_v61 = vsel %vm2319_vm4, %v5516_v10, %v2322_v36 }
 0x288   :  { %v2373_v31 = vsel %vm2372_vm6, 1, %v6276_v35  ;;  %v2354_v37 = vadd.s32 %v2353_v28, %v2343_v53  ;;  %v2367_v51 = vshrl.u32 %v2362_v12, 16  ;;  %v2451_v60 = vand.u32 2139095040, %v5607_v41 }
 0x289   :  { %v2375_v24 = vadd.s32 %v2373_v31, %v2371_v9  ;;  %v1903_v46 = vor.u32 %v1902_v25, %v1901_v58  ;;  %v1907_v20 = vor.u32 4788187, %v1906_v1  ;;  %vm2918_vm3 = vcmp.lt.s32.totalorder %v2917_v44, 0 }
 0x28a   :  { %v5627_v56 = vadd.s32 %v2370_v3, %v2366_v59  ;;  %v2324_v55 = vsel %vm2318_vm13, %v2321_v30, %v2323_v61  ;;  %v5631_v22 = vadd.s32 %v2354_v37, %v2345_v23  ;;  %v2452_v6 = vshrl.u32 %v2451_v60, 23 }
 0x28b   :  { %v2376_v17 = vadd.s32 %v2375_v24, %v2365_v63  ;;  %v1449_v10 = vsel %vm1438_vm11, nan, %v5471_v5  ;;  %v1598_v12 = vadd.f32 1.0, %v5474_v34  ;;  %v1754_v58 = vsel %vm5408_vm9, 0, %v5482_v50 }
 0x28c   :  { %v5640_v25 = vshrl.u32 %v2221_v13, 30  ;;  %v1606_v33 = vmul.f32 %v5476_v54, %v6365_v11  ;;  %vm1611_vm8 = vcmp.eq.s32.totalorder %v5439_v7, 0  ;;  %vm1614_vm5 = vcmp.eq.s32.totalorder %v5439_v7, 2 }
 0x28d   :  { %v5648_v1 = vsel %vm2918_vm3, 0, %v2917_v44  ;;  %v2377_v5 = vadd.s32 %v2376_v17, %v2367_v51  ;;  %v2931_v34 = vadd.s32 4294967169, %v2452_v6  ;;  %v1757_v21 = vadd.f32 0.041655596, %v5554_v39  ;;  %v6367_v51 = vld [vmem:[#allocation20_spill] sm:$0xff] }
 0x28e   :  { %v1764_v18 = vadd.f32 0.008332121, %v5590_v8  ;;  %v2378_v50 = vmul.u32 %v5545_v52, %v2324_v55  ;;  %vm2380_vm9 = vc.u32 %v5631_v22, %v5627_v56  ;;  %v1908_v38 = vand.u32 2147483647, %v1907_v20 }
 0x28f   :  { %v1910_v15 = vcvt.s32.f32 %v1903_v46  ;;  %v2381_v54 = vadd.s32 1, %v2377_v5  ;;  %v2458_v59 = vadd.s32 1, %v2931_v34  ;;  %v6366_v47 = vstv %s5146_s0  ;;  %v6368_v46 = vld [vmem:[#allocation23_spill] sm:$0xff] }
 0x290   :  { %v1451_v36 = vmul.f32 %v6366_v47, %v1449_v10  ;;  %v1615_v42 = vxor.u32 2147483648, %v1598_v12  ;;  %v2067_v53 = vsub.s32 4294967266, %v5648_v1  ;;  %v2223_v3 = vshll.u32 %v5640_v25, 30 }
 0x291   :  { %v1612_v44 = vxor.u32 2147483648, %v1606_v33  ;;  %v1771_v39 = vadd.s32 3, %v1754_v58  ;;  %v2382_v23 = vsel %vm2380_vm9, %v2381_v54, %v2377_v5  ;;  %vm2459_vm0 = vcmp.gt.s32.totalorder %v2458_v59, 0 }
 0x292   :  { %v1758_v52 = vmul.f32 %v1757_v21, %v5486_v29  ;;  %v1765_v8 = vmul.f32 %v1764_v18, %v5486_v29  ;;  %v2383_v0 = vadd.s32 %v2382_v23, %v2378_v50  ;;  %v2460_v26 = vsel %vm2459_vm0, %v2458_v59, 0 }
 0x293   :  { %v1911_v28 = vmul.f32 %v1910_v15, %v1908_v38  ;;  %v2047_v63 = vadd.s32 %v5420_v49, %v5415_v14  ;;  %v2063_v9 = vsub.s32 32, %v5648_v1  ;;  %v2462_v13 = vand.u32 31, %v2460_v26 }
 0x294   :  { %v2068_v30 = vadd.s32 127, %v2067_v53  ;;  %v5667_v61 = vsub.s32 %v5609_v27, %v2223_v3  ;;  %v2384_v31 = vadd.s32 536870912, %v2383_v0  ;;  %v6262_v37 = vand.u32 2147483647, %v5607_v41 }
 0x295   :  { %v5671_v24 = vadd.f32 %v1451_v36, %v6367_v51  ;;  %vm1792_vm1 = vcmp.lt.s32.totalorder %v6368_v46, 0  ;;  %v5675_v20 = vsub.s32 32, %v2462_v13  ;;  %v1613_v14 = vsel %vm1611_vm8, %v1598_v12, %v1612_v44 }
 0x296   :  { %v1616_v49 = vsel %vm1614_vm5, %v1615_v42, %v1606_v33  ;;  %v1759_v55 = vadd.f32 -0.4999988, %v1758_v52  ;;  %v5681_v27 = vand.u32 3, %v1771_v39  ;;  %v6369_v17 = vand.u32 2147483647, %v6368_v46 }
 0x297   :  { %v1766_v10 = vadd.f32 -0.16666654, %v1765_v8  ;;  %v1912_v58 = vxor.u32 2147483648, %v1911_v28  ;;  %v2064_v11 = vshll.u32 %v5558_v2, %v5648_v1  ;;  %v2065_v5 = vshrl.u32 %v2047_v63, %v2063_v9 }
 0x298   :  { %vm5685_vm4 = vcmp.le.f32.partialorder %v6369_v17, 0.7853982  ;;  %v2069_v12 = vshll.u32 %v2068_v30, 23  ;;  %v2226_v34 = vsub.s32 0, %v5667_v61  ;;  %v5692_v33 = vshrl.u32 %v2384_v31, 30 }
 0x299   :  { %v2455_v21 = vand.u32 8388607, %v6262_v37  ;;  %vm1610_vm13 = vcmp.lt.s32.totalorder %v5439_v7, 2  ;;  %vm2225_vm7 = vcmp.lt.s32.totalorder %v5667_v61, 0  ;;  %v2465_v18 = vshll.u32 %v6275_v4, %v2462_v13  ;;  %v6372_v37 = vld [vmem:[#allocation17_spill] sm:$0xff] }
 0x29a   :  { %v2466_v50 = vshrl.u32 %v6334_v43, %v5675_v20  ;;  %v2607_v2 = vmul.f32 0.56234133, %v5114_v40  ;;  %v2468_v1 = vshll.u32 %v6334_v43, %v2462_v13  ;;  %v2469_v38 = vshrl.u32 %v6302_v48, %v5675_v20 }
 0x29b   :  { %v2474_v15 = vshll.u32 %v6283_v16, %v2462_v13  ;;  %v2609_v54 = vstv %s5661_s26  ;;  %v5707_v59 = vshrl.u32 %v2460_v26, 5  ;;  %v2471_v47 = vshll.u32 %v6302_v48, %v2462_v13 }
 0x29c   :  { %v2472_v36 = vshrl.u32 %v6283_v16, %v5675_v20  ;;  %v2475_v42 = vshrl.u32 %v6330_v32, %v5675_v20  ;;  %v1913_v40 = vsel %vm1792_vm1, %v1912_v58, %v1911_v28  ;;  %v2227_v53 = vsel %vm2225_vm7, %v2226_v34, %v5667_v61 }
 0x29d   :  { %v2386_v3 = vshll.u32 %v5692_v33, 30  ;;  %v2456_v44 = vor.u32 8388608, %v2455_v21  ;;  %v2066_v39 = vor.u32 %v2065_v5, %v2064_v11  ;;  %v2070_v23 = vor.u32 4788187, %v2069_v12 }
 0x29e   :  { %v5718_v52 = vor.u32 %v2466_v50, %v2465_v18  ;;  %v5720_v8 = vadd.f32 %v2609_v54, %v2607_v2  ;;  %v5722_v26 = vor.u32 %v2469_v38, %v2468_v1  ;;  %v2476_v63 = vor.u32 %v2475_v42, %v2474_v15 }
 0x29f   :  { %v2477_v9 = vshll.u32 %v6330_v32, %v2462_v13  ;;  %v2478_v30 = vshrl.u32 %v6331_v45, %v5675_v20  ;;  %v5730_v28 = vsel %vm5685_vm4, %v6368_v46, %v1913_v40  ;;  %v2228_v31 = vclz %v2227_v53 }
 0x2a0   :  { %v2473_v51 = vor.u32 %v2472_v36, %v2471_v47  ;;  %vm2480_vm14 = vcmp.lt.s32.totalorder %v5707_v59, 1  ;;  %v5733_v17 = vsub.s32 %v2383_v0, %v2386_v3  ;;  %vm2482_vm15 = vcmp.lt.s32.totalorder %v5707_v59, 3 }
 0x2a1   :  { %vm2483_vm11 = vcmp.lt.s32.totalorder %v5707_v59, 4  ;;  %v5737_v58 = vshll.u32 %v2456_v44, 8  ;;  %v2071_v13 = vand.u32 2147483647, %v2070_v23  ;;  %v2073_v11 = vcvt.s32.f32 %v2066_v39 }
 0x2a2   :  { %vm2481_vm10 = vcmp.lt.s32.totalorder %v5707_v59, 2  ;;  %v2614_v5 = vand.u32 2139095040, %v5720_v8  ;;  %v5743_v12 = vsel %vm1610_vm13, %v1613_v14, %v1616_v49  ;;  %v2479_v34 = vor.u32 %v2478_v30, %v2477_v9 }
 0x2a3   :  { %v2488_v0 = vsel %vm2480_vm14, %v5718_v52, %v5722_v26  ;;  %v2489_v21 = vsel %vm2483_vm11, %v2476_v63, 920167782  ;;  %v5752_v18 = vmul.f32 %v1759_v55, %v5486_v29  ;;  %v5756_v50 = vmul.f32 %v5730_v28, %v5730_v28 }
 0x2a4   :  { %v2922_v2 = vadd.s32 4294967294, %v2228_v31  ;;  %v2490_v7 = vsel %vm2482_vm15, %v2473_v51, %v2489_v21  ;;  %v2389_v14 = vsub.s32 0, %v5733_v17  ;;  %v2497_v1 = vand.u32 65535, %v5737_v58 }
 0x2a5   :  { %v2491_v49 = vsel %vm2481_vm10, %v2488_v0, %v2490_v7  ;;  %v2498_v38 = vshrl.u32 %v5737_v58, 16  ;;  %v5766_v55 = vmul.f32 %v1766_v10, %v5486_v29  ;;  %v5768_v15 = vmul.f32 %v2073_v11, %v2071_v13 }
 0x2a6   :  { %vm2388_vm12 = vcmp.lt.s32.totalorder %v5733_v17, 0  ;;  %v2615_v54 = vshrl.u32 %v2614_v5, 23  ;;  %v2492_v47 = vsel %vm2480_vm14, %v5722_v26, %v2473_v51  ;;  %v2493_v36 = vsel %vm2483_vm11, %v2479_v34, 1326507024 }
 0x2a7   :  { %v2521_v42 = vand.u32 65535, %v2491_v49  ;;  %v2522_v40 = vshrl.u32 %v2491_v49, 16  ;;  %v1914_v53 = vsub.s32 4, %v5341_v57  ;;  %v5778_v3 = vmul.f32 -0.001358992, %v5756_v50 }
 0x2a8   :  { %vm2923_vm6 = vcmp.lt.s32.totalorder %v2922_v2, 0  ;;  %v2494_v29 = vsel %vm2482_vm15, %v2476_v63, %v2493_v36  ;;  %v2390_v10 = vsel %vm2388_vm12, %v2389_v14, %v5733_v17  ;;  %v2216_v30 = vadd.s32 %v5579_v19, %v5584_v62 }
 0x2a9   :  { %v2495_v44 = vsel %vm2481_vm10, %v2492_v47, %v2494_v29  ;;  %v2524_v39 = vmul.u32 %v2522_v40, %v2497_v1  ;;  %v2525_v23 = vmul.u32 %v2521_v42, %v2498_v38  ;;  %v2523_v13 = vmul.u32 %v2521_v42, %v2497_v1 }
 0x2aa   :  { %v2499_v31 = vand.u32 65535, %v2495_v44  ;;  %v5788_v11 = vsel %vm2923_vm6, 0, %v2922_v2  ;;  %v2500_v5 = vshrl.u32 %v2495_v44, 16  ;;  %v2936_v0 = vadd.s32 4294967169, %v2615_v54 }
 0x2ab   :  { %v2527_v34 = vshll.u32 %v2524_v39, 16  ;;  %v2391_v63 = vclz %v2390_v10  ;;  %v2464_v21 = vshrl.u32 %v6275_v4, %v5675_v20  ;;  %v2526_v14 = vmul.u32 %v2522_v40, %v2498_v38 }
 0x2ac   :  { %v2503_v7 = vmul.u32 %v2499_v31, %v2498_v38  ;;  %v2232_v49 = vsub.s32 32, %v5788_v11  ;;  %v2501_v47 = vmul.u32 %v2499_v31, %v2497_v1  ;;  %v2502_v36 = vmul.u32 %v2500_v5, %v2497_v1 }
 0x2ad   :  { %v2529_v29 = vshll.u32 %v2525_v23, 16  ;;  %v2236_v19 = vsub.s32 4294967266, %v5788_v11  ;;  %v2485_v62 = vsel %vm2483_vm11, %v2473_v51, 2102212464  ;;  %v2504_v2 = vmul.u32 %v2500_v5, %v2498_v38 }
 0x2ae   :  { %vm2531_vm3 = vc.u32 %v2523_v13, %v2527_v34  ;;  %v2505_v42 = vshll.u32 %v2502_v36, 16  ;;  %v2507_v54 = vshll.u32 %v2503_v7, 16  ;;  %v2533_v44 = vadd.s32 %v2527_v34, %v2523_v13 }
 0x2af   :  { %v2532_v10 = vsel %vm2531_vm3, 1, %v6276_v35  ;;  %v2927_v20 = vadd.s32 4294967294, %v2391_v63  ;;  %v2484_v40 = vsel %vm2480_vm14, %v2464_v21, %v5718_v52  ;;  %v2621_v1 = vadd.s32 1, %v2936_v0 }
 0x2b0   :  { %v2534_v31 = vadd.s32 %v2532_v10, %v2526_v14  ;;  %vm1955_vm8 = vcmp.lt.s32.totalorder %v6372_v37, 0  ;;  %vm2509_vm5 = vc.u32 %v2501_v47, %v2505_v42  ;;  %v2511_v60 = vadd.s32 %v2505_v42, %v2501_v47 }
 0x2b1   :  { %v2528_v9 = vshrl.u32 %v2524_v39, 16  ;;  %vm2535_vm9 = vc.u32 %v2533_v44, %v2529_v29  ;;  %v2486_v51 = vsel %vm2482_vm15, %v5722_v26, %v2485_v62  ;;  %v2510_v38 = vsel %vm2509_vm5, 1, %v6276_v35 }
 0x2b2   :  { %v2530_v13 = vshrl.u32 %v2525_v23, 16  ;;  %v2536_v5 = vsel %vm2535_vm9, 1, %v6276_v35  ;;  %v2506_v34 = vshrl.u32 %v2502_v36, 16  ;;  %v2512_v63 = vadd.s32 %v2510_v38, %v2504_v2 }
 0x2b3   :  { %vm2513_vm0 = vc.u32 %v2511_v60, %v2507_v54  ;;  %v2538_v52 = vadd.s32 %v2536_v5, %v2534_v31  ;;  %v2233_v0 = vshll.u32 %v5667_v61, %v5788_v11  ;;  %vm2928_vm13 = vcmp.lt.s32.totalorder %v2927_v20, 0 }
 0x2b4   :  { %v2514_v39 = vsel %vm2513_vm0, 1, %v6276_v35  ;;  %vm2622_vm7 = vcmp.gt.s32.totalorder %v2621_v1, 0  ;;  %v2508_v21 = vshrl.u32 %v2503_v7, 16  ;;  %v2234_v62 = vshrl.u32 %v2216_v30, %v2232_v49 }
 0x2b5   :  { %v2516_v14 = vadd.s32 %v2514_v39, %v2512_v63  ;;  %v2539_v47 = vadd.s32 %v2538_v52, %v2528_v9  ;;  %v2623_v26 = vsel %vm2622_vm7, %v2621_v1, 0  ;;  %v2237_v42 = vadd.s32 127, %v2236_v19 }
 0x2b6   :  { %v2487_v23 = vsel %vm2481_vm10, %v2484_v40, %v2486_v51  ;;  %v2625_v36 = vand.u32 31, %v2623_v26  ;;  %v5811_v60 = vadd.s32 %v2533_v44, %v2529_v29  ;;  %v6263_v61 = vand.u32 2147483647, %v5720_v8 }
 0x2b7   :  { %v2517_v2 = vadd.s32 %v2516_v14, %v2506_v34  ;;  %v2540_v54 = vadd.s32 %v2539_v47, %v2530_v13  ;;  %v5815_v11 = vadd.f32 1.0, %v5752_v18  ;;  %v5818_v7 = vadd.f32 1.0, %v5766_v55 }
 0x2b8   :  { %v5825_v59 = vsel %vm1792_vm1, %v1914_v53, %v5341_v57  ;;  %v5828_v9 = vsel %vm2928_vm13, 0, %v2927_v20  ;;  %v2541_v49 = vmul.u32 %v5737_v58, %v2487_v23  ;;  %v5833_v18 = vsub.s32 32, %v2625_v36 }
 0x2b9   :  { %v5830_v30 = vadd.s32 %v2517_v2, %v2508_v21  ;;  %v2544_v29 = vadd.s32 1, %v2540_v54  ;;  %v5836_v55 = vadd.f32 0.041655596, %v5778_v3  ;;  %v1926_v19 = vmul.f32 -0.00019511016, %v5756_v50 }
 0x2ba   :  { %v6373_v10 = vxor.u32 2147483648, %v5768_v15  ;;  %v2235_v53 = vor.u32 %v2234_v62, %v2233_v0  ;;  %v2238_v44 = vshll.u32 %v2237_v42, 23  ;;  %v2399_v20 = vsub.s32 4294967266, %v5828_v9 }
 0x2bb   :  { %vm2543_vm1 = vc.u32 %v5830_v30, %v5811_v60  ;;  %v2618_v58 = vand.u32 8388607, %v6263_v61  ;;  %v5849_v40 = vshrl.u32 %v2623_v26, 5  ;;  %v2631_v31 = vshll.u32 %v6334_v43, %v2625_v36 }
 0x2bc   :  { %v2076_v57 = vsel %vm1955_vm8, %v6373_v10, %v5768_v15  ;;  %v2545_v3 = vsel %vm2543_vm1, %v2544_v29, %v2540_v54  ;;  %v2634_v1 = vshll.u32 %v6302_v48, %v2625_v36  ;;  %v6374_v51 = vand.u32 2147483647, %v6372_v37 }
 0x2bd   :  { %v2546_v38 = vadd.s32 %v2545_v3, %v2541_v49  ;;  %v2632_v13 = vshrl.u32 %v6302_v48, %v5833_v18  ;;  %v2635_v5 = vshrl.u32 %v6283_v16, %v5833_v18  ;;  %v2637_v34 = vshll.u32 %v6283_v16, %v2625_v36 }
 0x2be   :  { %vm5855_vm14 = vcmp.le.f32.partialorder %v6374_v51, 0.7853982  ;;  %v2628_v63 = vshll.u32 %v6275_v4, %v2625_v36  ;;  %v2629_v52 = vshrl.u32 %v6334_v43, %v5833_v18  ;;  %v2638_v0 = vshrl.u32 %v6330_v32, %v5833_v18 }
 0x2bf   :  { %v2640_v39 = vshll.u32 %v6330_v32, %v2625_v36  ;;  %v2239_v21 = vor.u32 4788187, %v2238_v44  ;;  %v2379_v14 = vadd.s32 %v5627_v56, %v5631_v22  ;;  %v2547_v48 = vadd.s32 536870912, %v2546_v38 }
 0x2c0   :  { %v2641_v47 = vshrl.u32 %v6331_v45, %v5833_v18  ;;  %v2395_v16 = vsub.s32 32, %v5828_v9  ;;  %v2400_v26 = vadd.s32 127, %v2399_v20  ;;  %v2619_v62 = vor.u32 8388608, %v2618_v58 }
 0x2c1   :  { %v2639_v42 = vor.u32 %v2638_v0, %v2637_v34  ;;  %v5875_v23 = vshrl.u32 %v2547_v48, 30  ;;  %v5877_v43 = vor.u32 %v2632_v13, %v2631_v31  ;;  %v5879_v2 = vor.u32 %v2635_v5, %v2634_v1 }
 0x2c2   :  { %vm2646_vm15 = vcmp.lt.s32.totalorder %v5849_v40, 4  ;;  %v2242_v32 = vcvt.s32.f32 %v2235_v53  ;;  %v5882_v36 = vor.u32 %v2629_v52, %v2628_v63  ;;  %v2642_v56 = vor.u32 %v2641_v47, %v2640_v39  ;;  %v6377_v39 = vld [vmem:[#allocation25_spill] sm:$0xff] }
 0x2c3   :  { %vm2643_vm11 = vcmp.lt.s32.totalorder %v5849_v40, 1  ;;  %v2240_v45 = vand.u32 2147483647, %v2239_v21  ;;  %v2549_v22 = vshll.u32 %v5875_v23, 30  ;;  %vm2645_vm10 = vcmp.lt.s32.totalorder %v5849_v40, 3 }
 0x2c4   :  { %v2652_v54 = vsel %vm2646_vm15, %v2639_v42, 920167782  ;;  %v1927_v49 = vadd.f32 0.008332121, %v1926_v19  ;;  %v2396_v29 = vshll.u32 %v5733_v17, %v5828_v9  ;;  %v2397_v10 = vshrl.u32 %v2379_v14, %v2395_v16 }
 0x2c5   :  { %v5891_v44 = vshll.u32 %v2619_v62, 8  ;;  %v2401_v53 = vshll.u32 %v2400_v26, 23  ;;  %v2550_v20 = vsub.s32 %v2546_v38, %v2549_v22  ;;  %vm2644_vm12 = vcmp.lt.s32.totalorder %v5849_v40, 2  ;;  %v6378_v22 = vld [vmem:[#allocation19_spill] sm:$0xff] }
 0x2c6   :  { %v2655_v58 = vsel %vm2643_vm11, %v5877_v43, %v5879_v2  ;;  %v5901_v3 = vsel %vm5855_vm14, %v6372_v37, %v2076_v57  ;;  %v2651_v17 = vsel %vm2643_vm11, %v5882_v36, %v5877_v43  ;;  %v2653_v9 = vsel %vm2645_vm10, %v5879_v2, %v2652_v54 }
 0x2c7   :  { %v2656_v19 = vsel %vm2646_vm15, %v2642_v56, 1326507024  ;;  %v5912_v31 = vmul.f32 %v2242_v32, %v2240_v45  ;;  %vm2551_vm6 = vcmp.lt.s32.totalorder %v2550_v20, 0  ;;  %v2552_v1 = vsub.s32 0, %v2550_v20 }
 0x2c8   :  { %v2657_v57 = vsel %vm2645_vm10, %v2639_v42, %v2656_v19  ;;  %v2398_v51 = vor.u32 %v2397_v10, %v2396_v29  ;;  %v2660_v13 = vand.u32 65535, %v5891_v44  ;;  %v2661_v5 = vshrl.u32 %v5891_v44, 16 }
 0x2c9   :  { %v2658_v38 = vsel %vm2644_vm12, %v2655_v58, %v2657_v57  ;;  %v2402_v34 = vor.u32 4788187, %v2401_v53  ;;  %v2553_v63 = vsel %vm2551_vm6, %v2552_v1, %v2550_v20  ;;  %v2654_v52 = vsel %vm2644_vm12, %v2651_v17, %v2653_v9 }
 0x2ca   :  { %v2662_v0 = vand.u32 65535, %v2658_v38  ;;  %v5924_v21 = vmul.f32 %v5818_v7, %v6377_v39  ;;  %v2554_v14 = vclz %v2553_v63  ;;  %v2663_v48 = vshrl.u32 %v2658_v38, 16 }
 0x2cb   :  { %v2684_v47 = vand.u32 65535, %v2654_v52  ;;  %v5928_v16 = vmul.f32 %v5836_v55, %v5756_v50  ;;  %v1928_v26 = vmul.f32 %v1927_v49, %v5756_v50  ;;  %v5933_v62 = vmul.f32 %v5901_v3, %v5901_v3 }
 0x2cc   :  { %v2244_v42 = vxor.u32 2147483648, %v5912_v31  ;;  %v2932_v32 = vadd.s32 4294967294, %v2554_v14  ;;  %v2664_v56 = vmul.u32 %v2662_v0, %v2660_v13  ;;  %v2665_v45 = vmul.u32 %v2663_v48, %v2660_v13 }
 0x2cd   :  { %v2666_v7 = vmul.u32 %v2662_v0, %v2661_v5  ;;  %vm2124_vm3 = vcmp.lt.s32.totalorder %v6378_v22, 0  ;;  %v2403_v54 = vand.u32 2147483647, %v2402_v34  ;;  %v2405_v29 = vcvt.s32.f32 %v2398_v51 }
 0x2ce   :  { %v2542_v55 = vadd.s32 %v5811_v60, %v5830_v30  ;;  %v2685_v10 = vshrl.u32 %v2654_v52, 16  ;;  %vm2933_vm5 = vcmp.lt.s32.totalorder %v2932_v32, 0  ;;  %v2667_v49 = vmul.u32 %v2663_v48, %v2661_v5  ;;  %v6379_v48 = vld [vmem:[#allocation18_spill] sm:$0xff] }
 0x2cf   :  { %v2668_v53 = vshll.u32 %v2665_v45, 16  ;;  %v2686_v58 = vmul.u32 %v2684_v47, %v2660_v13  ;;  %v2557_v17 = vsel %vm2933_vm5, 0, %v2932_v32  ;;  %v2670_v9 = vshll.u32 %v2666_v7, 16 }
 0x2d0   :  { %v2687_v19 = vmul.u32 %v2685_v10, %v2660_v13  ;;  %v2688_v1 = vmul.u32 %v2684_v47, %v2661_v5  ;;  %v2558_v57 = vsub.s32 32, %v2557_v17  ;;  %v2559_v38 = vshll.u32 %v2550_v20, %v2557_v17 }
 0x2d1   :  { %v2562_v63 = vsub.s32 4294967266, %v2557_v17  ;;  %vm2672_vm9 = vc.u32 %v2664_v56, %v2668_v53  ;;  %v2406_v0 = vmul.f32 %v2405_v29, %v2403_v54  ;;  %v2674_v51 = vadd.s32 %v2668_v53, %v2664_v56 }
 0x2d2   :  { %v2673_v34 = vsel %vm2672_vm9, 1, %v6276_v35  ;;  %v2690_v39 = vshll.u32 %v2687_v19, 16  ;;  %v2560_v14 = vshrl.u32 %v2542_v55, %v2558_v57  ;;  %v2689_v52 = vmul.u32 %v2685_v10, %v2661_v5 }
 0x2d3   :  { %v2563_v60 = vadd.s32 127, %v2562_v63  ;;  %v2675_v30 = vadd.s32 %v2673_v34, %v2667_v49  ;;  %vm1607_vm0 = vweird.f32 %v6379_v48  ;;  %v2669_v61 = vshrl.u32 %v2665_v45, 16 }
 0x2d4   :  { %vm2676_vm13 = vc.u32 %v2674_v51, %v2670_v9  ;;  %v2692_v32 = vshll.u32 %v2688_v1, 16  ;;  %vm2694_vm7 = vc.u32 %v2686_v58, %v2690_v39  ;;  %v2561_v13 = vor.u32 %v2560_v14, %v2559_v38 }
 0x2d5   :  { %v2564_v47 = vshll.u32 %v2563_v60, 23  ;;  %v2627_v20 = vshrl.u32 %v6275_v4, %v5833_v18  ;;  %v2677_v54 = vsel %vm2676_vm13, 1, %v6276_v35  ;;  %v2648_v56 = vsel %vm2646_vm15, %v5879_v2, 2102212464  ;;  %v6383_v60 = vld [vmem:[#allocation24_spill] sm:$0xff] }
 0x2d6   :  { %v2679_v29 = vadd.s32 %v2677_v54, %v2675_v30  ;;  %v2695_v5 = vsel %vm2694_vm7, 1, %v6276_v35  ;;  %v2696_v55 = vadd.s32 %v2690_v39, %v2686_v58  ;;  %v2245_v45 = vsel %vm2124_vm3, %v2244_v42, %v5912_v31  ;;  %v6387_v54 = vld [vmem:[#allocation21_spill] sm:$0xff] }
 0x2d7   :  { %v2565_v10 = vor.u32 4788187, %v2564_v47  ;;  %v2671_v49 = vshrl.u32 %v2666_v7, 16  ;;  %v2697_v53 = vadd.s32 %v2695_v5, %v2689_v52  ;;  %vm1774_vm1 = vcmp.eq.s32.totalorder %v5681_v27, 0  ;;  %v6388_v5 = vld [vmem:[#allocation26_spill] sm:$0xff] }
 0x2d8   :  { %v2568_v4 = vcvt.s32.f32 %v2561_v13  ;;  %v2680_v18 = vadd.s32 %v2679_v29, %v2669_v61  ;;  %v2691_v17 = vshrl.u32 %v2687_v19, 16  ;;  %vm2698_vm6 = vc.u32 %v2696_v55, %v2692_v32 }
 0x2d9   :  { %v2566_v9 = vand.u32 2147483647, %v2565_v10  ;;  %v2647_v2 = vsel %vm2643_vm11, %v2627_v20, %v5882_v36  ;;  %v2649_v58 = vsel %vm2645_vm10, %v5877_v43, %v2648_v56  ;;  %v2699_v31 = vsel %vm2698_vm6, 1, %v6276_v35 }
 0x2da   :  { %v1929_v42 = vadd.f32 -0.16666654, %v1928_v26  ;;  %v2407_v7 = vxor.u32 2147483648, %v2406_v0  ;;  %v2693_v57 = vshrl.u32 %v2688_v1, 16  ;;  %v2701_v38 = vadd.s32 %v2699_v31, %v2697_v53 }
 0x2db   :  { %v2089_v63 = vmul.f32 -0.00019511016, %v5933_v62  ;;  %v6380_v61 = vand.u32 2147483647, %v6378_v22  ;;  %v5966_v34 = vadd.s32 %v2680_v18, %v2671_v49  ;;  %v5968_v36 = vadd.s32 %v2696_v55, %v2692_v32 }
 0x2dc   :  { %vm1773_vm11 = vcmp.lt.s32.totalorder %v5681_v27, 2  ;;  %v2569_v43 = vmul.f32 %v2568_v4, %v2566_v9  ;;  %v2650_v26 = vsel %vm2644_vm12, %v2647_v2, %v2649_v58  ;;  %v2702_v1 = vadd.s32 %v2701_v38, %v2691_v17 }
 0x2dd   :  { %vm5962_vm15 = vcmp.le.f32.partialorder %v6380_v61, 0.7853982  ;;  %v1618_v51 = vsel %vm1607_vm0, nan, %v5743_v12  ;;  %v1775_v39 = vxor.u32 2147483648, %v5924_v21  ;;  %v1917_v14 = vsel %vm5685_vm4, 0, %v5825_v59 }
 0x2de   :  { %v5974_v35 = vsel %vm5962_vm15, %v6378_v22, %v2245_v45  ;;  %vm2287_vm10 = vcmp.lt.s32.totalorder %v6383_v60, 0  ;;  %v1778_v30 = vxor.u32 2147483648, %v5815_v11  ;;  %v1930_v52 = vmul.f32 %v1929_v42, %v5756_v50 }
 0x2df   :  { %v2408_v40 = vsel %vm2287_vm10, %v2407_v7, %v2406_v0  ;;  %v2703_v32 = vadd.s32 %v2702_v1, %v2693_v57  ;;  %v2090_v48 = vadd.f32 0.008332121, %v2089_v63  ;;  %v5994_v12 = vmul.f32 %v5974_v35, %v5974_v35 }
 0x2e0   :  { %v2704_v6 = vmul.u32 %v5891_v44, %v2650_v26  ;;  %vm2706_vm4 = vc.u32 %v5966_v34, %v5968_v36  ;;  %v1922_v59 = vadd.f32 -0.4999988, %v5928_v16  ;;  %v6384_v13 = vand.u32 2147483647, %v6383_v60 }
 0x2e1   :  { %v2570_v0 = vxor.u32 2147483648, %v2569_v43  ;;  %v2707_v20 = vadd.s32 1, %v2703_v32  ;;  %vm1770_vm5 = vweird.f32 %v6387_v54  ;;  %v1776_v56 = vsel %vm1774_vm1, %v5815_v11, %v1775_v39 }
 0x2e2   :  { %vm6002_vm12 = vcmp.le.f32.partialorder %v6384_v13, 0.7853982  ;;  %vm1777_vm9 = vcmp.eq.s32.totalorder %v5681_v27, 2  ;;  %v1934_v44 = vadd.s32 3, %v1917_v14  ;;  %v1931_v29 = vadd.f32 1.0, %v1930_v52 }
 0x2e3   :  { %v6014_v16 = vsel %vm6002_vm12, %v6383_v60, %v2408_v40  ;;  %v2077_v55 = vsub.s32 4, %v6388_v5  ;;  %v2082_v45 = vmul.f32 -0.001358992, %v5933_v62  ;;  %v2708_v10 = vsel %vm2706_vm4, %v2707_v20, %v2703_v32 }
 0x2e4   :  { %v2091_v49 = vmul.f32 %v2090_v48, %v5933_v62  ;;  %v2258_v53 = vmul.f32 -0.00019511016, %v5994_v12  ;;  %vm2450_vm0 = vcmp.lt.s32.totalorder %v5607_v41, 0  ;;  %v2709_v11 = vadd.s32 %v2708_v10, %v2704_v6 }
 0x2e5   :  { %v1779_v4 = vsel %vm1777_vm9, %v1778_v30, %v5924_v21  ;;  %v1923_v18 = vmul.f32 %v1922_v59, %v5756_v50  ;;  %v6025_v17 = vmul.f32 %v6014_v16, %v6014_v16  ;;  %v2571_v9 = vsel %vm2450_vm0, %v2570_v0, %v2569_v43 }
 0x2e6   :  { %v6389_v2 = vstv %s5642_s25  ;;  %v1780_v31 = vsel %vm1773_vm11, %v1776_v56, %v1779_v4  ;;  %v1935_v42 = vand.u32 3, %v1934_v44  ;;  %v2710_v7 = vadd.s32 536870912, %v2709_v11 }
 0x2e7   :  { %v1620_v58 = vmul.f32 %v6389_v2, %v1618_v51  ;;  %v1932_v57 = vmul.f32 %v1931_v29, %v5730_v28  ;;  %v2078_v50 = vsel %vm1955_vm8, %v2077_v55, %v6388_v5  ;;  %v2083_v21 = vadd.f32 0.041655596, %v2082_v45 }
 0x2e8   :  { %v6390_v38 = vand.u32 2147483647, %v5607_v41  ;;  %v2092_v61 = vadd.f32 -0.16666654, %v2091_v49  ;;  %v2259_v43 = vadd.f32 0.008332121, %v2258_v53  ;;  %v1782_v1 = vstv %s5990_s27 }
 0x2e9   :  { %v6048_v26 = vshrl.u32 %v2710_v7, 30  ;;  %v1621_v28 = vadd.f32 %v1620_v58, %v5671_v24  ;;  %v1924_v51 = vadd.f32 1.0, %v1923_v18  ;;  %v2421_v39 = vmul.f32 -0.00019511016, %v6025_v17 }
 0x2ea   :  { %vm6039_vm13 = vcmp.le.f32.partialorder %v6390_v38, 0.7853982  ;;  %vm1936_vm8 = vcmp.lt.s32.totalorder %v1935_v42, 2  ;;  %v2080_v14 = vsel %vm5855_vm14, 0, %v2078_v50  ;;  %v2251_v30 = vmul.f32 -0.001358992, %v5994_v12 }
 0x2eb   :  { %v6046_v27 = vsel %vm6039_vm13, %v5607_v41, %v2571_v9  ;;  %v2712_v52 = vshll.u32 %v6048_v26, 30  ;;  %v1781_v40 = vsel %vm1770_vm5, nan, %v1780_v31  ;;  %vm1937_vm7 = vcmp.eq.s32.totalorder %v1935_v42, 0 }
 0x2ec   :  { %v1938_v32 = vxor.u32 2147483648, %v1932_v57  ;;  %v6063_v24 = vmul.f32 %v6046_v27, %v6046_v27  ;;  %v2084_v48 = vmul.f32 %v2083_v21, %v5933_v62  ;;  %v2093_v6 = vmul.f32 %v2092_v61, %v5933_v62 }
 0x2ed   :  { %v2260_v15 = vmul.f32 %v2259_v43, %v5994_v12  ;;  %v6068_v59 = vsub.s32 %v2709_v11, %v2712_v52  ;;  %vm1940_vm14 = vcmp.eq.s32.totalorder %v1935_v42, 2  ;;  %v1941_v13 = vxor.u32 2147483648, %v1924_v51 }
 0x2ee   :  { %v2097_v0 = vadd.s32 3, %v2080_v14  ;;  %v2422_v20 = vadd.f32 0.008332121, %v2421_v39  ;;  %v2252_v54 = vadd.f32 0.041655596, %v2251_v30  ;;  %v1783_v29 = vmul.f32 %v1782_v1, %v1781_v40 }
 0x2ef   :  { %v2414_v56 = vmul.f32 -0.001358992, %v6025_v17  ;;  %vm2714_vm1 = vcmp.lt.s32.totalorder %v6068_v59, 0  ;;  %v2715_v44 = vsub.s32 0, %v6068_v59  ;;  %v1939_v5 = vsel %vm1937_vm7, %v1924_v51, %v1938_v32 }
 0x2f0   :  { %v2246_v55 = vsub.s32 4, %v5640_v25  ;;  %v2584_v45 = vmul.f32 -0.00019511016, %v6063_v24  ;;  %v2085_v10 = vadd.f32 -0.4999988, %v2084_v48  ;;  %v2094_v49 = vadd.f32 1.0, %v2093_v6 }
 0x2f1   :  { %v2261_v53 = vadd.f32 -0.16666654, %v2260_v15  ;;  %v2716_v11 = vsel %vm2714_vm1, %v2715_v44, %v6068_v59  ;;  %v6077_v4 = vadd.f32 %v1783_v29, %v1621_v28  ;;  %vm1933_vm6 = vweird.f32 %v6368_v46 }
 0x2f2   :  { %v1945_v18 = vstv %s6052_s28  ;;  %v2423_v9 = vmul.f32 %v2422_v20, %v6025_v17  ;;  %v2717_v2 = vclz %v2716_v11  ;;  %v1942_v58 = vsel %vm1940_vm14, %v1941_v13, %v1932_v57 }
 0x2f3   :  { %v6083_v31 = vand.u32 3, %v2097_v0  ;;  %v2253_v7 = vmul.f32 %v2252_v54, %v5994_v12  ;;  %v2415_v50 = vadd.f32 0.041655596, %v2414_v56  ;;  %v1943_v21 = vsel %vm1936_vm8, %v1939_v5, %v1942_v58 }
 0x2f4   :  { %v2247_v38 = vsel %vm2124_vm3, %v2246_v55, %v5640_v25  ;;  %v2585_v61 = vadd.f32 0.008332121, %v2584_v45  ;;  %v2937_v43 = vadd.s32 4294967294, %v2717_v2  ;;  %v2086_v28 = vmul.f32 %v2085_v10, %v5933_v62 }
 0x2f5   :  { %v2095_v1 = vmul.f32 %v2094_v49, %v5901_v3  ;;  %v2262_v51 = vmul.f32 %v2261_v53, %v5994_v12  ;;  %v2409_v57 = vsub.s32 4, %v5692_v33  ;;  %v2424_v39 = vadd.f32 -0.16666654, %v2423_v9 }
 0x2f6   :  { %v2577_v14 = vmul.f32 -0.001358992, %v6063_v24  ;;  %v2705_v42 = vadd.s32 %v5968_v36, %v5966_v34  ;;  %vm2938_vm11 = vcmp.lt.s32.totalorder %v2937_v43, 0  ;;  %v2249_v25 = vsel %vm5962_vm15, 0, %v2247_v38 }
 0x2f7   :  { %v2254_v30 = vadd.f32 -0.4999988, %v2253_v7  ;;  %v2416_v52 = vmul.f32 %v2415_v50, %v6025_v17  ;;  %v2720_v62 = vsel %vm2938_vm11, 0, %v2937_v43  ;;  %v2586_v3 = vmul.f32 %v2585_v61, %v6063_v24 }
 0x2f8   :  { %v2721_v40 = vsub.s32 32, %v2720_v62  ;;  %v2722_v32 = vshll.u32 %v6068_v59, %v2720_v62  ;;  %v2725_v48 = vsub.s32 4294967266, %v2720_v62  ;;  %v2087_v6 = vadd.f32 1.0, %v2086_v28 }
 0x2f9   :  { %vm2100_vm3 = vcmp.eq.s32.totalorder %v6083_v31, 0  ;;  %v2263_v15 = vadd.f32 1.0, %v2262_v51  ;;  %v2410_v34 = vsel %vm2287_vm10, %v2409_v57, %v5692_v33  ;;  %vm2099_vm15 = vcmp.lt.s32.totalorder %v6083_v31, 2 }
 0x2fa   :  { %v2425_v19 = vmul.f32 %v2424_v39, %v6025_v17  ;;  %v2578_v36 = vadd.f32 0.041655596, %v2577_v14  ;;  %v2723_v13 = vshrl.u32 %v2705_v42, %v2721_v40  ;;  %v2726_v0 = vadd.s32 127, %v2725_v48 }
 0x2fb   :  { %v1944_v20 = vsel %vm1933_vm6, nan, %v1943_v21  ;;  %v2101_v59 = vxor.u32 2147483648, %v2095_v1  ;;  %v2255_v54 = vmul.f32 %v2254_v30, %v5994_v12  ;;  %v2266_v56 = vadd.s32 3, %v2249_v25 }
 0x2fc   :  { %v2417_v44 = vadd.f32 -0.4999988, %v2416_v52  ;;  %v2587_v29 = vadd.f32 -0.16666654, %v2586_v3  ;;  %v2724_v5 = vor.u32 %v2723_v13, %v2722_v32  ;;  %v2727_v33 = vshll.u32 %v2726_v0, 23 }
 0x2fd   :  { %v2104_v55 = vxor.u32 2147483648, %v2087_v6  ;;  %v2264_v45 = vmul.f32 %v2263_v15, %v5974_v35  ;;  %v2412_v10 = vsel %vm6002_vm12, 0, %v2410_v34  ;;  %v2572_v49 = vsub.s32 4, %v5875_v23 }
 0x2fe   :  { %v2426_v46 = vadd.f32 1.0, %v2425_v19  ;;  %v2579_v53 = vmul.f32 %v2578_v36, %v6063_v24  ;;  %v2728_v11 = vor.u32 4788187, %v2727_v33  ;;  %v2731_v9 = vcvt.s32.f32 %v2724_v5 }
 0x2ff   :  { %v1946_v2 = vmul.f32 %v1945_v18, %v1944_v20  ;;  %vm2103_vm10 = vcmp.eq.s32.totalorder %v6083_v31, 2  ;;  %v2256_v12 = vadd.f32 1.0, %v2255_v54  ;;  %v2267_v58 = vand.u32 3, %v2266_v56 }
 0x300   :  { %vm2096_vm4 = vweird.f32 %v6372_v37  ;;  %v2102_v35 = vsel %vm2100_vm3, %v2087_v6, %v2101_v59  ;;  %v2418_v47 = vmul.f32 %v2417_v44, %v6025_v17  ;;  %v2588_v7 = vmul.f32 %v2587_v29, %v6063_v24 }
 0x301   :  { %v2729_v50 = vand.u32 2147483647, %v2728_v11  ;;  %v1947_v21 = vadd.f32 %v1946_v2, %v6077_v4  ;;  %v2270_v38 = vxor.u32 2147483648, %v2264_v45  ;;  %v2429_v61 = vadd.s32 3, %v2412_v10  ;;  %v2773_v2 = vpop.xlane.xlu1 %2772 }
 0x302   :  { %v2573_v18 = vsel %vm2450_vm0, %v2572_v49, %v5875_v23  ;;  %v2105_v43 = vsel %vm2103_vm10, %v2104_v55, %v2095_v1  ;;  %v2427_v28 = vmul.f32 %v2426_v46, %v6014_v16  ;;  %v2580_v51 = vadd.f32 -0.4999988, %v2579_v53 }
 0x303   :  { %v2732_v57 = vmul.f32 %v2731_v9, %v2729_v50  ;;  %v2106_v39 = vsel %vm2099_vm15, %v2102_v35, %v2105_v43  ;;  %v2108_v17 = vstv %s6110_s29  ;;  %vm2269_vm12 = vcmp.eq.s32.totalorder %v2267_v58, 0 }
 0x304   :  { %v2273_v14 = vxor.u32 2147483648, %v2256_v12  ;;  %v2419_v42 = vadd.f32 1.0, %v2418_v47  ;;  %v2575_v4 = vsel %vm6039_vm13, 0, %v2573_v18  ;;  %v2589_v25 = vadd.f32 1.0, %v2588_v7  ;;  %v6396_v18 = vld [vmem:[#allocation15_spill] sm:$0xff] }
 0x305   :  { %v2733_v30 = vxor.u32 2147483648, %v2732_v57  ;;  %vm2268_vm5 = vcmp.lt.s32.totalorder %v2267_v58, 2  ;;  %v2271_v23 = vsel %vm2269_vm12, %v2256_v12, %v2270_v38  ;;  %v2430_v1 = vand.u32 3, %v2429_v61 }
 0x306   :  { %vm2613_vm9 = vcmp.lt.s32.totalorder %v5720_v8, 0  ;;  %v2433_v16 = vxor.u32 2147483648, %v2427_v28  ;;  %v2581_v31 = vmul.f32 %v2580_v51, %v6063_v24  ;;  %v6393_v52 = vand.u32 2147483647, %v5720_v8 }
 0x307   :  { %v2734_v63 = vsel %vm2613_vm9, %v2733_v30, %v2732_v57  ;;  %vm2272_vm13 = vcmp.eq.s32.totalorder %v2267_v58, 2  ;;  %v2592_v3 = vadd.s32 3, %v2575_v4  ;;  %v2735_v40 = vsub.s32 4, %v6048_v26 }
 0x308   :  { %vm6140_vm0 = vcmp.le.f32.partialorder %v6393_v52, 0.7853982  ;;  %v2274_v48 = vsel %vm2272_vm13, %v2273_v14, %v2264_v45  ;;  %v2436_v6 = vxor.u32 2147483648, %v2419_v42  ;;  %v2590_v24 = vmul.f32 %v2589_v25, %v6046_v27 }
 0x309   :  { %v2737_v32 = vsel %vm6140_vm0, %v5720_v8, %v2734_v63  ;;  %v2107_v34 = vsel %vm2096_vm4, nan, %v2106_v39  ;;  %vm2265_vm8 = vweird.f32 %v6378_v22  ;;  %v2275_v19 = vsel %vm2268_vm5, %v2271_v23, %v2274_v48 }
 0x30a   :  { %v2739_v15 = vmul.f32 %v2737_v32, %v2737_v32  ;;  %vm2432_vm7 = vcmp.eq.s32.totalorder %v2430_v1, 0  ;;  %v2582_v13 = vadd.f32 1.0, %v2581_v31  ;;  %vm2431_vm14 = vcmp.lt.s32.totalorder %v2430_v1, 2 }
 0x30b   :  { %v2434_v36 = vsel %vm2432_vm7, %v2419_v42, %v2433_v16  ;;  %vm2435_vm1 = vcmp.eq.s32.totalorder %v2430_v1, 2  ;;  %v2593_v59 = vand.u32 3, %v2592_v3  ;;  %v2736_v37 = vsel %vm2613_vm9, %v2735_v40, %v6048_v26 }
 0x30c   :  { %v2740_v0 = vmul.f32 -0.001358992, %v2739_v15  ;;  %v2747_v20 = vmul.f32 -0.00019511016, %v2739_v15  ;;  %v2437_v27 = vsel %vm2435_vm1, %v2436_v6, %v2427_v28  ;;  %v2596_v54 = vxor.u32 2147483648, %v2590_v24 }
 0x30d   :  { %v2109_v29 = vmul.f32 %v2108_v17, %v2107_v34  ;;  %v2276_v5 = vsel %vm2265_vm8, nan, %v2275_v19  ;;  %v2277_v33 = vstv %s6134_s30  ;;  %v2438_v55 = vsel %vm2431_vm14, %v2434_v36, %v2437_v27 }
 0x30e   :  { %v2741_v56 = vadd.f32 0.041655596, %v2740_v0  ;;  %v2748_v44 = vadd.f32 0.008332121, %v2747_v20  ;;  %v2599_v45 = vxor.u32 2147483648, %v2582_v13  ;;  %v2738_v10 = vsel %vm6140_vm0, 0, %v2736_v37 }
 0x30f   :  { %v2110_v26 = vadd.f32 %v2109_v29, %v1947_v21  ;;  %vm2428_vm6 = vweird.f32 %v6383_v60  ;;  %vm2595_vm11 = vcmp.eq.s32.totalorder %v2593_v59, 0  ;;  %v2278_v53 = vmul.f32 %v2277_v33, %v2276_v5 }
 0x310   :  { %v2742_v49 = vmul.f32 %v2741_v56, %v2739_v15  ;;  %v2749_v46 = vmul.f32 %v2748_v44, %v2739_v15  ;;  %v2597_v11 = vsel %vm2595_vm11, %v2582_v13, %v2596_v54  ;;  %v2439_v12 = vsel %vm2428_vm6, nan, %v2438_v55  ;;  %v2811_v13 = vld [vmem:[#allocation3] sm:$0xf] }
 0x311   :  { %v2440_v58 = vstv %s6155_s9  ;;  %vm2598_vm3 = vcmp.eq.s32.totalorder %v2593_v59, 2  ;;  %v2755_v35 = vadd.s32 3, %v2738_v10  ;;  %vm2594_vm15 = vcmp.lt.s32.totalorder %v2593_v59, 2 }
 0x312   :  { %v2743_v9 = vadd.f32 -0.4999988, %v2742_v49  ;;  %v2750_v22 = vadd.f32 -0.16666654, %v2749_v46  ;;  %v2600_v47 = vsel %vm2598_vm3, %v2599_v45, %v2590_v24  ;;  %v2279_v21 = vadd.f32 %v2278_v53, %v2110_v26 }
 0x313   :  { %v2601_v38 = vsel %vm2594_vm15, %v2597_v11, %v2600_v47  ;;  %v2774_v43 = vsub.f32 %v6396_v18, %v2773_v2  ;;  %v2441_v28 = vmul.f32 %v2440_v58, %v2439_v12  ;;  %vm2591_vm10 = vweird.f32 %v5607_v41 }
 0x314   :  { %v2744_v7 = vmul.f32 %v2743_v9, %v2739_v15  ;;  %v2751_v50 = vmul.f32 %v2750_v22, %v2739_v15  ;;  %v2756_v51 = vand.u32 3, %v2755_v35  ;;  %v2602_v57 = vsel %vm2591_vm10, nan, %v2601_v38 }
 0x315   :  { %v2603_v39 = vstv %s6163_s10  ;;  %v2442_v42 = vadd.f32 %v2441_v28, %v2279_v21  ;;  %v2775_v25 = vmul.f32 1.442695, %v2774_v43  ;;  %v2766_v16 = vstv %s6169_s11 }
 0x316   :  { %v2745_v60 = vadd.f32 1.0, %v2744_v7  ;;  %v2752_v61 = vadd.f32 1.0, %v2751_v50  ;;  %v2604_v30 = vmul.f32 %v2603_v39, %v2602_v57  ;;  %vm2757_vm4 = vcmp.lt.s32.totalorder %v2756_v51, 2 }
 0x317   :  { %vm2758_vm12 = vcmp.eq.s32.totalorder %v2756_v51, 0  ;;  %vm2761_vm5 = vcmp.eq.s32.totalorder %v2756_v51, 2  ;;  %v2778_v31 = vlaneseq  ;;  %vm2754_vm9 = vweird.f32 %v5720_v8 }
 0x318   :  { %v2753_v17 = vmul.f32 %v2752_v61, %v2737_v32  ;;  %v2762_v14 = vxor.u32 2147483648, %v2745_v60  ;;  %v2605_v52 = vadd.f32 %v2604_v30, %v2442_v42  ;;  %2973 = vpow2.f32 %v2775_v25 }
 0x319   :  { %v2779_v3 = vshrl.u32 %v2778_v31, 7  ;;  %v2783_v40 = vand.u32 127, %v2778_v31  ;;  %v2789_v19 = vsub.f32 0.0, %v2773_v2  ;;  %vm2815_vm13 = vcmask 1043456  }
 0x31a   :  { %v2759_v4 = vxor.u32 2147483648, %v2753_v17  ;;  %v2763_v1 = vsel %vm2761_vm5, %v2762_v14, %v2753_v17  ;;  %v2817_v8 = vsel %vm2815_vm13, %v2811_v13, 0 }
 0x31b   :  { %vm2784_vm0 = vcmp.eq.s32.totalorder %v2779_v3, %v2783_v40  ;;  %v2790_v36 = vmul.f32 1.442695, %v2789_v19  ;;  %2826 = vmatpush.bf16.msra.mxu1 %v2817_v8 }
 0x31c   :  { %v2760_v23 = vsel %vm2758_vm12, %v2745_v60, %v2759_v4 }
 0x31d   :  { %v2764_v41 = vsel %vm2757_vm4, %v2760_v23, %v2763_v1  ;;  %2975 = vpow2.f32 %v2790_v36 }
 0x31e   :  { %v2765_v62 = vsel %vm2754_vm9, nan, %v2764_v41  ;;  %v2974_v6 = vpop.eup %2973 }
 0x31f   :  { %v2767_v63 = vmul.f32 %v2766_v16, %v2765_v62 }
 0x321   :  { %v2768_v32 = vadd.f32 %v2767_v63, %v2605_v52 }
 0x323   :  { %v2769_v48 = vmax.f32 %v2768_v32, 0.0  ;;  %v2976_v0 = vpop.eup %2975 }
 0x324   :  { %v2792_v20 = vmul.f32 1e-10, %v2976_v0 }
 0x325   :  { %v2777_v24 = vmul.f32 %v2974_v6, %v2769_v48 }
 0x327   :  { %v2785_v15 = vsel %vm2784_vm0, 0.0, %v2777_v24 }
 0x328   :  { %v2786_v34 = vsel %vm2770_vm2, %v2785_v15, 0.0 }
 0x329   :  { %2787 = vadd.xlane.f32.xlu2 %v2786_v34 }
 0x39c   :  { %v2788_v59 = vpop.xlane.xlu2 %2787 }
 0x39d   :  { %v2793_v37 = vadd.f32 %v2792_v20, %v2788_v59 }
 0x39f   :  { %2977 = vrcp.f32 %v2793_v37  ;;  %v2805_v44 = vand.u32 2147483648, %v2793_v37  ;;  %v2803_v5 = vand.u32 2147483647, %v2793_v37  ;;  %vm2799_vm7 = vweird.f32 %v2793_v37 }
 0x3a1   :  { %v2806_v55 = vor.u32 1.1754944e-38, %v2805_v44  ;;  %vm2804_vm1 = vcmp.eq.f32.partialorder %v2803_v5, 8.507059e+37 }
 0x3a5   :  { %v2978_v27 = vpop.eup %2977 }
 0x3a6   :  { %v2795_v54 = vmul.f32 %v2978_v27, %v2793_v37  ;;  %vm2800_vm8 = vweird.f32 %v2978_v27 }
 0x3a7   :  { %vm2801_vm14 = vmor %vm2799_vm7, %vm2800_vm8 }
 0x3a8   :  { %v2796_v56 = vsub.f32 1.0, %v2795_v54 }
 0x3aa   :  { %v2797_v29 = vmul.f32 %v2978_v27, %v2796_v56 }
 0x3ac   :  { %v2798_v33 = vadd.f32 %v2978_v27, %v2797_v29 }
 0x3ae   :  { %v2802_v45 = vsel %vm2801_vm14, %v2978_v27, %v2798_v33 }
 0x3af   :  { %v2807_v10 = vsel %vm2804_vm1, %v2806_v55, %v2802_v45 }
 0x3b0   :  { %v2809_v49 = vmul.f32 %v2807_v10, %v2785_v15 }
 0x3b2   :  { %v2810_v46 = vpack.c.bf16 %v2809_v49, %v2809_v49 }
 0x3b4   :  { %2939 = vmatmul.msk.bf16.vlgmr.msra.gmra.mxu1 %vm2770_vm2, %v2810_v46 }
 0x431   :  { %v2828_v26 = vpop.f32.mrf.mxu1 }
 0x432   :  { %2832 = vst [vmem:[#allocation10] sm:$0xff] %v2828_v26 }
 0x433   :  { %2843 = dma.vmem_to_hbm [thread:$0]  %s2839_s13, 128, %s2841_s16, [#allocation5]  }
 0x439   :  { %v2830_v53 = vpop.f32.mrf.mxu1 }
 0x43a   :  { %3057 = dma.done.wait [#allocation5], 128  }
 0x43b   :  { %3058 = vsyncadd [#allocation5], 4294967168 }
 0x43c   :  { %2848 = vsyncpa [#allocation4], 1 }
 0x43d   :  { %2849 = vsyncpa [#allocation5], 1 }
 0x43e   :  { %2850 = vsyncpa [#allocation6], 1 }
 0x43f   :  { %2851 = vsyncpa [#allocation7], 1 }

</bundles_post_ra>
